<compile_context>
chip_gen: v5e
topology: v5e:2x2
jax: 0.10.0
libtpu: 0.0.40
codegen_flags: <defaults>
</compile_context>

<pallas_src>
import functools

import jax
import jax.numpy as jnp
from jax.experimental import pallas as pl
from jax.experimental.pallas import tpu as pltpu


def _round_up(x, m):
    return ((x + m - 1) // m) * m


def _pool_project_normalize_kernel(x_ref, w_ref, b_ref, o_ref, acc_ref, *,
                                   inv_seq_len):
    """Grid = (batch tiles, sequence tiles); the sequence axis is the reduction.

    x_ref  : [tB, tS, D_in]  streamed per grid step (native dtype, e.g. bf16)
    w_ref  : [D_in, D_out]   VMEM-resident across the whole grid
    b_ref  : [1, D_out]      VMEM-resident
    o_ref  : [tB, D_out]     written once, on the last sequence step
    acc_ref: [tB, D_in] f32  scratch accumulator for the sequence sum
    """
    s = pl.program_id(1)

    @pl.when(s == 0)
    def _():
        acc_ref[...] = jnp.zeros_like(acc_ref)

    # Accumulate the sequence sum of this tile in f32 (input may be bf16).
    acc_ref[...] += jnp.sum(x_ref[...].astype(jnp.float32), axis=1)

    @pl.when(s == pl.num_programs(1) - 1)
    def _():
        pooled = acc_ref[...] * inv_seq_len                # mean over true S
        # MXU matmul, f32 accumulate.  (On v5e one could cast pooled/W to bf16
        # here; the 8x1152x512 matmul is negligible on v6e/v7x.)
        proj = jnp.dot(pooled, w_ref[...],
                       preferred_element_type=jnp.float32) + b_ref[...]
        # F.normalize(dim=1): x / max(||x||, 1e-12) == x * rsqrt(max(||x||^2, 1e-24))
        sq = jnp.sum(proj * proj, axis=-1, keepdims=True)
        o_ref[...] = (proj * jax.lax.rsqrt(jnp.maximum(sq, 1e-24))).astype(o_ref.dtype)


def pool_project_normalize(x, w, b, *, batch_tile=8, seq_tile=128):
    """x: [B, S, D_in] (any float dtype; streamed as-is),
    w: [D_in, D_out], b: [D_out]  ->  [B, D_out] f32, rows L2-normalized."""
    B, S, D_in = x.shape
    D_out = w.shape[1]

    # Batch tile: multiple of 8 (sublane alignment).  Sequence tile: multiple
    # of 8, capped so double-buffered x tiles + resident W stay well under the
    # 32 MiB default scoped VMEM on every generation (incl. v7x's 64 MiB phys).
    tB = min(_round_up(B, 8), batch_tile)
    tS = min(_round_up(S, 8), seq_tile)

    # Zero-pad B and S to tile multiples: zeros don't change the sequence sum
    # (mean divides by the true S); padded batch rows are sliced off below.
    B_pad = _round_up(B, tB)
    S_pad = _round_up(S, tS)
    if (B_pad, S_pad) != (B, S):
        x = jnp.pad(x, ((0, B_pad - B), (0, S_pad - S), (0, 0)))

    grid = (B_pad // tB, S_pad // tS)
    kernel = functools.partial(_pool_project_normalize_kernel,
                               inv_seq_len=1.0 / S)

    out = pl.pallas_call(
        kernel,
        out_shape=jax.ShapeDtypeStruct((B_pad, D_out), jnp.float32),
        grid_spec=pltpu.PrefetchScalarGridSpec(
            num_scalar_prefetch=0,
            grid=grid,
            in_specs=[
                # x: streamed, one (tB, tS, D_in) tile per grid step.
                pl.BlockSpec((tB, tS, D_in), lambda i, s: (i, s, 0)),
                # W / bias: same block every step -> fetched once, resident.
                pl.BlockSpec((D_in, D_out), lambda i, s: (0, 0)),
                pl.BlockSpec((1, D_out), lambda i, s: (0, 0)),
            ],
            out_specs=pl.BlockSpec((tB, D_out), lambda i, s: (i, 0)),
            scratch_shapes=[pltpu.VMEM((tB, D_in), jnp.float32)],
        ),
        compiler_params=pltpu.CompilerParams(
            # Batch tiles are independent (v7x megacore shards them); the
            # sequence axis carries the reduction -> "arbitrary".
            dimension_semantics=("parallel", "arbitrary")),
    )(x, w.astype(jnp.float32), b.reshape(1, D_out).astype(jnp.float32))

    return out[:B]


@jax.jit
def _joint_forward(text_hidden, image_encoding, text_w, text_b,
                   vision_w, vision_b):
    # TODO(synk): a single pallas_call emitting both embeddings (shared grid,
    # per-input pl.when guards) would save one launch; here the two launches
    # at least share one jit so dispatch overhead is paid once.
    vision_embedded = pool_project_normalize(image_encoding, vision_w, vision_b)
    text_embedded = pool_project_normalize(text_hidden, text_w, text_b)
    return text_embedded, vision_embedded


class JointNetworkPallas:
    """JAX/Pallas equivalent of the PyTorch JointNetwork forward pass."""

    VISION_DIM = 1152
    TEXT_DIM = 768
    PROJ_DIM = 512

    def __init__(self, key):
        kv_w, kv_b, kt_w, kt_b = jax.random.split(key, 4)
        # nn.Linear default init: U(-1/sqrt(fan_in), 1/sqrt(fan_in)).
        bound_v = 1.0 / jnp.sqrt(self.VISION_DIM)
        bound_t = 1.0 / jnp.sqrt(self.TEXT_DIM)
        # Stored as [D_in, D_out] (transpose of torch's [D_out, D_in]) so the
        # kernel does pooled @ W directly on the MXU.
        self.vision_w = jax.random.uniform(
            kv_w, (self.VISION_DIM, self.PROJ_DIM), jnp.float32,
            minval=-bound_v, maxval=bound_v)
        self.vision_b = jax.random.uniform(
            kv_b, (self.PROJ_DIM,), jnp.float32, minval=-bound_v, maxval=bound_v)
        self.text_w = jax.random.uniform(
            kt_w, (self.TEXT_DIM, self.PROJ_DIM), jnp.float32,
            minval=-bound_t, maxval=bound_t)
        self.text_b = jax.random.uniform(
            kt_b, (self.PROJ_DIM,), jnp.float32, minval=-bound_t, maxval=bound_t)

    def __call__(self, text_hidden, image_encoding):
        """text_hidden: [B, S, 768] (ModernBERT hidden states, provided
        externally), image_encoding: [B, P, 1152].
        Returns (text_embedded, vision_embedded), each [B, 512], L2-normalized."""
        return _joint_forward(text_hidden, image_encoding,
                              self.text_w, self.text_b,
                              self.vision_w, self.vision_b)


def _reference(text_hidden, image_encoding, net):
    """Pure-JAX reference for the correctness check."""
    def f(x, w, b):
        pooled = jnp.mean(x.astype(jnp.float32), axis=1)
        proj = jnp.dot(pooled, w, preferred_element_type=jnp.float32) + b
        n = jnp.sqrt(jnp.sum(proj * proj, axis=-1, keepdims=True))
        return proj / jnp.maximum(n, 1e-12)
    return (f(text_hidden, net.text_w, net.text_b),
            f(image_encoding, net.vision_w, net.vision_b))


if __name__ == "__main__":
    key = jax.random.PRNGKey(0)
    k_params, k_img, k_txt = jax.random.split(key, 3)

    B, P, S = 2, 16, 8
    # Encoder outputs streamed in bf16 (HBM traffic on x dominates this
    # mem-bound kernel); the kernel accumulates the pooling in f32.
    image_encoding = jax.random.normal(
        k_img, (B, P, 1152), jnp.float32).astype(jnp.bfloat16)
    text_hidden = jax.random.normal(
        k_txt, (B, S, 768), jnp.float32).astype(jnp.bfloat16)

    net = JointNetworkPallas(k_params)

    text_emb, vision_emb = net(text_hidden, image_encoding)
    text_emb = jax.block_until_ready(text_emb)
    vision_emb = jax.block_until_ready(vision_emb)

    # Sanity check against the pure-JAX reference (same bf16 inputs).
    ref_text, ref_vision = _reference(text_hidden, image_encoding, net)
    assert text_emb.shape == (B, 512) and vision_emb.shape == (B, 512)
    assert jnp.allclose(text_emb, ref_text, atol=1e-3, rtol=1e-3), \
        float(jnp.max(jnp.abs(text_emb - ref_text)))
    assert jnp.allclose(vision_emb, ref_vision, atol=1e-3, rtol=1e-3), \
        float(jnp.max(jnp.abs(vision_emb - ref_vision)))
    # Rows must be unit-norm.
    assert jnp.allclose(jnp.linalg.norm(text_emb, axis=-1), 1.0, atol=1e-3)
    assert jnp.allclose(jnp.linalg.norm(vision_emb, axis=-1), 1.0, atol=1e-3)

    print("KERNEL_OK")
</pallas_src>

<mosaic_0001>
module attributes {stable_mosaic.version = 11 : i64} {
  func.func @_pool_project_normalize_kernel(%arg0: i32, %arg1: i32, %arg2: memref<8x16x1152xbf16, #tpu.memory_space<vmem>>, %arg3: memref<1152x512xf32, #tpu.memory_space<vmem>>, %arg4: memref<1x512xf32, #tpu.memory_space<vmem>>, %arg5: memref<8x512xf32, #tpu.memory_space<vmem>>, %arg6: memref<8x1152xf32, #tpu.memory_space<vmem>>) attributes {dimension_semantics = [#tpu.dimension_semantics<parallel>, #tpu.dimension_semantics<arbitrary>], iteration_bounds = array<i64: 1, 1>, scalar_prefetch = 0 : i64, scratch_operands = 1 : i64, tpu.core_type = #tpu.core_type<tc>, window_params = [{transform_indices = @transform_0, window_bounds = array<i64: 8, 16, 1152>}, {pipeline_mode = #tpu.pipeline_mode<synchronous>, transform_indices = @transform_1, window_bounds = array<i64: 1152, 512>}, {pipeline_mode = #tpu.pipeline_mode<synchronous>, transform_indices = @transform_2, window_bounds = array<i64: 1, 512>}, {transform_indices = @transform_3, window_bounds = array<i64: 8, 512>}]} {
    %c0_i32 = arith.constant 0 : i32
    %0 = arith.cmpi eq, %arg1, %c0_i32 : i32
    %1 = arith.extui %0 : i1 to i32
    %c0_i32_0 = arith.constant 0 : i32
    %2 = arith.cmpi ne, %1, %c0_i32_0 : i32
    scf.if %2 {
      %cst_9 = arith.constant 0.000000e+00 : f32
      %12 = vector.broadcast %cst_9 : f32 to vector<8x1152xf32>
      %c0_10 = arith.constant 0 : index
      %c0_11 = arith.constant 0 : index
      %13 = vector.load %arg6[%c0_10, %c0_11] : memref<8x1152xf32, #tpu.memory_space<vmem>>, vector<8x1152xf32>
      tpu.vector_store %arg6[%c0_10, %c0_11], %12 {strides = array<i32>} : memref<8x1152xf32, #tpu.memory_space<vmem>>, vector<8x1152xf32>,
    } else {
    }
    %c0 = arith.constant 0 : index
    %c0_1 = arith.constant 0 : index
    %3 = vector.load %arg6[%c0, %c0_1] : memref<8x1152xf32, #tpu.memory_space<vmem>>, vector<8x1152xf32>
    %c0_2 = arith.constant 0 : index
    %c0_3 = arith.constant 0 : index
    %c0_4 = arith.constant 0 : index
    %4 = vector.load %arg2[%c0_2, %c0_3, %c0_4] : memref<8x16x1152xbf16, #tpu.memory_space<vmem>>, vector<8x16x1152xbf16>
    %5 = arith.extf %4 : vector<8x16x1152xbf16> to vector<8x16x1152xf32>
    %cst = arith.constant dense<0.000000e+00> : vector<8x1152xf32>
    %6 = vector.multi_reduction <add>, %5, %cst [1] : vector<8x16x1152xf32> to vector<8x1152xf32>
    %7 = arith.addf %3, %6 : vector<8x1152xf32>
    %c0_5 = arith.constant 0 : index
    %c0_6 = arith.constant 0 : index
    %8 = vector.load %arg6[%c0_5, %c0_6] : memref<8x1152xf32, #tpu.memory_space<vmem>>, vector<8x1152xf32>
    tpu.vector_store %arg6[%c0_5, %c0_6], %7 {strides = array<i32>} : memref<8x1152xf32, #tpu.memory_space<vmem>>, vector<8x1152xf32>,
    %c0_i32_7 = arith.constant 0 : i32
    %9 = arith.cmpi eq, %arg1, %c0_i32_7 : i32
    %10 = arith.extui %9 : i1 to i32
    %c0_i32_8 = arith.constant 0 : i32
    %11 = arith.cmpi ne, %10, %c0_i32_8 : i32
    scf.if %11 {
      %c0_9 = arith.constant 0 : index
      %c0_10 = arith.constant 0 : index
      %12 = vector.load %arg6[%c0_9, %c0_10] : memref<8x1152xf32, #tpu.memory_space<vmem>>, vector<8x1152xf32>
      %cst_11 = arith.constant 6.250000e-02 : f32
      %13 = vector.broadcast %cst_11 : f32 to vector<8x1152xf32>
      %14 = arith.mulf %12, %13 : vector<8x1152xf32>
      %c0_12 = arith.constant 0 : index
      %c0_13 = arith.constant 0 : index
      %15 = vector.load %arg3[%c0_12, %c0_13] : memref<1152x512xf32, #tpu.memory_space<vmem>>, vector<1152x512xf32>
      %cst_14 = arith.constant dense<0.000000e+00> : vector<8x512xf32>
      %16 = tpu.matmul %14, %15, %cst_14 {dimension_numbers = #tpu.dot_dimension_numbers<[1], [0], [0], [1], [0, 0, 1, 1], [], []>} : vector<8x1152xf32>, vector<1152x512xf32>, vector<8x512xf32> -> vector<8x512xf32>
      %c0_15 = arith.constant 0 : index
      %c0_16 = arith.constant 0 : index
      %17 = vector.load %arg4[%c0_15, %c0_16] : memref<1x512xf32, #tpu.memory_space<vmem>>, vector<1x512xf32>
      %18 = vector.broadcast %17 : vector<1x512xf32> to vector<8x512xf32>
      %19 = arith.addf %16, %18 : vector<8x512xf32>
      %20 = arith.mulf %19, %19 : vector<8x512xf32>
      %cst_17 = arith.constant dense<0.000000e+00> : vector<8xf32>
      %21 = vector.multi_reduction <add>, %20, %cst_17 [1] : vector<8x512xf32> to vector<8xf32>
      %22 = vector.shape_cast %21 : vector<8xf32> to vector<8x1xf32>
      %cst_18 = arith.constant 1.000000e-24 : f32
      %23 = vector.broadcast %cst_18 : f32 to vector<8x1xf32>
      %24 = arith.maximumf %22, %23 : vector<8x1xf32>
      %25 = math.rsqrt %24 : vector<8x1xf32>
      %26 = vector.broadcast %25 : vector<8x1xf32> to vector<8x512xf32>
      %27 = arith.mulf %19, %26 : vector<8x512xf32>
      %c0_19 = arith.constant 0 : index
      %c0_20 = arith.constant 0 : index
      %28 = vector.load %arg5[%c0_19, %c0_20] : memref<8x512xf32, #tpu.memory_space<vmem>>, vector<8x512xf32>
      tpu.vector_store %arg5[%c0_19, %c0_20], %27 {strides = array<i32>} : memref<8x512xf32, #tpu.memory_space<vmem>>, vector<8x512xf32>,
    } else {
    }
    return
  }
  func.func @transform_0(%arg0: i32, %arg1: i32) -> (i32, i32, i32) {
    %c0_i32 = arith.constant 0 : i32
    %c0_i32_0 = arith.constant 0 : i32
    return %arg0, %arg1, %c0_i32 : i32, i32, i32
  }
  func.func @transform_1(%arg0: i32, %arg1: i32) -> (i32, i32) {
    %c0_i32 = arith.constant 0 : i32
    %c0_i32_0 = arith.constant 0 : i32
    %c0_i32_1 = arith.constant 0 : i32
    return %c0_i32, %c0_i32_0 : i32, i32
  }
  func.func @transform_2(%arg0: i32, %arg1: i32) -> (i32, i32) {
    %c0_i32 = arith.constant 0 : i32
    %c0_i32_0 = arith.constant 0 : i32
    %c0_i32_1 = arith.constant 0 : i32
    return %c0_i32, %c0_i32_0 : i32, i32
  }
  func.func @transform_3(%arg0: i32, %arg1: i32) -> (i32, i32) {
    %c0_i32 = arith.constant 0 : i32
    %c0_i32_0 = arith.constant 0 : i32
    return %arg0, %c0_i32 : i32, i32
  }
}

module attributes {stable_mosaic.version = 11 : i64} {
  func.func @_pool_project_normalize_kernel(%arg0: i32, %arg1: i32, %arg2: memref<8x8x768xbf16, #tpu.memory_space<vmem>>, %arg3: memref<768x512xf32, #tpu.memory_space<vmem>>, %arg4: memref<1x512xf32, #tpu.memory_space<vmem>>, %arg5: memref<8x512xf32, #tpu.memory_space<vmem>>, %arg6: memref<8x768xf32, #tpu.memory_space<vmem>>) attributes {dimension_semantics = [#tpu.dimension_semantics<parallel>, #tpu.dimension_semantics<arbitrary>], iteration_bounds = array<i64: 1, 1>, scalar_prefetch = 0 : i64, scratch_operands = 1 : i64, tpu.core_type = #tpu.core_type<tc>, window_params = [{transform_indices = @transform_0, window_bounds = array<i64: 8, 8, 768>}, {pipeline_mode = #tpu.pipeline_mode<synchronous>, transform_indices = @transform_1, window_bounds = array<i64: 768, 512>}, {pipeline_mode = #tpu.pipeline_mode<synchronous>, transform_indices = @transform_2, window_bounds = array<i64: 1, 512>}, {transform_indices = @transform_3, window_bounds = array<i64: 8, 512>}]} {
    %c0_i32 = arith.constant 0 : i32
    %0 = arith.cmpi eq, %arg1, %c0_i32 : i32
    %1 = arith.extui %0 : i1 to i32
    %c0_i32_0 = arith.constant 0 : i32
    %2 = arith.cmpi ne, %1, %c0_i32_0 : i32
    scf.if %2 {
      %cst_9 = arith.constant 0.000000e+00 : f32
      %12 = vector.broadcast %cst_9 : f32 to vector<8x768xf32>
      %c0_10 = arith.constant 0 : index
      %c0_11 = arith.constant 0 : index
      %13 = vector.load %arg6[%c0_10, %c0_11] : memref<8x768xf32, #tpu.memory_space<vmem>>, vector<8x768xf32>
      tpu.vector_store %arg6[%c0_10, %c0_11], %12 {strides = array<i32>} : memref<8x768xf32, #tpu.memory_space<vmem>>, vector<8x768xf32>,
    } else {
    }
    %c0 = arith.constant 0 : index
    %c0_1 = arith.constant 0 : index
    %3 = vector.load %arg6[%c0, %c0_1] : memref<8x768xf32, #tpu.memory_space<vmem>>, vector<8x768xf32>
    %c0_2 = arith.constant 0 : index
    %c0_3 = arith.constant 0 : index
    %c0_4 = arith.constant 0 : index
    %4 = vector.load %arg2[%c0_2, %c0_3, %c0_4] : memref<8x8x768xbf16, #tpu.memory_space<vmem>>, vector<8x8x768xbf16>
    %5 = arith.extf %4 : vector<8x8x768xbf16> to vector<8x8x768xf32>
    %cst = arith.constant dense<0.000000e+00> : vector<8x768xf32>
    %6 = vector.multi_reduction <add>, %5, %cst [1] : vector<8x8x768xf32> to vector<8x768xf32>
    %7 = arith.addf %3, %6 : vector<8x768xf32>
    %c0_5 = arith.constant 0 : index
    %c0_6 = arith.constant 0 : index
    %8 = vector.load %arg6[%c0_5, %c0_6] : memref<8x768xf32, #tpu.memory_space<vmem>>, vector<8x768xf32>
    tpu.vector_store %arg6[%c0_5, %c0_6], %7 {strides = array<i32>} : memref<8x768xf32, #tpu.memory_space<vmem>>, vector<8x768xf32>,
    %c0_i32_7 = arith.constant 0 : i32
    %9 = arith.cmpi eq, %arg1, %c0_i32_7 : i32
    %10 = arith.extui %9 : i1 to i32
    %c0_i32_8 = arith.constant 0 : i32
    %11 = arith.cmpi ne, %10, %c0_i32_8 : i32
    scf.if %11 {
      %c0_9 = arith.constant 0 : index
      %c0_10 = arith.constant 0 : index
      %12 = vector.load %arg6[%c0_9, %c0_10] : memref<8x768xf32, #tpu.memory_space<vmem>>, vector<8x768xf32>
      %cst_11 = arith.constant 1.250000e-01 : f32
      %13 = vector.broadcast %cst_11 : f32 to vector<8x768xf32>
      %14 = arith.mulf %12, %13 : vector<8x768xf32>
      %c0_12 = arith.constant 0 : index
      %c0_13 = arith.constant 0 : index
      %15 = vector.load %arg3[%c0_12, %c0_13] : memref<768x512xf32, #tpu.memory_space<vmem>>, vector<768x512xf32>
      %cst_14 = arith.constant dense<0.000000e+00> : vector<8x512xf32>
      %16 = tpu.matmul %14, %15, %cst_14 {dimension_numbers = #tpu.dot_dimension_numbers<[1], [0], [0], [1], [0, 0, 1, 1], [], []>} : vector<8x768xf32>, vector<768x512xf32>, vector<8x512xf32> -> vector<8x512xf32>
      %c0_15 = arith.constant 0 : index
      %c0_16 = arith.constant 0 : index
      %17 = vector.load %arg4[%c0_15, %c0_16] : memref<1x512xf32, #tpu.memory_space<vmem>>, vector<1x512xf32>
      %18 = vector.broadcast %17 : vector<1x512xf32> to vector<8x512xf32>
      %19 = arith.addf %16, %18 : vector<8x512xf32>
      %20 = arith.mulf %19, %19 : vector<8x512xf32>
      %cst_17 = arith.constant dense<0.000000e+00> : vector<8xf32>
      %21 = vector.multi_reduction <add>, %20, %cst_17 [1] : vector<8x512xf32> to vector<8xf32>
      %22 = vector.shape_cast %21 : vector<8xf32> to vector<8x1xf32>
      %cst_18 = arith.constant 1.000000e-24 : f32
      %23 = vector.broadcast %cst_18 : f32 to vector<8x1xf32>
      %24 = arith.maximumf %22, %23 : vector<8x1xf32>
      %25 = math.rsqrt %24 : vector<8x1xf32>
      %26 = vector.broadcast %25 : vector<8x1xf32> to vector<8x512xf32>
      %27 = arith.mulf %19, %26 : vector<8x512xf32>
      %c0_19 = arith.constant 0 : index
      %c0_20 = arith.constant 0 : index
      %28 = vector.load %arg5[%c0_19, %c0_20] : memref<8x512xf32, #tpu.memory_space<vmem>>, vector<8x512xf32>
      tpu.vector_store %arg5[%c0_19, %c0_20], %27 {strides = array<i32>} : memref<8x512xf32, #tpu.memory_space<vmem>>, vector<8x512xf32>,
    } else {
    }
    return
  }
  func.func @transform_0(%arg0: i32, %arg1: i32) -> (i32, i32, i32) {
    %c0_i32 = arith.constant 0 : i32
    %c0_i32_0 = arith.constant 0 : i32
    return %arg0, %arg1, %c0_i32 : i32, i32, i32
  }
  func.func @transform_1(%arg0: i32, %arg1: i32) -> (i32, i32) {
    %c0_i32 = arith.constant 0 : i32
    %c0_i32_0 = arith.constant 0 : i32
    %c0_i32_1 = arith.constant 0 : i32
    return %c0_i32, %c0_i32_0 : i32, i32
  }
  func.func @transform_2(%arg0: i32, %arg1: i32) -> (i32, i32) {
    %c0_i32 = arith.constant 0 : i32
    %c0_i32_0 = arith.constant 0 : i32
    %c0_i32_1 = arith.constant 0 : i32
    return %c0_i32, %c0_i32_0 : i32, i32
  }
  func.func @transform_3(%arg0: i32, %arg1: i32) -> (i32, i32) {
    %c0_i32 = arith.constant 0 : i32
    %c0_i32_0 = arith.constant 0 : i32
    return %arg0, %c0_i32 : i32, i32
  }
}

</mosaic_0001>

<bundles_post_ra>
// kernel: _joint_forward.3
= control target key start
LH: loop header
LB: loop body
LE: loop exit
PB: predicated region body
PF: predicated region fallthrough
CT: control target
= control target key end

     0   :  { %8 = vsyncpa [#allocation4], 0  ;;  %s1816_s0 = inlined_call_operand.vmem [shape: bf16[8,8,768], index: 0, kind: input, shape index: {}]   ;;  %s1817_s1 = inlined_call_operand.hbm [shape: f32[768,512], index: 1, kind: input, shape index: {}]   ;;  %s1818_s2 = inlined_call_operand.hbm [shape: f32[1,512], index: 2, kind: input, shape index: {}]   ;;  %s1819_s3 = inlined_call_operand.vmem [shape: f32[8,512], index: 3, kind: output, shape index: {}]  }
   0x1   :  { %s16_s14 = sshll.u32 %s1817_s1, 4  ;;  %s17_s14 = int_to_ptr.hbm [resolvable:$true] %s16_s14 }
   0x2   :  { %9 = vsyncpa [#allocation6], 0  ;;  %s1516_s15 = smov [#allocation3]   ;;  %s30_s19 = sshll.u32 %s1818_s2, 4  ;;  %s31_s19 = int_to_ptr.hbm [resolvable:$true] %s30_s19 }
   0x3   :  { %s18_s16 = sshll.u32 %s1516_s15, 4  ;;  %s1517_s20 = smov 512   ;;  %s19_s16 = int_to_ptr.vmem [resolvable:$true] %s18_s16 }
   0x4   :  { %s1518_s21 = smov 32   ;;  %s1519_s22 = smov [#allocation5]  }
   0x5   :  { %24 = dma.hbm_to_vmem [thread:$0]  %s17_s14, 49152, %s19_s16, [#allocation4], %s1517_s20, %s1517_s20, %s1518_s21  }
   0x6   :  { %s32_s23 = sshll.u32 %s1519_s22, 4  ;;  %s33_s23 = int_to_ptr.vmem [resolvable:$true] %s32_s23 }
   0x7   :  { %35 = dma.hbm_to_vmem [thread:$0]  %s31_s19, 64, %s33_s23, [#allocation6]  }
   0x8   :  { %1512 = dma.done.wait [#allocation4], 49152  }
   0x9   :  { %1513 = vsyncadd [#allocation4], 4294918144 }
   0xa   :  { %1514 = dma.done.wait [#allocation6], 64  }
   0xb   :  { %1515 = vsyncadd [#allocation6], 4294967232  ;;  %v610_v0 = vld [vmem:[#allocation3 + $0x1e0] sm:$0xff]  ;;  %v611_v63 = vld [vmem:[#allocation3 + $0x1e8] sm:$0xff]  ;;  %vm468_vm0 = vcmask 1041409   ;;  %vm470_vm1 = vcmask 1042434  }
   0xc   :  { %v738_v1 = vld [vmem:[#allocation3 + $0x5e0] sm:$0xff]  ;;  %944 = vmatpush.msra.mxu0 %v610_v0  ;;  %vm472_vm2 = vcmask 1043459   ;;  %vm474_vm3 = vcmask 1044484   ;;  %vm476_vm4 = vcmask 1045509   ;;  %vm478_vm5 = vcmask 1046534  }
   0xd   :  { %v606_v2 = vld [vmem:[#allocation3 + $0x1c0] sm:$0xff]  ;;  %984 = vmatpush.msra.mxu2 %v738_v1  ;;  %vm480_vm6 = vcmask 1047559  }
   0xe   :  { %v674_v3 = vld [vmem:[#allocation3 + $0x3e0] sm:$0xff]  ;;  %945 = vmatpush.msra.mxu0 %v606_v2 }
   0xf   :  { %v734_v4 = vld [vmem:[#allocation3 + $0x5c0] sm:$0xff]  ;;  %964 = vmatpush.msra.mxu1 %v674_v3 }
  0x10   :  { %v802_v5 = vld [vmem:[#allocation3 + $0x7e0] sm:$0xff]  ;;  %985 = vmatpush.msra.mxu2 %v734_v4  ;;  %v607_v4 = vld [vmem:[#allocation3 + $0x1c8] sm:$0xff] }
  0x11   :  { %1004 = vmatpush.msra.mxu3 %v802_v5  ;;  %v602_v6 = vld [vmem:[#allocation3 + $0x1a0] sm:$0xff]  ;;  %v675_v5 = vld [vmem:[#allocation3 + $0x3e8] sm:$0xff] }
  0x12   :  { %v670_v7 = vld [vmem:[#allocation3 + $0x3c0] sm:$0xff]  ;;  %946 = vmatpush.msra.mxu0 %v602_v6 }
  0x13   :  { %v730_v8 = vld [vmem:[#allocation3 + $0x5a0] sm:$0xff]  ;;  %965 = vmatpush.msra.mxu1 %v670_v7 }
  0x14   :  { %v798_v9 = vld [vmem:[#allocation3 + $0x7c0] sm:$0xff]  ;;  %986 = vmatpush.msra.mxu2 %v730_v8  ;;  %v603_v8 = vld [vmem:[#allocation3 + $0x1a8] sm:$0xff] }
  0x15   :  { %v666_v10 = vld [vmem:[#allocation3 + $0x3a0] sm:$0xff]  ;;  %1005 = vmatpush.msra.mxu3 %v798_v9  ;;  %v671_v9 = vld [vmem:[#allocation3 + $0x3c8] sm:$0xff] }
  0x16   :  { %v598_v11 = vld [vmem:[#allocation3 + $0x180] sm:$0xff]  ;;  %966 = vmatpush.msra.mxu1 %v666_v10 }
  0x17   :  { %v726_v12 = vld [vmem:[#allocation3 + $0x580] sm:$0xff]  ;;  %947 = vmatpush.msra.mxu0 %v598_v11 }
  0x18   :  { %v794_v13 = vld [vmem:[#allocation3 + $0x7a0] sm:$0xff]  ;;  %987 = vmatpush.msra.mxu2 %v726_v12  ;;  %v599_v12 = vld [vmem:[#allocation3 + $0x188] sm:$0xff] }
  0x19   :  { %v662_v14 = vld [vmem:[#allocation3 + $0x380] sm:$0xff]  ;;  %1006 = vmatpush.msra.mxu3 %v794_v13  ;;  %v667_v13 = vld [vmem:[#allocation3 + $0x3a8] sm:$0xff] }
  0x1a   :  { %v790_v15 = vld [vmem:[#allocation3 + $0x780] sm:$0xff]  ;;  %967 = vmatpush.msra.mxu1 %v662_v14 }
  0x1b   :  { %v594_v16 = vld [vmem:[#allocation3 + $0x160] sm:$0xff]  ;;  %1007 = vmatpush.msra.mxu3 %v790_v15 }
  0x1c   :  { %v722_v17 = vld [vmem:[#allocation3 + $0x560] sm:$0xff]  ;;  %948 = vmatpush.msra.mxu0 %v594_v16  ;;  %v595_v16 = vld [vmem:[#allocation3 + $0x168] sm:$0xff] }
  0x1d   :  { %v658_v18 = vld [vmem:[#allocation3 + $0x360] sm:$0xff]  ;;  %988 = vmatpush.msra.mxu2 %v722_v17  ;;  %v663_v17 = vld [vmem:[#allocation3 + $0x388] sm:$0xff] }
  0x1e   :  { %v786_v19 = vld [vmem:[#allocation3 + $0x760] sm:$0xff]  ;;  %968 = vmatpush.msra.mxu1 %v658_v18 }
  0x1f   :  { %v590_v20 = vld [vmem:[#allocation3 + $0x140] sm:$0xff]  ;;  %1008 = vmatpush.msra.mxu3 %v786_v19 }
  0x20   :  { %v718_v21 = vld [vmem:[#allocation3 + $0x540] sm:$0xff]  ;;  %949 = vmatpush.msra.mxu0 %v590_v20  ;;  %v591_v20 = vld [vmem:[#allocation3 + $0x148] sm:$0xff] }
  0x21   :  { %v654_v22 = vld [vmem:[#allocation3 + $0x340] sm:$0xff]  ;;  %989 = vmatpush.msra.mxu2 %v718_v21  ;;  %v659_v21 = vld [vmem:[#allocation3 + $0x368] sm:$0xff] }
  0x22   :  { %v782_v23 = vld [vmem:[#allocation3 + $0x740] sm:$0xff]  ;;  %969 = vmatpush.msra.mxu1 %v654_v22 }
  0x23   :  { %v586_v24 = vld [vmem:[#allocation3 + $0x120] sm:$0xff]  ;;  %1009 = vmatpush.msra.mxu3 %v782_v23 }
  0x24   :  { %v714_v25 = vld [vmem:[#allocation3 + $0x520] sm:$0xff]  ;;  %950 = vmatpush.msra.mxu0 %v586_v24  ;;  %v587_v24 = vld [vmem:[#allocation3 + $0x128] sm:$0xff] }
  0x25   :  { %v650_v26 = vld [vmem:[#allocation3 + $0x320] sm:$0xff]  ;;  %990 = vmatpush.msra.mxu2 %v714_v25  ;;  %v655_v25 = vld [vmem:[#allocation3 + $0x348] sm:$0xff] }
  0x26   :  { %v778_v27 = vld [vmem:[#allocation3 + $0x720] sm:$0xff]  ;;  %970 = vmatpush.msra.mxu1 %v650_v26 }
  0x27   :  { %v582_v28 = vld [vmem:[#allocation3 + $0x100] sm:$0xff]  ;;  %1010 = vmatpush.msra.mxu3 %v778_v27 }
  0x28   :  { %v710_v29 = vld [vmem:[#allocation3 + $0x500] sm:$0xff]  ;;  %951 = vmatpush.msra.mxu0 %v582_v28  ;;  %v583_v28 = vld [vmem:[#allocation3 + $0x108] sm:$0xff] }
  0x29   :  { %v646_v30 = vld [vmem:[#allocation3 + $0x300] sm:$0xff]  ;;  %991 = vmatpush.msra.mxu2 %v710_v29 }
  0x2a   :  { %v774_v31 = vld [vmem:[#allocation3 + $0x700] sm:$0xff]  ;;  %971 = vmatpush.msra.mxu1 %v646_v30  ;;  %v1554_v30 = vld [vmem:[%s1816_s0 + $0x18] sm:$0xff] }
  0x2b   :  { %v578_v32 = vld [vmem:[#allocation3 + $0xe0] sm:$0xff]  ;;  %1011 = vmatpush.msra.mxu3 %v774_v31  ;;  %v1559_v31 = vld [vmem:[%s1816_s0 + $0x30] sm:$0xff] }
  0x2c   :  { %v706_v33 = vld [vmem:[#allocation3 + $0x4e0] sm:$0xff]  ;;  %952 = vmatpush.msra.mxu0 %v578_v32  ;;  %v1564_v32 = vld [vmem:[%s1816_s0 + $0x48] sm:$0xff] }
  0x2d   :  { %v642_v34 = vld [vmem:[#allocation3 + $0x2e0] sm:$0xff]  ;;  %992 = vmatpush.msra.mxu2 %v706_v33 }
  0x2e   :  { %v770_v35 = vld [vmem:[#allocation3 + $0x6e0] sm:$0xff]  ;;  %972 = vmatpush.msra.mxu1 %v642_v34  ;;  %v1574_v34 = vld [vmem:[%s1816_s0 + $0x78] sm:$0xff] }
  0x2f   :  { %v574_v36 = vld [vmem:[#allocation3 + $0xc0] sm:$0xff]  ;;  %1012 = vmatpush.msra.mxu3 %v770_v35 }
  0x30   :  { %v702_v37 = vld [vmem:[#allocation3 + $0x4c0] sm:$0xff]  ;;  %953 = vmatpush.msra.mxu0 %v574_v36  ;;  %v90_v36 = vunpack.c.l.bf16 %v1554_v30 }
  0x31   :  { %v638_v38 = vld [vmem:[#allocation3 + $0x2c0] sm:$0xff]  ;;  %993 = vmatpush.msra.mxu2 %v702_v37  ;;  %v96_v37 = vunpack.c.l.bf16 %v1559_v31 }
  0x32   :  { %v766_v39 = vld [vmem:[#allocation3 + $0x6c0] sm:$0xff]  ;;  %973 = vmatpush.msra.mxu1 %v638_v38 }
  0x33   :  { %v570_v40 = vld [vmem:[#allocation3 + $0xa0] sm:$0xff]  ;;  %1013 = vmatpush.msra.mxu3 %v766_v39  ;;  %v651_v39 = vld [vmem:[#allocation3 + $0x328] sm:$0xff] }
  0x34   :  { %v698_v41 = vld [vmem:[#allocation3 + $0x4a0] sm:$0xff]  ;;  %954 = vmatpush.msra.mxu0 %v570_v40  ;;  %v1583_v40 = vld [vmem:[%s1816_s0 + $0x90] sm:$0xff] }
  0x35   :  { %v634_v42 = vld [vmem:[#allocation3 + $0x2a0] sm:$0xff]  ;;  %994 = vmatpush.msra.mxu2 %v698_v41  ;;  %v1588_v41 = vld [vmem:[%s1816_s0 + $0xa8] sm:$0xff] }
  0x36   :  { %v762_v43 = vld [vmem:[#allocation3 + $0x6a0] sm:$0xff]  ;;  %974 = vmatpush.msra.mxu1 %v634_v42  ;;  %v102_v42 = vunpack.c.l.bf16 %v1564_v32 }
  0x37   :  { %v566_v44 = vld [vmem:[#allocation3 + $0x80] sm:$0xff]  ;;  %1014 = vmatpush.msra.mxu3 %v762_v43 }
  0x38   :  { %v694_v45 = vld [vmem:[#allocation3 + $0x480] sm:$0xff]  ;;  %955 = vmatpush.msra.mxu0 %v566_v44  ;;  %v114_v44 = vunpack.c.l.bf16 %v1574_v34 }
  0x39   :  { %v630_v46 = vld [vmem:[#allocation3 + $0x280] sm:$0xff]  ;;  %995 = vmatpush.msra.mxu2 %v694_v45  ;;  %v91_v45 = vunpack.c.h.bf16 %v1554_v30 }
  0x3a   :  { %v758_v47 = vld [vmem:[#allocation3 + $0x680] sm:$0xff]  ;;  %975 = vmatpush.msra.mxu1 %v630_v46 }
  0x3b   :  { %v562_v48 = vld [vmem:[#allocation3 + $0x60] sm:$0xff]  ;;  %1015 = vmatpush.msra.mxu3 %v758_v47 }
  0x3c   :  { %v690_v49 = vld [vmem:[#allocation3 + $0x460] sm:$0xff]  ;;  %956 = vmatpush.msra.mxu0 %v562_v48  ;;  %v120_v48 = vunpack.c.l.bf16 %v1583_v40 }
  0x3d   :  { %v626_v50 = vld [vmem:[#allocation3 + $0x260] sm:$0xff]  ;;  %996 = vmatpush.msra.mxu2 %v690_v49  ;;  %v126_v49 = vunpack.c.l.bf16 %v1588_v41 }
  0x3e   :  { %v754_v51 = vld [vmem:[#allocation3 + $0x660] sm:$0xff]  ;;  %976 = vmatpush.msra.mxu1 %v626_v50 }
  0x3f   :  { %v558_v52 = vld [vmem:[#allocation3 + $0x40] sm:$0xff]  ;;  %1016 = vmatpush.msra.mxu3 %v754_v51  ;;  %v168_v51 = vrot.slane %v90_v36, 4 }
  0x40   :  { %v686_v53 = vld [vmem:[#allocation3 + $0x440] sm:$0xff]  ;;  %957 = vmatpush.msra.mxu0 %v558_v52  ;;  %v1599_v52 = vld [vmem:[%s1816_s0 + $0x8] sm:$0xff] }
  0x41   :  { %v622_v54 = vld [vmem:[#allocation3 + $0x240] sm:$0xff]  ;;  %997 = vmatpush.msra.mxu2 %v686_v53  ;;  %v579_v53 = vld [vmem:[#allocation3 + $0xe8] sm:$0xff] }
  0x42   :  { %v750_v55 = vld [vmem:[#allocation3 + $0x640] sm:$0xff]  ;;  %977 = vmatpush.msra.mxu1 %v622_v54  ;;  %v647_v54 = vld [vmem:[#allocation3 + $0x308] sm:$0xff] }
  0x43   :  { %v554_v56 = vld [vmem:[#allocation3 + $0x20] sm:$0xff]  ;;  %1017 = vmatpush.msra.mxu3 %v750_v55  ;;  %v204_v55 = vrot.slane %v96_v37, 4 }
  0x44   :  { %v682_v57 = vld [vmem:[#allocation3 + $0x420] sm:$0xff]  ;;  %958 = vmatpush.msra.mxu0 %v554_v56  ;;  %v240_v56 = vrot.slane %v102_v42, 4 }
  0x45   :  { %v618_v58 = vld [vmem:[#allocation3 + $0x220] sm:$0xff]  ;;  %998 = vmatpush.msra.mxu2 %v682_v57 }
  0x46   :  { %v746_v59 = vld [vmem:[#allocation3 + $0x620] sm:$0xff]  ;;  %978 = vmatpush.msra.mxu1 %v618_v58  ;;  %v312_v58 = vrot.slane %v114_v44, 4 }
  0x47   :  { %v550_v60 = vld [vmem:[#allocation3] sm:$0xff]  ;;  %1018 = vmatpush.msra.mxu3 %v746_v59 }
  0x48   :  { %v678_v61 = vld [vmem:[#allocation3 + $0x400] sm:$0xff]  ;;  %959 = vmatpush.msra.mxu0 %v550_v60 }
  0x49   :  { %v866_v62 = vld [vmem:[#allocation3 + $0x9e0] sm:$0xff]  ;;  %999 = vmatpush.msra.mxu2 %v678_v61 }
  0x4a   :  { %v614_v0 = vld [vmem:[#allocation3 + $0x200] sm:$0xff]  ;;  %1024 = vmatpush.msrb.mxu0 %v866_v62  ;;  %v169_v62 = vadd.f32 %v168_v51, %v90_v36  ;;  %v559_v51 = vld [vmem:[#allocation3 + $0x48] sm:$0xff] }
  0x4b   :  { %v742_v1 = vld [vmem:[#allocation3 + $0x600] sm:$0xff]  ;;  %1064 = vmatpush.msrb.mxu2 %v611_v63  ;;  %979 = vmatpush.msra.mxu1 %v614_v0  ;;  %v348_v63 = vrot.slane %v120_v48, 4  ;;  %v384_v0 = vrot.slane %v126_v49, 4 }
  0x4c   :  { %v862_v2 = vld [vmem:[#allocation3 + $0x9c0] sm:$0xff]  ;;  %1019 = vmatpush.msra.mxu3 %v742_v1  ;;  %v575_v1 = vld [vmem:[#allocation3 + $0xc8] sm:$0xff] }
  0x4d   :  { %v930_v3 = vld [vmem:[#allocation3 + $0xbe0] sm:$0xff]  ;;  %1025 = vmatpush.msrb.mxu0 %v862_v2  ;;  %1065 = vmatpush.msrb.mxu2 %v607_v4  ;;  %v643_v2 = vld [vmem:[#allocation3 + $0x2e8] sm:$0xff]  ;;  %v241_v4 = vadd.f32 %v240_v56, %v102_v42 }
  0x4e   :  { %v858_v6 = vld [vmem:[#allocation3 + $0x9a0] sm:$0xff]  ;;  %1044 = vmatpush.msrb.mxu1 %v930_v3  ;;  %1084 = vmatpush.msrb.mxu3 %v675_v5  ;;  %v205_v3 = vadd.f32 %v204_v55, %v96_v37  ;;  %v563_v42 = vld [vmem:[#allocation3 + $0x68] sm:$0xff] }
  0x4f   :  { %v926_v7 = vld [vmem:[#allocation3 + $0xbc0] sm:$0xff]  ;;  %1026 = vmatpush.msrb.mxu0 %v858_v6  ;;  %1066 = vmatpush.msrb.mxu2 %v603_v8  ;;  %v86_v6 = vunpack.c.l.bf16 %v1599_v52 }
  0x50   :  { %v854_v10 = vld [vmem:[#allocation3 + $0x980] sm:$0xff]  ;;  %1045 = vmatpush.msrb.mxu1 %v926_v7  ;;  %1085 = vmatpush.msrb.mxu3 %v671_v9 }
  0x51   :  { %v922_v11 = vld [vmem:[#allocation3 + $0xba0] sm:$0xff]  ;;  %1027 = vmatpush.msrb.mxu0 %v854_v10  ;;  %1067 = vmatpush.msrb.mxu2 %v599_v12  ;;  %v170_v10 = vrot.slane %v169_v62, 2  ;;  %v349_v12 = vadd.f32 %v348_v63, %v120_v48  ;;  %v1610_v63 = vld [vmem:[%s1816_s0 + $0x38] sm:$0xff] }
  0x52   :  { %v850_v14 = vld [vmem:[#allocation3 + $0x960] sm:$0xff]  ;;  %1046 = vmatpush.msrb.mxu1 %v922_v11  ;;  %1086 = vmatpush.msrb.mxu3 %v667_v13  ;;  %v313_v11 = vadd.f32 %v312_v58, %v114_v44  ;;  %v571_v13 = vld [vmem:[#allocation3 + $0xa8] sm:$0xff] }
  0x53   :  { %v918_v15 = vld [vmem:[#allocation3 + $0xb80] sm:$0xff]  ;;  %1028 = vmatpush.msrb.mxu0 %v850_v14  ;;  %1068 = vmatpush.msrb.mxu2 %v595_v16  ;;  %v639_v14 = vld [vmem:[#allocation3 + $0x2c8] sm:$0xff]  ;;  %v242_v16 = vrot.slane %v241_v4, 2 }
  0x54   :  { %v846_v18 = vld [vmem:[#allocation3 + $0x940] sm:$0xff]  ;;  %1047 = vmatpush.msrb.mxu1 %v918_v15  ;;  %1087 = vmatpush.msrb.mxu3 %v663_v17  ;;  %v206_v15 = vrot.slane %v205_v3, 2  ;;  %v627_v58 = vld [vmem:[#allocation3 + $0x268] sm:$0xff] }
  0x55   :  { %v914_v19 = vld [vmem:[#allocation3 + $0xb60] sm:$0xff]  ;;  %1029 = vmatpush.msrb.mxu0 %v846_v18  ;;  %1069 = vmatpush.msrb.mxu2 %v591_v20  ;;  %v385_v18 = vadd.f32 %v384_v0, %v126_v49  ;;  %v243_v36 = vadd.f32 %v242_v16, %v241_v4  ;;  %v1615_v0 = vld [vmem:[%s1816_s0 + $0x50] sm:$0xff]  ;;  %v555_v16 = vld [vmem:[#allocation3 + $0x28] sm:$0xff] }
  0x56   :  { %v842_v22 = vld [vmem:[#allocation3 + $0x920] sm:$0xff]  ;;  %1048 = vmatpush.msrb.mxu1 %v914_v19  ;;  %1088 = vmatpush.msrb.mxu3 %v659_v21  ;;  %v567_v21 = vld [vmem:[#allocation3 + $0x88] sm:$0xff] }
  0x57   :  { %v910_v23 = vld [vmem:[#allocation3 + $0xb40] sm:$0xff]  ;;  %1030 = vmatpush.msrb.mxu0 %v842_v22  ;;  %1070 = vmatpush.msrb.mxu2 %v587_v24  ;;  %v314_v24 = vrot.slane %v313_v11, 2 }
  0x58   :  { %v838_v26 = vld [vmem:[#allocation3 + $0x900] sm:$0xff]  ;;  %1049 = vmatpush.msrb.mxu1 %v910_v23  ;;  %1089 = vmatpush.msrb.mxu3 %v655_v25  ;;  %v171_v23 = vadd.f32 %v170_v10, %v169_v62  ;;  %v350_v25 = vrot.slane %v349_v12, 2 }
  0x59   :  { %v906_v27 = vld [vmem:[#allocation3 + $0xb20] sm:$0xff]  ;;  %1031 = vmatpush.msrb.mxu0 %v838_v26  ;;  %1071 = vmatpush.msrb.mxu2 %v583_v28  ;;  %v635_v26 = vld [vmem:[#allocation3 + $0x2a8] sm:$0xff]  ;;  %v315_v48 = vadd.f32 %v314_v24, %v313_v11 }
  0x5a   :  { %v1549_v29 = vld [vmem:[%s1816_s0] sm:$0xff]  ;;  %1050 = vmatpush.msrb.mxu1 %v906_v27  ;;  %1090 = vmatpush.msrb.mxu3 %v651_v39  ;;  %v386_v39 = vrot.slane %v385_v18, 2  ;;  %v351_v49 = vadd.f32 %v350_v25, %v349_v12 }
  0x5b   :  { %v1569_v33 = vld [vmem:[%s1816_s0 + $0x60] sm:$0xff]  ;;  %v84_v35 = vunpack.c.l.bf16 %v1549_v29  ;;  %v85_v38 = vunpack.c.h.bf16 %v1549_v29  ;;  %1072 = vmatpush.msrb.mxu2 %v579_v53 }
  0x5c   :  { %v108_v43 = vunpack.c.l.bf16 %v1569_v33  ;;  %v834_v46 = vld [vmem:[#allocation3 + $0x8e0] sm:$0xff]  ;;  %1091 = vmatpush.msrb.mxu3 %v647_v54  ;;  %v244_v54 = vrot.slane %v243_v36, 1  ;;  %v387_v56 = vadd.f32 %v386_v39, %v385_v18  ;;  %v352_v62 = vrot.slane %v351_v49, 1 }
  0x5d   :  { %v902_v47 = vld [vmem:[#allocation3 + $0xb00] sm:$0xff]  ;;  %v132_v50 = vrot.slane %v84_v35, 4  ;;  %1032 = vmatpush.msrb.mxu0 %v834_v46  ;;  %1073 = vmatpush.msrb.mxu2 %v575_v1  ;;  %v144_v39 = vrot.slane %v86_v6, 4 }
  0x5e   :  { %v276_v57 = vrot.slane %v108_v43, 4  ;;  %v830_v59 = vld [vmem:[#allocation3 + $0x8c0] sm:$0xff]  ;;  %1051 = vmatpush.msrb.mxu1 %v902_v47  ;;  %1092 = vmatpush.msrb.mxu3 %v643_v2  ;;  %v172_v47 = vrot.slane %v171_v23, 1  ;;  %v245_v2 = vadd.f32 %v244_v54, %v243_v36  ;;  %v388_v4 = vrot.slane %v387_v56, 1  ;;  %v615_v54 = vld [vmem:[#allocation3 + $0x208] sm:$0xff] }
  0x5f   :  { %v898_v60 = vld [vmem:[#allocation3 + $0xae0] sm:$0xff]  ;;  %v133_v61 = vadd.f32 %v132_v50, %v84_v35  ;;  %1033 = vmatpush.msrb.mxu0 %v830_v59  ;;  %v207_v35 = vadd.f32 %v206_v15, %v205_v3  ;;  %1074 = vmatpush.msrb.mxu2 %v571_v13  ;;  %v353_v12 = vadd.f32 %v352_v62, %v351_v49 }
  0x60   :  { %v277_v5 = vadd.f32 %v276_v57, %v108_v43  ;;  %v826_v7 = vld [vmem:[#allocation3 + $0x8a0] sm:$0xff]  ;;  %1052 = vmatpush.msrb.mxu1 %v898_v60  ;;  %1093 = vmatpush.msrb.mxu3 %v639_v14  ;;  %v631_v43 = vld [vmem:[#allocation3 + $0x288] sm:$0xff]  ;;  %v173_v60 = vadd.f32 %v172_v47, %v171_v23  ;;  %v1636_v14 = vld [vmem:[%s1816_s0 + $0xb0] sm:$0xff]  ;;  %v389_v18 = vadd.f32 %v388_v4, %v387_v56 }
  0x61   :  { %v894_v8 = vld [vmem:[#allocation3 + $0xac0] sm:$0xff]  ;;  %v134_v9 = vrot.slane %v133_v61, 2  ;;  %1034 = vmatpush.msrb.mxu0 %v826_v7  ;;  %v208_v53 = vrot.slane %v207_v35, 1  ;;  %1075 = vmatpush.msrb.mxu2 %v567_v21  ;;  %v104_v21 = vunpack.c.l.bf16 %v1615_v0 }
  0x62   :  { %v278_v17 = vrot.slane %v277_v5, 2  ;;  %v822_v19 = vld [vmem:[#allocation3 + $0x880] sm:$0xff]  ;;  %1053 = vmatpush.msrb.mxu1 %v894_v8  ;;  %1094 = vmatpush.msrb.mxu3 %v635_v26  ;;  %v1630_v8 = vld [vmem:[%s1816_s0 + $0x98] sm:$0xff] }
  0x63   :  { %v890_v20 = vld [vmem:[#allocation3 + $0xaa0] sm:$0xff]  ;;  %v135_v22 = vadd.f32 %v134_v9, %v133_v61  ;;  %1035 = vmatpush.msrb.mxu0 %v822_v19  ;;  %v316_v61 = vrot.slane %v315_v48, 1  ;;  %v209_v1 = vadd.f32 %v208_v53, %v207_v35  ;;  %1076 = vmatpush.msrb.mxu2 %v563_v42  ;;  %v619_v35 = vld [vmem:[#allocation3 + $0x228] sm:$0xff] }
  0x64   :  { %v818_v27 = vld [vmem:[#allocation3 + $0x860] sm:$0xff]  ;;  %v279_v37 = vadd.f32 %v278_v17, %v277_v5  ;;  %1054 = vmatpush.msrb.mxu1 %v890_v20  ;;  %v1620_v5 = vld [vmem:[%s1816_s0 + $0x68] sm:$0xff]  ;;  %1095 = vmatpush.msrb.mxu3 %v631_v43  ;;  %v98_v20 = vunpack.c.l.bf16 %v1610_v63 }
  0x65   :  { %v886_v28 = vld [vmem:[#allocation3 + $0xa80] sm:$0xff]  ;;  %v136_v46 = vrot.slane %v135_v22, 1  ;;  %1036 = vmatpush.msrb.mxu0 %v818_v27  ;;  %v317_v11 = vadd.f32 %v316_v61, %v315_v48  ;;  %v623_v17 = vld [vmem:[#allocation3 + $0x248] sm:$0xff]  ;;  %1077 = vmatpush.msrb.mxu2 %v559_v51  ;;  %v110_v25 = vunpack.c.l.bf16 %v1620_v5  ;;  %v122_v27 = vunpack.c.l.bf16 %v1630_v8 }
  0x66   :  { %v814_v44 = vld [vmem:[#allocation3 + $0x840] sm:$0xff]  ;;  %v280_v55 = vrot.slane %v279_v37, 1  ;;  %1055 = vmatpush.msrb.mxu1 %v886_v28  ;;  %1096 = vmatpush.msrb.mxu3 %v627_v58  ;;  %v551_v28 = vld [vmem:[#allocation3 + $0x8] sm:$0xff] }
  0x67   :  { %v882_v50 = vld [vmem:[#allocation3 + $0xa60] sm:$0xff]  ;;  %v137_v59 = vadd.f32 %v136_v46, %v135_v22  ;;  %1037 = vmatpush.msrb.mxu0 %v814_v44  ;;  %1078 = vmatpush.msrb.mxu2 %v555_v16  ;;  %v216_v44 = vrot.slane %v98_v20, 4  ;;  %v252_v46 = vrot.slane %v104_v21, 4  ;;  %v288_v47 = vrot.slane %v110_v25, 4 }
  0x68   :  { %v1605_v57 = vld [vmem:[%s1816_s0 + $0x20] sm:$0xff]  ;;  %v281_v3 = vadd.f32 %v280_v55, %v279_v37  ;;  %1056 = vmatpush.msrb.mxu1 %v882_v50  ;;  %v128_v37 = vunpack.c.l.bf16 %v1636_v14  ;;  %1097 = vmatpush.msrb.mxu3 %v623_v17  ;;  %v145_v50 = vadd.f32 %v144_v39, %v86_v6 }
  0x69   :  { %v1625_v7 = vld [vmem:[%s1816_s0 + $0x80] sm:$0xff]  ;;  %v469_v13 = vsel %vm468_vm0, %v173_v60, %v137_v59  ;;  %v92_v15 = vunpack.c.l.bf16 %v1605_v57  ;;  %1079 = vmatpush.msrb.mxu2 %v551_v28  ;;  %v217_v56 = vadd.f32 %v216_v44, %v98_v20  ;;  %v253_v58 = vadd.f32 %v252_v46, %v104_v21 }
  0x6a   :  { %v810_v9 = vld [vmem:[#allocation3 + $0x820] sm:$0xff]  ;;  %v471_v19 = vsel %vm470_vm1, %v209_v1, %v469_v13  ;;  %v116_v26 = vunpack.c.l.bf16 %v1625_v7  ;;  %1098 = vmatpush.msrb.mxu3 %v619_v35  ;;  %v360_v59 = vrot.slane %v122_v27, 4  ;;  %v146_v61 = vrot.slane %v145_v50, 2 }
  0x6b   :  { %v878_v10 = vld [vmem:[#allocation3 + $0xa40] sm:$0xff]  ;;  %v473_v24 = vsel %vm472_vm2, %v245_v2, %v471_v19  ;;  %1038 = vmatpush.msrb.mxu0 %v810_v9  ;;  %v180_v42 = vrot.slane %v92_v15, 4  ;;  %v289_v1 = vadd.f32 %v288_v47, %v110_v25  ;;  %v739_v2 = vld [vmem:[#allocation3 + $0x5e8] sm:$0xff]  ;;  %v254_v4 = vrot.slane %v253_v58, 2 }
  0x6c   :  { %v806_v22 = vld [vmem:[#allocation3 + $0x800] sm:$0xff]  ;;  %1057 = vmatpush.msrb.mxu1 %v878_v10  ;;  %v475_v36 = vsel %vm474_vm3, %v281_v3, %v473_v24  ;;  %v324_v53 = vrot.slane %v116_v26, 4  ;;  %v218_v3 = vrot.slane %v217_v56, 2  ;;  %v361_v9 = vadd.f32 %v360_v59, %v122_v27  ;;  %1099 = vmatpush.msrb.mxu3 %v615_v54 }
  0x6d   :  { %v874_v23 = vld [vmem:[#allocation3 + $0xa20] sm:$0xff]  ;;  %v477_v43 = vsel %vm476_vm4, %v317_v11, %v475_v36  ;;  %1039 = vmatpush.msrb.mxu0 %v806_v22  ;;  %v181_v51 = vadd.f32 %v180_v42, %v92_v15  ;;  %v147_v10 = vadd.f32 %v146_v61, %v145_v50  ;;  %v396_v13 = vrot.slane %v128_v37, 4 }
  0x6e   :  { %v870_v48 = vld [vmem:[#allocation3 + $0xa00] sm:$0xff]  ;;  %1058 = vmatpush.msrb.mxu1 %v874_v23  ;;  %v479_v49 = vsel %vm478_vm5, %v353_v12, %v477_v43  ;;  %v325_v6 = vadd.f32 %v324_v53, %v116_v26  ;;  %v290_v12 = vrot.slane %v289_v1, 2  ;;  %v219_v15 = vadd.f32 %v218_v3, %v217_v56 }
  0x6f   :  { %v481_v55 = vsel %vm480_vm6, %v389_v18, %v479_v49  ;;  %v182_v62 = vrot.slane %v181_v51, 2  ;;  %v255_v16 = vadd.f32 %v254_v4, %v253_v58  ;;  %v362_v18 = vrot.slane %v361_v9, 2 }
  0x70   :  { %v1655_v60 = vmul.f32 0.125, %v481_v55  ;;  %1059 = vmatpush.msrb.mxu1 %v870_v48  ;;  %v326_v17 = vrot.slane %v325_v6, 2  ;;  %v148_v19 = vrot.slane %v147_v10, 1  ;;  %v291_v21 = vadd.f32 %v290_v12, %v289_v1  ;;  %v867_v12 = vld [vmem:[#allocation3 + $0x9e8] sm:$0xff] }
  0x71   :  { %v183_v11 = vadd.f32 %v182_v62, %v181_v51  ;;  %v397_v22 = vadd.f32 %v396_v13, %v128_v37  ;;  %v220_v23 = vrot.slane %v219_v15, 1  ;;  %v256_v24 = vrot.slane %v255_v16, 1 }
  0x72   :  { %960 = vmatmul.f32.vlgmr.msra.gmra.mxu0 %v1655_v60  ;;  %v327_v25 = vadd.f32 %v326_v17, %v325_v6  ;;  %v363_v26 = vadd.f32 %v362_v18, %v361_v9  ;;  %v149_v27 = vadd.f32 %v148_v19, %v147_v10  ;;  %v292_v35 = vrot.slane %v291_v21, 1 }
  0x73   :  { %1104 = vmatpush.msra.mxu0 %v739_v2  ;;  %v184_v20 = vrot.slane %v183_v11, 1  ;;  %v398_v36 = vrot.slane %v397_v22, 2  ;;  %v221_v39 = vadd.f32 %v220_v23, %v219_v15  ;;  %v257_v42 = vadd.f32 %v256_v24, %v255_v16 }
  0x74   :  { %v328_v43 = vrot.slane %v327_v25, 1  ;;  %v364_v44 = vrot.slane %v363_v26, 1  ;;  %v293_v46 = vadd.f32 %v292_v35, %v291_v21  ;;  %v97_v49 = vunpack.c.h.bf16 %v1559_v31 }
  0x75   :  { %v185_v28 = vadd.f32 %v184_v20, %v183_v11  ;;  %v399_v47 = vadd.f32 %v398_v36, %v397_v22  ;;  %v103_v53 = vunpack.c.h.bf16 %v1564_v32  ;;  %v109_v56 = vunpack.c.h.bf16 %v1569_v33 }
  0x76   :  { %v329_v50 = vadd.f32 %v328_v43, %v327_v25  ;;  %v365_v37 = vadd.f32 %v364_v44, %v363_v26  ;;  %v115_v58 = vunpack.c.h.bf16 %v1574_v34  ;;  %v121_v61 = vunpack.c.h.bf16 %v1583_v40 }
  0x77   :  { %v489_v48 = vsel %vm468_vm0, %v185_v28, %v149_v27  ;;  %v400_v54 = vrot.slane %v399_v47, 1  ;;  %v127_v62 = vunpack.c.h.bf16 %v1588_v41  ;;  %v138_v31 = vrot.slane %v85_v38, 4  ;;  %v731_v27 = vld [vmem:[#allocation3 + $0x5a8] sm:$0xff] }
  0x78   :  { %v490_v51 = vsel %vm470_vm1, %v221_v39, %v489_v48  ;;  %v174_v32 = vrot.slane %v91_v45, 4  ;;  %v210_v3 = vrot.slane %v97_v49, 4  ;;  %v246_v4 = vrot.slane %v103_v53, 4  ;;  %v727_v48 = vld [vmem:[#allocation3 + $0x588] sm:$0xff] }
  0x79   :  { %v491_v55 = vsel %vm472_vm2, %v257_v42, %v490_v51  ;;  %v401_v1 = vadd.f32 %v400_v54, %v399_v47  ;;  %v139_v34 = vadd.f32 %v138_v31, %v85_v38  ;;  %v282_v6 = vrot.slane %v109_v56, 4  ;;  %v735_v38 = vld [vmem:[#allocation3 + $0x5c8] sm:$0xff] }
  0x7a   :  { %v492_v59 = vsel %vm474_vm3, %v293_v46, %v491_v55  ;;  %v175_v41 = vadd.f32 %v174_v32, %v91_v45  ;;  %v211_v9 = vadd.f32 %v210_v3, %v97_v49  ;;  %v318_v10 = vrot.slane %v115_v58, 4  ;;  %1105 = vmatpush.msra.mxu0 %v735_v38  ;;  %v863_v45 = vld [vmem:[#allocation3 + $0x9c8] sm:$0xff] }
  0x7b   :  { %v493_v2 = vsel %vm476_vm4, %v329_v50, %v492_v59  ;;  %v140_v13 = vrot.slane %v139_v34, 2  ;;  %v247_v15 = vadd.f32 %v246_v4, %v103_v53  ;;  %v283_v16 = vadd.f32 %v282_v6, %v109_v56  ;;  %v859_v42 = vld [vmem:[#allocation3 + $0x9a8] sm:$0xff] }
  0x7c   :  { %v494_v33 = vsel %vm478_vm5, %v365_v37, %v493_v2  ;;  %v176_v17 = vrot.slane %v175_v41, 2  ;;  %v212_v18 = vrot.slane %v211_v9, 2  ;;  %v319_v19 = vadd.f32 %v318_v10, %v115_v58  ;;  %1106 = vmatpush.msra.mxu0 %v731_v27  ;;  %v855_v53 = vld [vmem:[#allocation3 + $0x988] sm:$0xff] }
  0x7d   :  { %v495_v40 = vsel %vm480_vm6, %v401_v1, %v494_v33  ;;  %v354_v29 = vrot.slane %v121_v61, 4  ;;  %v141_v20 = vadd.f32 %v140_v13, %v139_v34  ;;  %v248_v21 = vrot.slane %v247_v15, 2  ;;  %v723_v59 = vld [vmem:[#allocation3 + $0x568] sm:$0xff] }
  0x7e   :  { %v1679_v11 = vmul.f32 0.125, %v495_v40  ;;  %v284_v22 = vrot.slane %v283_v16, 2  ;;  %v390_v30 = vrot.slane %v127_v62, 4  ;;  %v177_v23 = vadd.f32 %v176_v17, %v175_v41  ;;  %1107 = vmatpush.msra.mxu0 %v727_v48  ;;  %v851_v2 = vld [vmem:[#allocation3 + $0x968] sm:$0xff] }
  0x7f   :  { %v213_v24 = vadd.f32 %v212_v18, %v211_v9  ;;  %v320_v25 = vrot.slane %v319_v19, 2  ;;  %v355_v26 = vadd.f32 %v354_v29, %v121_v61  ;;  %v142_v28 = vrot.slane %v141_v20, 1 }
  0x80   :  { %1000 = vmatmul.f32.vlgmr.msra.gmra.mxu2 %v1679_v11  ;;  %v249_v35 = vadd.f32 %v248_v21, %v247_v15  ;;  %v285_v36 = vadd.f32 %v284_v22, %v283_v16  ;;  %v391_v39 = vadd.f32 %v390_v30, %v127_v62  ;;  %v178_v43 = vrot.slane %v177_v23, 1  ;;  %1108 = vmatpush.msra.mxu0 %v723_v59 }
  0x81   :  { %1144 = vmatpush.msra.mxu2 %v867_v12  ;;  %v214_v44 = vrot.slane %v213_v24, 1  ;;  %v321_v46 = vadd.f32 %v320_v25, %v319_v19  ;;  %v356_v47 = vrot.slane %v355_v26, 2  ;;  %v143_v49 = vadd.f32 %v142_v28, %v141_v20  ;;  %v719_v28 = vld [vmem:[#allocation3 + $0x548] sm:$0xff] }
  0x82   :  { %v250_v50 = vrot.slane %v249_v35, 1  ;;  %v286_v37 = vrot.slane %v285_v36, 1  ;;  %v392_v51 = vrot.slane %v391_v39, 2  ;;  %v179_v54 = vadd.f32 %v178_v43, %v177_v23  ;;  %v803_v23 = vld [vmem:[#allocation3 + $0x7e8] sm:$0xff]  ;;  %1109 = vmatpush.msra.mxu0 %v719_v28 }
  0x83   :  { %1145 = vmatpush.msra.mxu2 %v863_v45  ;;  %v215_v55 = vadd.f32 %v214_v44, %v213_v24  ;;  %v322_v56 = vrot.slane %v321_v46, 1  ;;  %v357_v58 = vadd.f32 %v356_v47, %v355_v26  ;;  %v87_v1 = vunpack.c.h.bf16 %v1599_v52  ;;  %v799_v43 = vld [vmem:[#allocation3 + $0x7c8] sm:$0xff] }
  0x84   :  { %v251_v61 = vadd.f32 %v250_v50, %v249_v35  ;;  %v287_v62 = vadd.f32 %v286_v37, %v285_v36  ;;  %v393_v31 = vadd.f32 %v392_v51, %v391_v39  ;;  %v482_v33 = vsel %vm468_vm0, %v179_v54, %v143_v49  ;;  %v847_v44 = vld [vmem:[#allocation3 + $0x948] sm:$0xff] }
  0x85   :  { %1146 = vmatpush.msra.mxu2 %v859_v42  ;;  %v323_v32 = vadd.f32 %v322_v56, %v321_v46  ;;  %v358_v3 = vrot.slane %v357_v58, 1  ;;  %v93_v34 = vunpack.c.h.bf16 %v1605_v57  ;;  %v483_v6 = vsel %vm470_vm1, %v215_v55, %v482_v33  ;;  %v795_v54 = vld [vmem:[#allocation3 + $0x7a8] sm:$0xff] }
  0x86   :  { %v394_v4 = vrot.slane %v393_v31, 1  ;;  %v99_v40 = vunpack.c.h.bf16 %v1610_v63  ;;  %v105_v41 = vunpack.c.h.bf16 %v1615_v0  ;;  %v484_v52 = vsel %vm472_vm2, %v251_v61, %v483_v6  ;;  %v1704_v61 = vld [vmem:[%s1816_s0 + $0x10] sm:$0xff] }
  0x87   :  { %1147 = vmatpush.msra.mxu2 %v855_v53  ;;  %v359_v9 = vadd.f32 %v358_v3, %v357_v58  ;;  %v111_v10 = vunpack.c.h.bf16 %v1620_v5  ;;  %v117_v12 = vunpack.c.h.bf16 %v1625_v7  ;;  %v485_v57 = vsel %vm474_vm3, %v287_v62, %v484_v52  ;;  %v1709_v3 = vld [vmem:[%s1816_s0 + $0x28] sm:$0xff] }
  0x88   :  { %1080 = vmatmul.f32.vlgmr.msrb.gmra.mxu2 %v1655_v60  ;;  %v395_v13 = vadd.f32 %v394_v4, %v393_v31  ;;  %v123_v15 = vunpack.c.h.bf16 %v1630_v8  ;;  %v129_v16 = vunpack.c.h.bf16 %v1636_v14  ;;  %v486_v63 = vsel %vm476_vm4, %v323_v32, %v485_v57  ;;  %v791_v32 = vld [vmem:[#allocation3 + $0x788] sm:$0xff] }
  0x89   :  { %1148 = vmatpush.msra.mxu2 %v851_v2  ;;  %v150_v0 = vrot.slane %v87_v1, 4  ;;  %v186_v17 = vrot.slane %v93_v34, 4  ;;  %v222_v18 = vrot.slane %v99_v40, 4  ;;  %v487_v19 = vsel %vm478_vm5, %v359_v9, %v486_v63  ;;  %v1729_v57 = vld [vmem:[%s1816_s0 + $0x88] sm:$0xff] }
  0x8a   :  { %v258_v29 = vrot.slane %v105_v41, 4  ;;  %v294_v38 = vrot.slane %v111_v10, 4  ;;  %v330_v5 = vrot.slane %v117_v12, 4  ;;  %v488_v7 = vsel %vm480_vm6, %v395_v13, %v487_v19  ;;  %v1724_v13 = vld [vmem:[%s1816_s0 + $0x70] sm:$0xff] }
  0x8b   :  { %v151_v20 = vadd.f32 %v150_v0, %v87_v1  ;;  %v187_v21 = vadd.f32 %v186_v17, %v93_v34  ;;  %v223_v22 = vadd.f32 %v222_v18, %v99_v40  ;;  %v1698_v30 = vmul.f32 0.125, %v488_v7  ;;  %1149 = vmatpush.msra.mxu2 %v847_v44  ;;  %v1714_v40 = vld [vmem:[%s1816_s0 + $0x40] sm:$0xff]  ;;  %v1740_v17 = vld [vmem:[%s1816_s0 + $0xb8] sm:$0xff] }
  0x8c   :  { %v259_v8 = vadd.f32 %v258_v29, %v105_v41  ;;  %v295_v45 = vadd.f32 %v294_v38, %v111_v10  ;;  %v331_v14 = vadd.f32 %v330_v5, %v117_v12  ;;  %v366_v27 = vrot.slane %v123_v15, 4  ;;  %v1719_v41 = vld [vmem:[%s1816_s0 + $0x58] sm:$0xff]  ;;  %v1735_v0 = vld [vmem:[%s1816_s0 + $0xa0] sm:$0xff] }
  0x8d   :  { %v152_v24 = vrot.slane %v151_v20, 2  ;;  %v188_v25 = vrot.slane %v187_v21, 2  ;;  %v224_v26 = vrot.slane %v223_v22, 2  ;;  %980 = vmatmul.f32.vlgmr.msra.gmra.mxu1 %v1698_v30  ;;  %v402_v42 = vrot.slane %v129_v16, 4 }
  0x8e   :  { %v260_v35 = vrot.slane %v259_v8, 2  ;;  %v296_v36 = vrot.slane %v295_v45, 2  ;;  %v332_v39 = vrot.slane %v331_v14, 2  ;;  %v367_v49 = vadd.f32 %v366_v27, %v123_v15  ;;  %1124 = vmatpush.msra.mxu1 %v803_v23  ;;  %v787_v15 = vld [vmem:[#allocation3 + $0x768] sm:$0xff] }
  0x8f   :  { %v153_v46 = vadd.f32 %v152_v24, %v151_v20  ;;  %v189_v47 = vadd.f32 %v188_v25, %v187_v21  ;;  %v225_v48 = vadd.f32 %v224_v26, %v223_v22  ;;  %v403_v53 = vadd.f32 %v402_v42, %v129_v16 }
  0x90   :  { %v261_v50 = vadd.f32 %v260_v35, %v259_v8  ;;  %v297_v37 = vadd.f32 %v296_v36, %v295_v45  ;;  %v333_v51 = vadd.f32 %v332_v39, %v331_v14  ;;  %v368_v59 = vrot.slane %v367_v49, 2  ;;  %1125 = vmatpush.msra.mxu1 %v799_v43 }
  0x91   :  { %v154_v55 = vrot.slane %v153_v46, 1  ;;  %v190_v56 = vrot.slane %v189_v47, 1  ;;  %v226_v58 = vrot.slane %v225_v48, 1  ;;  %v404_v2 = vrot.slane %v403_v53, 2 }
  0x92   :  { %v262_v62 = vrot.slane %v261_v50, 1  ;;  %v298_v31 = vrot.slane %v297_v37, 1  ;;  %v334_v1 = vrot.slane %v333_v51, 1  ;;  %v369_v6 = vadd.f32 %v368_v59, %v367_v49  ;;  %1126 = vmatpush.msra.mxu1 %v795_v54  ;;  %v931_v49 = vld [vmem:[#allocation3 + $0xbe8] sm:$0xff] }
  0x93   :  { %v155_v33 = vadd.f32 %v154_v55, %v153_v46  ;;  %v191_v34 = vadd.f32 %v190_v56, %v189_v47  ;;  %v227_v4 = vadd.f32 %v226_v58, %v225_v48  ;;  %v405_v12 = vadd.f32 %v404_v2, %v403_v53  ;;  %v715_v58 = vld [vmem:[#allocation3 + $0x528] sm:$0xff] }
  0x94   :  { %v263_v9 = vadd.f32 %v262_v62, %v261_v50  ;;  %v299_v52 = vadd.f32 %v298_v31, %v297_v37  ;;  %v335_v10 = vadd.f32 %v334_v1, %v333_v51  ;;  %v370_v16 = vrot.slane %v369_v6, 1  ;;  %1127 = vmatpush.msra.mxu1 %v791_v32  ;;  %v783_v59 = vld [vmem:[#allocation3 + $0x748] sm:$0xff]  ;;  %1110 = vmatpush.msra.mxu0 %v715_v58 }
  0x95   :  { %v496_v63 = vsel %vm468_vm0, %v191_v34, %v155_v33  ;;  %v88_v18 = vunpack.c.l.bf16 %v1704_v61  ;;  %v94_v19 = vunpack.c.l.bf16 %v1709_v3  ;;  %v406_v29 = vrot.slane %v405_v12, 1  ;;  %v927_v62 = vld [vmem:[#allocation3 + $0xbc8] sm:$0xff] }
  0x96   :  { %v497_v38 = vsel %vm470_vm1, %v227_v4, %v496_v63  ;;  %v100_v5 = vunpack.c.l.bf16 %v1714_v40  ;;  %v106_v7 = vunpack.c.l.bf16 %v1719_v41  ;;  %v371_v20 = vadd.f32 %v370_v16, %v369_v6  ;;  %1128 = vmatpush.msra.mxu1 %v787_v15  ;;  %v843_v33 = vld [vmem:[#allocation3 + $0x928] sm:$0xff] }
  0x97   :  { %v498_v21 = vsel %vm472_vm2, %v263_v9, %v497_v38  ;;  %v112_v22 = vunpack.c.l.bf16 %v1724_v13  ;;  %v118_v8 = vunpack.c.l.bf16 %v1729_v57  ;;  %v407_v45 = vadd.f32 %v406_v29, %v405_v12  ;;  %v923_v12 = vld [vmem:[#allocation3 + $0xba8] sm:$0xff]  ;;  %1150 = vmatpush.msra.mxu2 %v843_v33 }
  0x98   :  { %v499_v14 = vsel %vm474_vm3, %v299_v52, %v498_v21  ;;  %v124_v23 = vunpack.c.l.bf16 %v1735_v0  ;;  %v130_v24 = vunpack.c.l.bf16 %v1740_v17  ;;  %v156_v26 = vrot.slane %v88_v18, 4  ;;  %v711_v52 = vld [vmem:[#allocation3 + $0x508] sm:$0xff]  ;;  %1129 = vmatpush.msra.mxu1 %v783_v59 }
  0x99   :  { %v500_v25 = vsel %vm476_vm4, %v335_v10, %v499_v14  ;;  %v192_v27 = vrot.slane %v94_v19, 4  ;;  %v228_v28 = vrot.slane %v100_v5, 4  ;;  %v264_v36 = vrot.slane %v106_v7, 4  ;;  %v779_v10 = vld [vmem:[#allocation3 + $0x728] sm:$0xff]  ;;  %1111 = vmatpush.msra.mxu0 %v711_v52 }
  0x9a   :  { %v501_v35 = vsel %vm478_vm5, %v371_v20, %v500_v25  ;;  %v300_v39 = vrot.slane %v112_v22, 4  ;;  %v336_v42 = vrot.slane %v118_v8, 4  ;;  %v157_v44 = vadd.f32 %v156_v26, %v88_v18  ;;  %v919_v20 = vld [vmem:[#allocation3 + $0xb88] sm:$0xff]  ;;  %1130 = vmatpush.msra.mxu1 %v779_v10 }
  0x9b   :  { %v502_v43 = vsel %vm480_vm6, %v407_v45, %v501_v35  ;;  %v193_v46 = vadd.f32 %v192_v27, %v94_v19  ;;  %v229_v47 = vadd.f32 %v228_v28, %v100_v5  ;;  %v265_v50 = vadd.f32 %v264_v36, %v106_v7  ;;  %v839_v7 = vld [vmem:[#allocation3 + $0x908] sm:$0xff] }
  0x9c   :  { %v1756_v48 = vmul.f32 0.125, %v502_v43  ;;  %v301_v37 = vadd.f32 %v300_v39, %v112_v22  ;;  %v337_v51 = vadd.f32 %v336_v42, %v118_v8  ;;  %v158_v53 = vrot.slane %v157_v44, 2  ;;  %v707_v14 = vld [vmem:[#allocation3 + $0x4e8] sm:$0xff]  ;;  %1151 = vmatpush.msra.mxu2 %v839_v7 }
  0x9d   :  { %v194_v54 = vrot.slane %v193_v46, 2  ;;  %v230_v55 = vrot.slane %v229_v47, 2  ;;  %v372_v56 = vrot.slane %v124_v23, 4  ;;  %v266_v31 = vrot.slane %v265_v50, 2  ;;  %v775_v27 = vld [vmem:[#allocation3 + $0x708] sm:$0xff]  ;;  %1112 = vmatpush.msra.mxu0 %v707_v14 }
  0x9e   :  { %1020 = vmatmul.f32.vlgmr.msra.gmra.mxu3 %v1756_v48  ;;  %v302_v1 = vrot.slane %v301_v37, 2  ;;  %v338_v2 = vrot.slane %v337_v51, 2  ;;  %v408_v32 = vrot.slane %v130_v24, 4  ;;  %v159_v34 = vadd.f32 %v158_v53, %v157_v44  ;;  %v835_v28 = vld [vmem:[#allocation3 + $0x8e8] sm:$0xff]  ;;  %1131 = vmatpush.msra.mxu1 %v775_v27 }
  0x9f   :  { %1164 = vmatpush.msra.mxu3 %v931_v49  ;;  %v195_v4 = vadd.f32 %v194_v54, %v193_v46  ;;  %v231_v6 = vadd.f32 %v230_v55, %v229_v47  ;;  %v373_v9 = vadd.f32 %v372_v56, %v124_v23  ;;  %v267_v15 = vadd.f32 %v266_v31, %v265_v50  ;;  %v915_v43 = vld [vmem:[#allocation3 + $0xb68] sm:$0xff] }
  0xa0   :  { %v303_v16 = vadd.f32 %v302_v1, %v301_v37  ;;  %v339_v63 = vadd.f32 %v338_v2, %v337_v51  ;;  %v409_v18 = vadd.f32 %v408_v32, %v130_v24  ;;  %v160_v19 = vrot.slane %v159_v34, 1  ;;  %v703_v44 = vld [vmem:[#allocation3 + $0x4c8] sm:$0xff]  ;;  %1152 = vmatpush.msra.mxu2 %v835_v28 }
  0xa1   :  { %1165 = vmatpush.msra.mxu3 %v927_v62  ;;  %v196_v29 = vrot.slane %v195_v4, 1  ;;  %v232_v38 = vrot.slane %v231_v6, 1  ;;  %v374_v5 = vrot.slane %v373_v9, 2  ;;  %v268_v21 = vrot.slane %v267_v15, 1  ;;  %v771_v37 = vld [vmem:[#allocation3 + $0x6e8] sm:$0xff]  ;;  %1113 = vmatpush.msra.mxu0 %v703_v44 }
  0xa2   :  { %v304_v22 = vrot.slane %v303_v16, 1  ;;  %v340_v8 = vrot.slane %v339_v63, 1  ;;  %v410_v45 = vrot.slane %v409_v18, 2  ;;  %v161_v23 = vadd.f32 %v160_v19, %v159_v34  ;;  %v831_v51 = vld [vmem:[#allocation3 + $0x8c8] sm:$0xff]  ;;  %1132 = vmatpush.msra.mxu1 %v771_v37 }
  0xa3   :  { %1166 = vmatpush.msra.mxu3 %v923_v12  ;;  %v197_v25 = vadd.f32 %v196_v29, %v195_v4  ;;  %v233_v24 = vadd.f32 %v232_v38, %v231_v6  ;;  %v375_v26 = vadd.f32 %v374_v5, %v373_v9  ;;  %v269_v35 = vadd.f32 %v268_v21, %v267_v15  ;;  %v911_v58 = vld [vmem:[#allocation3 + $0xb48] sm:$0xff] }
  0xa4   :  { %v305_v36 = vadd.f32 %v304_v22, %v303_v16  ;;  %v341_v39 = vadd.f32 %v340_v8, %v339_v63  ;;  %v411_v42 = vadd.f32 %v410_v45, %v409_v18  ;;  %v89_v49 = vunpack.c.h.bf16 %v1704_v61  ;;  %v699_v59 = vld [vmem:[#allocation3 + $0x4a8] sm:$0xff]  ;;  %1153 = vmatpush.msra.mxu2 %v831_v51 }
  0xa5   :  { %1167 = vmatpush.msra.mxu3 %v919_v20  ;;  %v376_v46 = vrot.slane %v375_v26, 1  ;;  %v503_v47 = vsel %vm468_vm0, %v197_v25, %v161_v23  ;;  %v95_v50 = vunpack.c.h.bf16 %v1709_v3  ;;  %v101_v55 = vunpack.c.h.bf16 %v1714_v40  ;;  %v767_v1 = vld [vmem:[#allocation3 + $0x6c8] sm:$0xff]  ;;  %1114 = vmatpush.msra.mxu0 %v699_v59 }
  0xa6   :  { %v412_v53 = vrot.slane %v411_v42, 1  ;;  %v504_v54 = vsel %vm470_vm1, %v233_v24, %v503_v47  ;;  %v107_v56 = vunpack.c.h.bf16 %v1719_v41  ;;  %v113_v61 = vunpack.c.h.bf16 %v1724_v13  ;;  %v827_v2 = vld [vmem:[#allocation3 + $0x8a8] sm:$0xff]  ;;  %1133 = vmatpush.msra.mxu1 %v767_v1  ;;  %1100 = vmatmul.f32.vlgmr.msrb.gmra.mxu3 %v1698_v30 }
  0xa7   :  { %v377_v62 = vadd.f32 %v376_v46, %v375_v26  ;;  %v505_v31 = vsel %vm472_vm2, %v269_v35, %v504_v54  ;;  %1168 = vmatpush.msra.mxu3 %v915_v43  ;;  %v119_v3 = vunpack.c.h.bf16 %v1729_v57  ;;  %v125_v41 = vunpack.c.h.bf16 %v1735_v0  ;;  %v907_v34 = vld [vmem:[#allocation3 + $0xb28] sm:$0xff]  ;;  %1154 = vmatpush.msra.mxu2 %v827_v2 }
  0xa8   :  { %v413_v32 = vadd.f32 %v412_v53, %v411_v42  ;;  %v506_v40 = vsel %vm474_vm3, %v305_v36, %v505_v31  ;;  %v131_v33 = vunpack.c.h.bf16 %v1740_v17  ;;  %v162_v6 = vrot.slane %v89_v49, 4  ;;  %v695_v57 = vld [vmem:[#allocation3 + $0x488] sm:$0xff] }
  0xa9   :  { %v507_v4 = vsel %vm476_vm4, %v341_v39, %v506_v40  ;;  %v198_v9 = vrot.slane %v95_v50, 4  ;;  %v234_v13 = vrot.slane %v101_v55, 4  ;;  %1169 = vmatpush.msra.mxu3 %v911_v58  ;;  %v763_v52 = vld [vmem:[#allocation3 + $0x6a8] sm:$0xff]  ;;  %v270_v12 = vrot.slane %v107_v56, 4  ;;  %1115 = vmatpush.msra.mxu0 %v695_v57 }
  0xaa   :  { %v508_v10 = vsel %vm478_vm5, %v377_v62, %v507_v4  ;;  %v306_v15 = vrot.slane %v113_v61, 4  ;;  %v342_v16 = vrot.slane %v119_v3, 4  ;;  %v903_v0 = vld [vmem:[#allocation3 + $0xb08] sm:$0xff]  ;;  %v163_v18 = vadd.f32 %v162_v6, %v89_v49  ;;  %1134 = vmatpush.msra.mxu1 %v763_v52 }
  0xab   :  { %v823_v17 = vld [vmem:[#allocation3 + $0x888] sm:$0xff]  ;;  %v509_v63 = vsel %vm480_vm6, %v413_v32, %v508_v10  ;;  %v199_v19 = vadd.f32 %v198_v9, %v95_v50  ;;  %v235_v29 = vadd.f32 %v234_v13, %v101_v55  ;;  %1170 = vmatpush.msra.mxu3 %v907_v34  ;;  %v271_v7 = vadd.f32 %v270_v12, %v107_v56 }
  0xac   :  { %v759_v38 = vld [vmem:[#allocation3 + $0x688] sm:$0xff]  ;;  %v1774_v5 = vmul.f32 0.125, %v509_v63  ;;  %v307_v20 = vadd.f32 %v306_v15, %v113_v61  ;;  %v343_v21 = vadd.f32 %v342_v16, %v119_v3  ;;  %v164_v8 = vrot.slane %v163_v18, 2  ;;  %1155 = vmatpush.msra.mxu2 %v823_v17 }
  0xad   :  { %v899_v22 = vld [vmem:[#allocation3 + $0xae8] sm:$0xff]  ;;  %v200_v45 = vrot.slane %v199_v19, 2  ;;  %v236_v14 = vrot.slane %v235_v29, 2  ;;  %v378_v23 = vrot.slane %v125_v41, 4  ;;  %1171 = vmatpush.msra.mxu3 %v903_v0  ;;  %v272_v24 = vrot.slane %v271_v7, 2  ;;  %1135 = vmatpush.msra.mxu1 %v759_v38  ;;  %v612_v38 = vld [vmem:[#allocation3 + $0x1f0] sm:$0xff] }
  0xae   :  { %v691_v25 = vld [vmem:[#allocation3 + $0x468] sm:$0xff]  ;;  %1040 = vmatmul.f32.vlgmr.msrb.gmra.mxu0 %v1774_v5  ;;  %v308_v26 = vrot.slane %v307_v20, 2  ;;  %v344_v27 = vrot.slane %v343_v21, 2  ;;  %v414_v28 = vrot.slane %v131_v33, 4  ;;  %v165_v39 = vadd.f32 %v164_v8, %v163_v18 }
  0xaf   :  { %v895_v35 = vld [vmem:[#allocation3 + $0xac8] sm:$0xff]  ;;  %v201_v42 = vadd.f32 %v200_v45, %v199_v19  ;;  %v237_v43 = vadd.f32 %v236_v14, %v235_v29  ;;  %v379_v44 = vadd.f32 %v378_v23, %v125_v41  ;;  %1172 = vmatpush.msra.mxu3 %v899_v22  ;;  %v273_v47 = vadd.f32 %v272_v24, %v271_v7  ;;  %v740_v22 = vld [vmem:[#allocation3 + $0x5f0] sm:$0xff] }
  0xb0   :  { %v819_v36 = vld [vmem:[#allocation3 + $0x868] sm:$0xff]  ;;  %v309_v49 = vadd.f32 %v308_v26, %v307_v20  ;;  %v345_v50 = vadd.f32 %v344_v27, %v343_v21  ;;  %v415_v37 = vadd.f32 %v414_v28, %v131_v33  ;;  %1116 = vmatpush.msra.mxu0 %v691_v25  ;;  %v166_v53 = vrot.slane %v165_v39, 1  ;;  %v608_v25 = vld [vmem:[#allocation3 + $0x1d0] sm:$0xff] }
  0xb1   :  { %v687_v46 = vld [vmem:[#allocation3 + $0x448] sm:$0xff]  ;;  %v202_v54 = vrot.slane %v201_v42, 1  ;;  %v238_v55 = vrot.slane %v237_v43, 1  ;;  %v380_v56 = vrot.slane %v379_v44, 2  ;;  %1173 = vmatpush.msra.mxu3 %v895_v35  ;;  %1156 = vmatpush.msra.mxu2 %v819_v36  ;;  %v274_v59 = vrot.slane %v273_v47, 1  ;;  %v676_v27 = vld [vmem:[#allocation3 + $0x3f0] sm:$0xff] }
  0xb2   :  { %v891_v51 = vld [vmem:[#allocation3 + $0xaa8] sm:$0xff]  ;;  %v310_v62 = vrot.slane %v309_v49, 1  ;;  %v346_v31 = vrot.slane %v345_v50, 1  ;;  %v416_v61 = vrot.slane %v415_v37, 2  ;;  %1117 = vmatpush.msra.mxu0 %v687_v46  ;;  %v167_v2 = vadd.f32 %v166_v53, %v165_v39  ;;  %v736_v28 = vld [vmem:[#allocation3 + $0x5d0] sm:$0xff] }
  0xb3   :  { %v755_v58 = vld [vmem:[#allocation3 + $0x668] sm:$0xff]  ;;  %v203_v32 = vadd.f32 %v202_v54, %v201_v42  ;;  %v239_v40 = vadd.f32 %v238_v55, %v237_v43  ;;  %v381_v41 = vadd.f32 %v380_v56, %v379_v44  ;;  %1174 = vmatpush.msra.mxu3 %v891_v51  ;;  %v275_v4 = vadd.f32 %v274_v59, %v273_v47  ;;  %v804_v35 = vld [vmem:[#allocation3 + $0x7f0] sm:$0xff] }
  0xb4   :  { %v887_v3 = vld [vmem:[#allocation3 + $0xa88] sm:$0xff]  ;;  %v311_v6 = vadd.f32 %v310_v62, %v309_v49  ;;  %v417_v9 = vadd.f32 %v416_v61, %v415_v37  ;;  %1136 = vmatpush.msra.mxu1 %v755_v58  ;;  %v347_v52 = vadd.f32 %v346_v31, %v345_v50  ;;  %v604_v36 = vld [vmem:[#allocation3 + $0x1b0] sm:$0xff] }
  0xb5   :  { %v815_v1 = vld [vmem:[#allocation3 + $0x848] sm:$0xff]  ;;  %v382_v10 = vrot.slane %v381_v41, 1  ;;  %v510_v12 = vsel %vm468_vm0, %v203_v32, %v167_v2  ;;  %1175 = vmatpush.msra.mxu3 %v887_v3  ;;  %v672_v39 = vld [vmem:[#allocation3 + $0x3d0] sm:$0xff] }
  0xb6   :  { %v683_v33 = vld [vmem:[#allocation3 + $0x428] sm:$0xff]  ;;  %1157 = vmatpush.msra.mxu2 %v815_v1  ;;  %v418_v0 = vrot.slane %v417_v9, 1  ;;  %v511_v17 = vsel %vm470_vm1, %v239_v40, %v510_v12  ;;  %v732_v42 = vld [vmem:[#allocation3 + $0x5b0] sm:$0xff] }
  0xb7   :  { %v751_v34 = vld [vmem:[#allocation3 + $0x648] sm:$0xff]  ;;  %1118 = vmatpush.msra.mxu0 %v683_v33  ;;  %v383_v19 = vadd.f32 %v382_v10, %v381_v41  ;;  %v512_v29 = vsel %vm472_vm2, %v275_v4, %v511_v17  ;;  %v800_v43 = vld [vmem:[#allocation3 + $0x7d0] sm:$0xff] }
  0xb8   :  { %v883_v13 = vld [vmem:[#allocation3 + $0xa68] sm:$0xff]  ;;  %1137 = vmatpush.msra.mxu1 %v751_v34  ;;  %v419_v7 = vadd.f32 %v418_v0, %v417_v9  ;;  %v513_v20 = vsel %vm474_vm3, %v311_v6, %v512_v29  ;;  %v600_v44 = vld [vmem:[#allocation3 + $0x190] sm:$0xff] }
  0xb9   :  { %v811_v57 = vld [vmem:[#allocation3 + $0x828] sm:$0xff]  ;;  %1176 = vmatpush.msra.mxu3 %v883_v13  ;;  %v514_v8 = vsel %vm476_vm4, %v347_v52, %v513_v20  ;;  %v668_v46 = vld [vmem:[#allocation3 + $0x3b0] sm:$0xff] }
  0xba   :  { %v679_v15 = vld [vmem:[#allocation3 + $0x408] sm:$0xff]  ;;  %1158 = vmatpush.msra.mxu2 %v811_v57  ;;  %v515_v14 = vsel %vm478_vm5, %v383_v19, %v514_v8  ;;  %v728_v47 = vld [vmem:[#allocation3 + $0x590] sm:$0xff] }
  0xbb   :  { %v747_v16 = vld [vmem:[#allocation3 + $0x628] sm:$0xff]  ;;  %1119 = vmatpush.msra.mxu0 %v679_v15  ;;  %v516_v24 = vsel %vm480_vm6, %v419_v7, %v515_v14  ;;  %v796_v49 = vld [vmem:[#allocation3 + $0x7b0] sm:$0xff] }
  0xbc   :  { %v879_v63 = vld [vmem:[#allocation3 + $0xa48] sm:$0xff]  ;;  %1138 = vmatpush.msra.mxu1 %v747_v16  ;;  %v1786_v26 = vmul.f32 0.125, %v516_v24  ;;  %1120 = vmatmul.f32.vlgmr.msra.gmra.mxu0 %v1679_v11  ;;  %v596_v50 = vld [vmem:[#allocation3 + $0x170] sm:$0xff] }
  0xbd   :  { %v807_v18 = vld [vmem:[#allocation3 + $0x808] sm:$0xff]  ;;  %1177 = vmatpush.msra.mxu3 %v879_v63  ;;  %1184 = vmatpush.msrb.mxu0 %v612_v38  ;;  %v664_v37 = vld [vmem:[#allocation3 + $0x390] sm:$0xff] }
  0xbe   :  { %v875_v21 = vld [vmem:[#allocation3 + $0xa28] sm:$0xff]  ;;  %1159 = vmatpush.msra.mxu2 %v807_v18  ;;  %1060 = vmatmul.f32.vlgmr.msrb.gmra.mxu1 %v1786_v26  ;;  %v724_v51 = vld [vmem:[#allocation3 + $0x570] sm:$0xff] }
  0xbf   :  { %v743_v45 = vld [vmem:[#allocation3 + $0x608] sm:$0xff]  ;;  %1160 = vmatmul.f32.vlgmr.msra.gmra.mxu2 %v1774_v5  ;;  %1178 = vmatpush.msra.mxu3 %v875_v21  ;;  %v792_v53 = vld [vmem:[#allocation3 + $0x790] sm:$0xff] }
  0xc0   :  { %v871_v23 = vld [vmem:[#allocation3 + $0xa08] sm:$0xff]  ;;  %1224 = vmatpush.msrb.mxu2 %v740_v22  ;;  %1139 = vmatpush.msra.mxu1 %v743_v45  ;;  %v592_v54 = vld [vmem:[#allocation3 + $0x150] sm:$0xff] }
  0xc1   :  { %1179 = vmatpush.msra.mxu3 %v871_v23  ;;  %1185 = vmatpush.msrb.mxu0 %v608_v25  ;;  %v660_v55 = vld [vmem:[#allocation3 + $0x370] sm:$0xff] }
  0xc2   :  { %1180 = vmatmul.f32.vlgmr.msra.gmra.mxu3 %v1786_v26  ;;  %1204 = vmatpush.msrb.mxu1 %v676_v27  ;;  %v720_v56 = vld [vmem:[#allocation3 + $0x550] sm:$0xff] }
  0xc3   :  { %1225 = vmatpush.msrb.mxu2 %v736_v28  ;;  %1244 = vmatpush.msrb.mxu3 %v804_v35  ;;  %v788_v58 = vld [vmem:[#allocation3 + $0x770] sm:$0xff]  ;;  %v613_v35 = vld [vmem:[#allocation3 + $0x1f8] sm:$0xff] }
  0xc4   :  { %1186 = vmatpush.msrb.mxu0 %v604_v36  ;;  %1205 = vmatpush.msrb.mxu1 %v672_v39  ;;  %v588_v59 = vld [vmem:[#allocation3 + $0x130] sm:$0xff] }
  0xc5   :  { %1226 = vmatpush.msrb.mxu2 %v732_v42  ;;  %1245 = vmatpush.msrb.mxu3 %v800_v43  ;;  %v656_v62 = vld [vmem:[#allocation3 + $0x350] sm:$0xff] }
  0xc6   :  { %1187 = vmatpush.msrb.mxu0 %v600_v44  ;;  %1206 = vmatpush.msrb.mxu1 %v668_v46  ;;  %v716_v31 = vld [vmem:[#allocation3 + $0x530] sm:$0xff]  ;;  %v609_v44 = vld [vmem:[#allocation3 + $0x1d8] sm:$0xff] }
  0xc7   :  { %1227 = vmatpush.msrb.mxu2 %v728_v47  ;;  %1246 = vmatpush.msrb.mxu3 %v796_v49  ;;  %v784_v61 = vld [vmem:[#allocation3 + $0x750] sm:$0xff]  ;;  %v677_v46 = vld [vmem:[#allocation3 + $0x3f8] sm:$0xff] }
  0xc8   :  { %1188 = vmatpush.msrb.mxu0 %v596_v50  ;;  %1207 = vmatpush.msrb.mxu1 %v664_v37  ;;  %v584_v3 = vld [vmem:[#allocation3 + $0x110] sm:$0xff]  ;;  %v605_v50 = vld [vmem:[#allocation3 + $0x1b8] sm:$0xff] }
  0xc9   :  { %1228 = vmatpush.msrb.mxu2 %v724_v51  ;;  %1140 = vmatmul.f32.vlgmr.msra.gmra.mxu1 %v1756_v48  ;;  %v652_v1 = vld [vmem:[#allocation3 + $0x330] sm:$0xff]  ;;  %v673_v37 = vld [vmem:[#allocation3 + $0x3d8] sm:$0xff] }
  0xca   :  { %1247 = vmatpush.msrb.mxu3 %v792_v53  ;;  %1189 = vmatpush.msrb.mxu0 %v592_v54  ;;  %v712_v2 = vld [vmem:[#allocation3 + $0x510] sm:$0xff]  ;;  %v601_v54 = vld [vmem:[#allocation3 + $0x198] sm:$0xff] }
  0xcb   :  { %1208 = vmatpush.msrb.mxu1 %v660_v55  ;;  %1229 = vmatpush.msrb.mxu2 %v720_v56  ;;  %v780_v32 = vld [vmem:[#allocation3 + $0x730] sm:$0xff]  ;;  %v669_v55 = vld [vmem:[#allocation3 + $0x3b8] sm:$0xff] }
  0xcc   :  { %1248 = vmatpush.msrb.mxu3 %v788_v58  ;;  %1190 = vmatpush.msrb.mxu0 %v588_v59  ;;  %v580_v40 = vld [vmem:[#allocation3 + $0xf0] sm:$0xff]  ;;  %v597_v59 = vld [vmem:[#allocation3 + $0x178] sm:$0xff] }
  0xcd   :  { %1209 = vmatpush.msrb.mxu1 %v656_v62  ;;  %1230 = vmatpush.msrb.mxu2 %v716_v31  ;;  %v648_v41 = vld [vmem:[#allocation3 + $0x310] sm:$0xff]  ;;  %v665_v62 = vld [vmem:[#allocation3 + $0x398] sm:$0xff] }
  0xce   :  { %1249 = vmatpush.msrb.mxu3 %v784_v61  ;;  %1191 = vmatpush.msrb.mxu0 %v584_v3  ;;  %v708_v33 = vld [vmem:[#allocation3 + $0x4f0] sm:$0xff]  ;;  %v593_v3 = vld [vmem:[#allocation3 + $0x158] sm:$0xff] }
  0xcf   :  { %1210 = vmatpush.msrb.mxu1 %v652_v1  ;;  %v776_v34 = vld [vmem:[#allocation3 + $0x710] sm:$0xff]  ;;  %1231 = vmatpush.msrb.mxu2 %v712_v2  ;;  %v661_v1 = vld [vmem:[#allocation3 + $0x378] sm:$0xff] }
  0xd0   :  { %1250 = vmatpush.msrb.mxu3 %v780_v32  ;;  %v576_v4 = vld [vmem:[#allocation3 + $0xd0] sm:$0xff]  ;;  %1192 = vmatpush.msrb.mxu0 %v580_v40  ;;  %v589_v40 = vld [vmem:[#allocation3 + $0x138] sm:$0xff] }
  0xd1   :  { %v644_v6 = vld [vmem:[#allocation3 + $0x2f0] sm:$0xff]  ;;  %1211 = vmatpush.msrb.mxu1 %v648_v41  ;;  %1232 = vmatpush.msrb.mxu2 %v708_v33  ;;  %v657_v41 = vld [vmem:[#allocation3 + $0x358] sm:$0xff] }
  0xd2   :  { %v704_v9 = vld [vmem:[#allocation3 + $0x4d0] sm:$0xff]  ;;  %1251 = vmatpush.msrb.mxu3 %v776_v34  ;;  %1193 = vmatpush.msrb.mxu0 %v576_v4  ;;  %v585_v4 = vld [vmem:[#allocation3 + $0x118] sm:$0xff] }
  0xd3   :  { %v772_v13 = vld [vmem:[#allocation3 + $0x6f0] sm:$0xff]  ;;  %1212 = vmatpush.msrb.mxu1 %v644_v6  ;;  %1233 = vmatpush.msrb.mxu2 %v704_v9  ;;  %v653_v6 = vld [vmem:[#allocation3 + $0x338] sm:$0xff] }
  0xd4   :  { %v572_v57 = vld [vmem:[#allocation3 + $0xb0] sm:$0xff]  ;;  %1252 = vmatpush.msrb.mxu3 %v772_v13 }
  0xd5   :  { %v640_v52 = vld [vmem:[#allocation3 + $0x2d0] sm:$0xff]  ;;  %1194 = vmatpush.msrb.mxu0 %v572_v57  ;;  %v581_v57 = vld [vmem:[#allocation3 + $0xf8] sm:$0xff] }
  0xd6   :  { %v700_v10 = vld [vmem:[#allocation3 + $0x4b0] sm:$0xff]  ;;  %1213 = vmatpush.msrb.mxu1 %v640_v52  ;;  %v649_v52 = vld [vmem:[#allocation3 + $0x318] sm:$0xff] }
  0xd7   :  { %v768_v12 = vld [vmem:[#allocation3 + $0x6d0] sm:$0xff]  ;;  %1234 = vmatpush.msrb.mxu2 %v700_v10 }
  0xd8   :  { %v568_v15 = vld [vmem:[#allocation3 + $0x90] sm:$0xff]  ;;  %1253 = vmatpush.msrb.mxu3 %v768_v12 }
  0xd9   :  { %v636_v16 = vld [vmem:[#allocation3 + $0x2b0] sm:$0xff]  ;;  %1195 = vmatpush.msrb.mxu0 %v568_v15  ;;  %v577_v15 = vld [vmem:[#allocation3 + $0xd8] sm:$0xff] }
  0xda   :  { %v696_v0 = vld [vmem:[#allocation3 + $0x490] sm:$0xff]  ;;  %1214 = vmatpush.msrb.mxu1 %v636_v16  ;;  %v645_v16 = vld [vmem:[#allocation3 + $0x2f8] sm:$0xff] }
  0xdb   :  { %v764_v17 = vld [vmem:[#allocation3 + $0x6b0] sm:$0xff]  ;;  %1235 = vmatpush.msrb.mxu2 %v696_v0 }
  0xdc   :  { %v564_v63 = vld [vmem:[#allocation3 + $0x70] sm:$0xff]  ;;  %1254 = vmatpush.msrb.mxu3 %v764_v17 }
  0xdd   :  { %v632_v18 = vld [vmem:[#allocation3 + $0x290] sm:$0xff]  ;;  %1196 = vmatpush.msrb.mxu0 %v564_v63  ;;  %v573_v63 = vld [vmem:[#allocation3 + $0xb8] sm:$0xff] }
  0xde   :  { %v692_v19 = vld [vmem:[#allocation3 + $0x470] sm:$0xff]  ;;  %1215 = vmatpush.msrb.mxu1 %v632_v18  ;;  %v641_v18 = vld [vmem:[#allocation3 + $0x2d8] sm:$0xff] }
  0xdf   :  { %v760_v29 = vld [vmem:[#allocation3 + $0x690] sm:$0xff]  ;;  %1236 = vmatpush.msrb.mxu2 %v692_v19 }
  0xe0   :  { %v560_v38 = vld [vmem:[#allocation3 + $0x50] sm:$0xff]  ;;  %1255 = vmatpush.msrb.mxu3 %v760_v29 }
  0xe1   :  { %v628_v7 = vld [vmem:[#allocation3 + $0x270] sm:$0xff]  ;;  %1197 = vmatpush.msrb.mxu0 %v560_v38  ;;  %v569_v38 = vld [vmem:[#allocation3 + $0x98] sm:$0xff] }
  0xe2   :  { %v688_v20 = vld [vmem:[#allocation3 + $0x450] sm:$0xff]  ;;  %1216 = vmatpush.msrb.mxu1 %v628_v7  ;;  %v637_v7 = vld [vmem:[#allocation3 + $0x2b8] sm:$0xff] }
  0xe3   :  { %v756_v21 = vld [vmem:[#allocation3 + $0x670] sm:$0xff]  ;;  %1237 = vmatpush.msrb.mxu2 %v688_v20 }
  0xe4   :  { %v556_v22 = vld [vmem:[#allocation3 + $0x30] sm:$0xff]  ;;  %1256 = vmatpush.msrb.mxu3 %v756_v21 }
  0xe5   :  { %v624_v8 = vld [vmem:[#allocation3 + $0x250] sm:$0xff]  ;;  %1198 = vmatpush.msrb.mxu0 %v556_v22  ;;  %v565_v22 = vld [vmem:[#allocation3 + $0x78] sm:$0xff] }
  0xe6   :  { %v684_v45 = vld [vmem:[#allocation3 + $0x430] sm:$0xff]  ;;  %1217 = vmatpush.msrb.mxu1 %v624_v8  ;;  %v633_v8 = vld [vmem:[#allocation3 + $0x298] sm:$0xff] }
  0xe7   :  { %v752_v14 = vld [vmem:[#allocation3 + $0x650] sm:$0xff]  ;;  %1238 = vmatpush.msrb.mxu2 %v684_v45 }
  0xe8   :  { %v552_v23 = vld [vmem:[#allocation3 + $0x10] sm:$0xff]  ;;  %1257 = vmatpush.msrb.mxu3 %v752_v14 }
  0xe9   :  { %v620_v25 = vld [vmem:[#allocation3 + $0x230] sm:$0xff]  ;;  %1199 = vmatpush.msrb.mxu0 %v552_v23  ;;  %v561_v23 = vld [vmem:[#allocation3 + $0x58] sm:$0xff] }
  0xea   :  { %v680_v24 = vld [vmem:[#allocation3 + $0x410] sm:$0xff]  ;;  %1218 = vmatpush.msrb.mxu1 %v620_v25  ;;  %1200 = vmatmul.f32.vlgmr.msrb.gmra.mxu0 %v1655_v60  ;;  %v629_v25 = vld [vmem:[#allocation3 + $0x278] sm:$0xff] }
  0xeb   :  { %v748_v27 = vld [vmem:[#allocation3 + $0x630] sm:$0xff]  ;;  %1239 = vmatpush.msrb.mxu2 %v680_v24 }
  0xec   :  { %v868_v28 = vld [vmem:[#allocation3 + $0x9f0] sm:$0xff]  ;;  %1258 = vmatpush.msrb.mxu3 %v748_v27  ;;  %1240 = vmatmul.f32.vlgmr.msrb.gmra.mxu2 %v1679_v11 }
  0xed   :  { %v616_v36 = vld [vmem:[#allocation3 + $0x210] sm:$0xff]  ;;  %1264 = vmatpush.msra.mxu0 %v868_v28  ;;  %1304 = vmatpush.msra.mxu2 %v613_v35  ;;  %v557_v28 = vld [vmem:[#allocation3 + $0x38] sm:$0xff] }
  0xee   :  { %v744_v39 = vld [vmem:[#allocation3 + $0x610] sm:$0xff]  ;;  %1219 = vmatpush.msrb.mxu1 %v616_v36  ;;  %v625_v35 = vld [vmem:[#allocation3 + $0x258] sm:$0xff] }
  0xef   :  { %v864_v42 = vld [vmem:[#allocation3 + $0x9d0] sm:$0xff]  ;;  %1259 = vmatpush.msrb.mxu3 %v744_v39  ;;  %1305 = vmatpush.msra.mxu2 %v609_v44  ;;  %v869_v44 = vld [vmem:[#allocation3 + $0x9f8] sm:$0xff] }
  0xf0   :  { %v932_v43 = vld [vmem:[#allocation3 + $0xbf0] sm:$0xff]  ;;  %1265 = vmatpush.msra.mxu0 %v864_v42  ;;  %1260 = vmatmul.f32.vlgmr.msrb.gmra.mxu3 %v1756_v48  ;;  %v553_v42 = vld [vmem:[#allocation3 + $0x18] sm:$0xff] }
  0xf1   :  { %v860_v47 = vld [vmem:[#allocation3 + $0x9b0] sm:$0xff]  ;;  %1284 = vmatpush.msra.mxu1 %v932_v43  ;;  %1324 = vmatpush.msra.mxu3 %v677_v46  ;;  %v621_v43 = vld [vmem:[#allocation3 + $0x238] sm:$0xff] }
  0xf2   :  { %v928_v49 = vld [vmem:[#allocation3 + $0xbd0] sm:$0xff]  ;;  %1266 = vmatpush.msra.mxu0 %v860_v47  ;;  %1306 = vmatpush.msra.mxu2 %v605_v50  ;;  %v617_v47 = vld [vmem:[#allocation3 + $0x218] sm:$0xff] }
  0xf3   :  { %v856_v51 = vld [vmem:[#allocation3 + $0x990] sm:$0xff]  ;;  %1285 = vmatpush.msra.mxu1 %v928_v49  ;;  %1325 = vmatpush.msra.mxu3 %v673_v37  ;;  %v741_v49 = vld [vmem:[#allocation3 + $0x5f8] sm:$0xff] }
  0xf4   :  { %v924_v53 = vld [vmem:[#allocation3 + $0xbb0] sm:$0xff]  ;;  %1267 = vmatpush.msra.mxu0 %v856_v51  ;;  %1307 = vmatpush.msra.mxu2 %v601_v54  ;;  %v865_v50 = vld [vmem:[#allocation3 + $0x9d8] sm:$0xff] }
  0xf5   :  { %v852_v56 = vld [vmem:[#allocation3 + $0x970] sm:$0xff]  ;;  %1286 = vmatpush.msra.mxu1 %v924_v53  ;;  %1326 = vmatpush.msra.mxu3 %v669_v55  ;;  %v933_v37 = vld [vmem:[#allocation3 + $0xbf8] sm:$0xff] }
  0xf6   :  { %v920_v58 = vld [vmem:[#allocation3 + $0xb90] sm:$0xff]  ;;  %1268 = vmatpush.msra.mxu0 %v852_v56  ;;  %1308 = vmatpush.msra.mxu2 %v597_v59  ;;  %v737_v51 = vld [vmem:[#allocation3 + $0x5d8] sm:$0xff] }
  0xf7   :  { %v848_v31 = vld [vmem:[#allocation3 + $0x950] sm:$0xff]  ;;  %1287 = vmatpush.msra.mxu1 %v920_v58  ;;  %1327 = vmatpush.msra.mxu3 %v665_v62  ;;  %v805_v53 = vld [vmem:[#allocation3 + $0x7f8] sm:$0xff] }
  0xf8   :  { %v916_v61 = vld [vmem:[#allocation3 + $0xb70] sm:$0xff]  ;;  %1269 = vmatpush.msra.mxu0 %v848_v31  ;;  %1309 = vmatpush.msra.mxu2 %v593_v3  ;;  %v861_v54 = vld [vmem:[#allocation3 + $0x9b8] sm:$0xff] }
  0xf9   :  { %v844_v2 = vld [vmem:[#allocation3 + $0x930] sm:$0xff]  ;;  %1288 = vmatpush.msra.mxu1 %v916_v61  ;;  %1328 = vmatpush.msra.mxu3 %v661_v1  ;;  %v929_v55 = vld [vmem:[#allocation3 + $0xbd8] sm:$0xff] }
  0xfa   :  { %v912_v32 = vld [vmem:[#allocation3 + $0xb50] sm:$0xff]  ;;  %1270 = vmatpush.msra.mxu0 %v844_v2  ;;  %1310 = vmatpush.msra.mxu2 %v589_v40  ;;  %v733_v56 = vld [vmem:[#allocation3 + $0x5b8] sm:$0xff] }
  0xfb   :  { %v840_v33 = vld [vmem:[#allocation3 + $0x910] sm:$0xff]  ;;  %1289 = vmatpush.msra.mxu1 %v912_v32  ;;  %1329 = vmatpush.msra.mxu3 %v657_v41  ;;  %v801_v58 = vld [vmem:[#allocation3 + $0x7d8] sm:$0xff] }
  0xfc   :  { %v908_v34 = vld [vmem:[#allocation3 + $0xb30] sm:$0xff]  ;;  %1271 = vmatpush.msra.mxu0 %v840_v33  ;;  %1311 = vmatpush.msra.mxu2 %v585_v4  ;;  %v857_v59 = vld [vmem:[#allocation3 + $0x998] sm:$0xff] }
  0xfd   :  { %v836_v9 = vld [vmem:[#allocation3 + $0x8f0] sm:$0xff]  ;;  %1290 = vmatpush.msra.mxu1 %v908_v34  ;;  %1330 = vmatpush.msra.mxu3 %v653_v6  ;;  %v925_v62 = vld [vmem:[#allocation3 + $0xbb8] sm:$0xff] }
  0xfe   :  { %v904_v13 = vld [vmem:[#allocation3 + $0xb10] sm:$0xff]  ;;  %1272 = vmatpush.msra.mxu0 %v836_v9  ;;  %1312 = vmatpush.msra.mxu2 %v581_v57  ;;  %v729_v31 = vld [vmem:[#allocation3 + $0x598] sm:$0xff] }
  0xff   :  { %v832_v10 = vld [vmem:[#allocation3 + $0x8d0] sm:$0xff]  ;;  %1291 = vmatpush.msra.mxu1 %v904_v13  ;;  %1331 = vmatpush.msra.mxu3 %v649_v52  ;;  %v797_v61 = vld [vmem:[#allocation3 + $0x7b8] sm:$0xff] }
 0x100   :  { %v900_v12 = vld [vmem:[#allocation3 + $0xaf0] sm:$0xff]  ;;  %1273 = vmatpush.msra.mxu0 %v832_v10  ;;  %1313 = vmatpush.msra.mxu2 %v577_v15  ;;  %v853_v3 = vld [vmem:[#allocation3 + $0x978] sm:$0xff] }
 0x101   :  { %v828_v0 = vld [vmem:[#allocation3 + $0x8b0] sm:$0xff]  ;;  %1292 = vmatpush.msra.mxu1 %v900_v12  ;;  %1332 = vmatpush.msra.mxu3 %v645_v16  ;;  %v921_v1 = vld [vmem:[#allocation3 + $0xb98] sm:$0xff] }
 0x102   :  { %v896_v17 = vld [vmem:[#allocation3 + $0xad0] sm:$0xff]  ;;  %1274 = vmatpush.msra.mxu0 %v828_v0  ;;  %1314 = vmatpush.msra.mxu2 %v573_v63  ;;  %v725_v2 = vld [vmem:[#allocation3 + $0x578] sm:$0xff] }
 0x103   :  { %v824_v19 = vld [vmem:[#allocation3 + $0x890] sm:$0xff]  ;;  %1293 = vmatpush.msra.mxu1 %v896_v17  ;;  %1333 = vmatpush.msra.mxu3 %v641_v18  ;;  %v793_v32 = vld [vmem:[#allocation3 + $0x798] sm:$0xff] }
 0x104   :  { %v892_v29 = vld [vmem:[#allocation3 + $0xab0] sm:$0xff]  ;;  %1275 = vmatpush.msra.mxu0 %v824_v19  ;;  %1315 = vmatpush.msra.mxu2 %v569_v38  ;;  %v849_v40 = vld [vmem:[#allocation3 + $0x958] sm:$0xff] }
 0x105   :  { %v820_v20 = vld [vmem:[#allocation3 + $0x870] sm:$0xff]  ;;  %1294 = vmatpush.msra.mxu1 %v892_v29  ;;  %1334 = vmatpush.msra.mxu3 %v637_v7  ;;  %v917_v41 = vld [vmem:[#allocation3 + $0xb78] sm:$0xff] }
 0x106   :  { %v888_v21 = vld [vmem:[#allocation3 + $0xa90] sm:$0xff]  ;;  %1276 = vmatpush.msra.mxu0 %v820_v20  ;;  %1316 = vmatpush.msra.mxu2 %v565_v22  ;;  %v721_v33 = vld [vmem:[#allocation3 + $0x558] sm:$0xff] }
 0x107   :  { %v816_v45 = vld [vmem:[#allocation3 + $0x850] sm:$0xff]  ;;  %1295 = vmatpush.msra.mxu1 %v888_v21  ;;  %1335 = vmatpush.msra.mxu3 %v633_v8  ;;  %v789_v34 = vld [vmem:[#allocation3 + $0x778] sm:$0xff] }
 0x108   :  { %v884_v14 = vld [vmem:[#allocation3 + $0xa70] sm:$0xff]  ;;  %1220 = vmatmul.f32.vlgmr.msrb.gmra.mxu1 %v1698_v30  ;;  %1277 = vmatpush.msra.mxu0 %v816_v45  ;;  %v845_v4 = vld [vmem:[#allocation3 + $0x938] sm:$0xff] }
 0x109   :  { %v812_v24 = vld [vmem:[#allocation3 + $0x830] sm:$0xff]  ;;  %1296 = vmatpush.msra.mxu1 %v884_v14  ;;  %1317 = vmatpush.msra.mxu2 %v561_v23  ;;  %v913_v6 = vld [vmem:[#allocation3 + $0xb58] sm:$0xff] }
 0x10a   :  { %v880_v27 = vld [vmem:[#allocation3 + $0xa50] sm:$0xff]  ;;  %1336 = vmatpush.msra.mxu3 %v629_v25  ;;  %1278 = vmatpush.msra.mxu0 %v812_v24  ;;  %v717_v9 = vld [vmem:[#allocation3 + $0x538] sm:$0xff] }
 0x10b   :  { %v808_v36 = vld [vmem:[#allocation3 + $0x810] sm:$0xff]  ;;  %1297 = vmatpush.msra.mxu1 %v880_v27  ;;  %1318 = vmatpush.msra.mxu2 %v557_v28  ;;  %v785_v13 = vld [vmem:[#allocation3 + $0x758] sm:$0xff] }
 0x10c   :  { %v876_v39 = vld [vmem:[#allocation3 + $0xa30] sm:$0xff]  ;;  %1337 = vmatpush.msra.mxu3 %v625_v35  ;;  %1279 = vmatpush.msra.mxu0 %v808_v36  ;;  %v841_v57 = vld [vmem:[#allocation3 + $0x918] sm:$0xff] }
 0x10d   :  { %1298 = vmatpush.msra.mxu1 %v876_v39  ;;  %v872_v46 = vld [vmem:[#allocation3 + $0xa10] sm:$0xff]  ;;  %1319 = vmatpush.msra.mxu2 %v553_v42  ;;  %v909_v52 = vld [vmem:[#allocation3 + $0xb38] sm:$0xff] }
 0x10e   :  { %1338 = vmatpush.msra.mxu3 %v621_v43  ;;  %1280 = vmatmul.f32.vlgmr.msra.gmra.mxu0 %v1774_v5  ;;  %v713_v10 = vld [vmem:[#allocation3 + $0x518] sm:$0xff] }
 0x10f   :  { %1384 = vmatpush.msrb.mxu2 %v869_v44  ;;  %1299 = vmatpush.msra.mxu1 %v872_v46  ;;  %v781_v12 = vld [vmem:[#allocation3 + $0x738] sm:$0xff] }
 0x110   :  { %1339 = vmatpush.msra.mxu3 %v617_v47  ;;  %1300 = vmatmul.f32.vlgmr.msra.gmra.mxu1 %v1786_v26  ;;  %v837_v15 = vld [vmem:[#allocation3 + $0x8f8] sm:$0xff] }
 0x111   :  { %1344 = vmatpush.msrb.mxu0 %v741_v49  ;;  %1385 = vmatpush.msrb.mxu2 %v865_v50  ;;  %v905_v16 = vld [vmem:[#allocation3 + $0xb18] sm:$0xff] }
 0x112   :  { %1404 = vmatpush.msrb.mxu3 %v933_v37  ;;  %1364 = vmatpush.msrb.mxu1 %v805_v53  ;;  %v709_v0 = vld [vmem:[#allocation3 + $0x4f8] sm:$0xff]  ;;  %v981_v53 = vpop.f32.mrf.mxu1 }
 0x113   :  { %1345 = vmatpush.msrb.mxu0 %v737_v51  ;;  %1386 = vmatpush.msrb.mxu2 %v861_v54  ;;  %v777_v17 = vld [vmem:[#allocation3 + $0x718] sm:$0xff]  ;;  %v961_v51 = vpop.f32.mrf.mxu0  ;;  %v1001_v54 = vpop.f32.mrf.mxu2 }
 0x114   :  { %1405 = vmatpush.msrb.mxu3 %v929_v55  ;;  %1365 = vmatpush.msrb.mxu1 %v801_v58  ;;  %v833_v63 = vld [vmem:[#allocation3 + $0x8d8] sm:$0xff] }
 0x115   :  { %1346 = vmatpush.msrb.mxu0 %v733_v56  ;;  %1387 = vmatpush.msrb.mxu2 %v857_v59  ;;  %v901_v18 = vld [vmem:[#allocation3 + $0xaf8] sm:$0xff] }
 0x116   :  { %1406 = vmatpush.msrb.mxu3 %v925_v62  ;;  %1366 = vmatpush.msrb.mxu1 %v797_v61  ;;  %v705_v19 = vld [vmem:[#allocation3 + $0x4d8] sm:$0xff] }
 0x117   :  { %1347 = vmatpush.msrb.mxu0 %v729_v31  ;;  %1388 = vmatpush.msrb.mxu2 %v853_v3  ;;  %v773_v29 = vld [vmem:[#allocation3 + $0x6f8] sm:$0xff]  ;;  %v934_v31 = vld [vmem:[#allocation5] sm:$0xf] }
 0x118   :  { %1407 = vmatpush.msrb.mxu3 %v921_v1  ;;  %1367 = vmatpush.msrb.mxu1 %v793_v32  ;;  %v829_v38 = vld [vmem:[#allocation3 + $0x8b8] sm:$0xff]  ;;  %v937_v3 = vperm.slane %v934_v31, 1  ;;  %v936_v1 = vperm.slane %v934_v31, 0 }
 0x119   :  { %1348 = vmatpush.msrb.mxu0 %v725_v2  ;;  %1389 = vmatpush.msrb.mxu2 %v849_v40  ;;  %v897_v7 = vld [vmem:[#allocation3 + $0xad8] sm:$0xff]  ;;  %v938_v2 = vperm.slane %v934_v31, 2 }
 0x11a   :  { %1408 = vmatpush.msrb.mxu3 %v917_v41  ;;  %1368 = vmatpush.msrb.mxu1 %v789_v34  ;;  %v701_v20 = vld [vmem:[#allocation3 + $0x4b8] sm:$0xff]  ;;  %v962_v40 = vadd.f32 %v961_v51, %v936_v1 }
 0x11b   :  { %1349 = vmatpush.msrb.mxu0 %v721_v33  ;;  %1390 = vmatpush.msrb.mxu2 %v845_v4  ;;  %v769_v21 = vld [vmem:[#allocation3 + $0x6d8] sm:$0xff]  ;;  %v1081_v59 = vpop.f32.mrf.mxu2 }
 0x11c   :  { %1409 = vmatpush.msrb.mxu3 %v913_v6  ;;  %1369 = vmatpush.msrb.mxu1 %v785_v13  ;;  %v825_v22 = vld [vmem:[#allocation3 + $0x898] sm:$0xff]  ;;  %v982_v4 = vadd.f32 %v981_v53, %v962_v40 }
 0x11d   :  { %1350 = vmatpush.msrb.mxu0 %v717_v9  ;;  %1391 = vmatpush.msrb.mxu2 %v841_v57  ;;  %v893_v8 = vld [vmem:[#allocation3 + $0xab8] sm:$0xff] }
 0x11e   :  { %1410 = vmatpush.msrb.mxu3 %v909_v52  ;;  %1370 = vmatpush.msrb.mxu1 %v781_v12  ;;  %v697_v45 = vld [vmem:[#allocation3 + $0x498] sm:$0xff]  ;;  %v1002_v57 = vadd.f32 %v1001_v54, %v982_v4 }
 0x11f   :  { %1351 = vmatpush.msrb.mxu0 %v713_v10  ;;  %1392 = vmatpush.msrb.mxu2 %v837_v15  ;;  %v765_v14 = vld [vmem:[#allocation3 + $0x6b8] sm:$0xff] }
 0x120   :  { %1411 = vmatpush.msrb.mxu3 %v905_v16  ;;  %1371 = vmatpush.msrb.mxu1 %v777_v17  ;;  %v821_v23 = vld [vmem:[#allocation3 + $0x878] sm:$0xff]  ;;  %v939_v16 = vperm.slane %v934_v31, 3 }
 0x121   :  { %1352 = vmatpush.msrb.mxu0 %v709_v0  ;;  %1393 = vmatpush.msrb.mxu2 %v833_v63  ;;  %v889_v25 = vld [vmem:[#allocation3 + $0xa98] sm:$0xff]  ;;  %v1021_v56 = vpop.f32.mrf.mxu3 }
 0x122   :  { %1412 = vmatpush.msrb.mxu3 %v901_v18  ;;  %1372 = vmatpush.msrb.mxu1 %v773_v29  ;;  %v693_v24 = vld [vmem:[#allocation3 + $0x478] sm:$0xff]  ;;  %v1022_v0 = vadd.f32 %v1021_v56, %v1002_v57 }
 0x123   :  { %1353 = vmatpush.msrb.mxu0 %v705_v19  ;;  %1394 = vmatpush.msrb.mxu2 %v829_v38  ;;  %v761_v27 = vld [vmem:[#allocation3 + $0x698] sm:$0xff] }
 0x124   :  { %1413 = vmatpush.msrb.mxu3 %v897_v7  ;;  %1373 = vmatpush.msrb.mxu1 %v769_v21  ;;  %v817_v28 = vld [vmem:[#allocation3 + $0x858] sm:$0xff] }
 0x125   :  { %1354 = vmatpush.msrb.mxu0 %v701_v20  ;;  %1395 = vmatpush.msrb.mxu2 %v825_v22  ;;  %v885_v35 = vld [vmem:[#allocation3 + $0xa78] sm:$0xff] }
 0x126   :  { %1414 = vmatpush.msrb.mxu3 %v893_v8  ;;  %1320 = vmatmul.f32.vlgmr.msra.gmra.mxu2 %v1655_v60  ;;  %v689_v36 = vld [vmem:[#allocation3 + $0x458] sm:$0xff] }
 0x127   :  { %1355 = vmatpush.msrb.mxu0 %v697_v45  ;;  %1374 = vmatpush.msrb.mxu1 %v765_v14  ;;  %v757_v39 = vld [vmem:[#allocation3 + $0x678] sm:$0xff] }
 0x128   :  { %1396 = vmatpush.msrb.mxu2 %v821_v23  ;;  %1415 = vmatpush.msrb.mxu3 %v889_v25  ;;  %v813_v42 = vld [vmem:[#allocation3 + $0x838] sm:$0xff] }
 0x129   :  { %1356 = vmatpush.msrb.mxu0 %v693_v24  ;;  %1340 = vmatmul.f32.vlgmr.msra.gmra.mxu3 %v1698_v30  ;;  %v881_v43 = vld [vmem:[#allocation3 + $0xa58] sm:$0xff] }
 0x12a   :  { %1375 = vmatpush.msrb.mxu1 %v761_v27  ;;  %1397 = vmatpush.msrb.mxu2 %v817_v28  ;;  %v685_v44 = vld [vmem:[#allocation3 + $0x438] sm:$0xff] }
 0x12b   :  { %1416 = vmatpush.msrb.mxu3 %v885_v35  ;;  %v753_v46 = vld [vmem:[#allocation3 + $0x658] sm:$0xff]  ;;  %1357 = vmatpush.msrb.mxu0 %v689_v36  ;;  %v1041_v55 = vpop.f32.mrf.mxu0 }
 0x12c   :  { %1376 = vmatpush.msrb.mxu1 %v757_v39  ;;  %v809_v60 = vld [vmem:[#allocation3 + $0x818] sm:$0xff]  ;;  %1398 = vmatpush.msrb.mxu2 %v813_v42  ;;  %v1042_v38 = vadd.f32 %v1041_v55, %v1022_v0 }
 0x12d   :  { %v877_v47 = vld [vmem:[#allocation3 + $0xa38] sm:$0xff]  ;;  %1417 = vmatpush.msrb.mxu3 %v881_v43  ;;  %1358 = vmatpush.msrb.mxu0 %v685_v44 }
 0x12e   :  { %v681_v49 = vld [vmem:[#allocation3 + $0x418] sm:$0xff]  ;;  %1377 = vmatpush.msrb.mxu1 %v753_v46  ;;  %1399 = vmatpush.msrb.mxu2 %v809_v60 }
 0x12f   :  { %v749_v50 = vld [vmem:[#allocation3 + $0x638] sm:$0xff]  ;;  %1418 = vmatpush.msrb.mxu3 %v877_v47  ;;  %1400 = vmatmul.f32.vlgmr.msrb.gmra.mxu2 %v1774_v5  ;;  %v1101_v5 = vpop.f32.mrf.mxu3 }
 0x130   :  { %v873_v37 = vld [vmem:[#allocation3 + $0xa18] sm:$0xff]  ;;  %1359 = vmatpush.msrb.mxu0 %v681_v49  ;;  %1378 = vmatpush.msrb.mxu1 %v749_v50 }
 0x131   :  { %v745_v30 = vld [vmem:[#allocation3 + $0x618] sm:$0xff]  ;;  %1419 = vmatpush.msrb.mxu3 %v873_v37  ;;  %1360 = vmatmul.f32.vlgmr.msrb.gmra.mxu0 %v1679_v11 }
 0x132   :  { %1420 = vmatmul.f32.vlgmr.msrb.gmra.mxu3 %v1786_v26  ;;  %1379 = vmatpush.msrb.mxu1 %v745_v30  ;;  %v1082_v26 = vadd.f32 %v1081_v59, %v937_v3 }
 0x133   :  { %1380 = vmatmul.f32.vlgmr.msrb.gmra.mxu1 %v1756_v48 }
 0x134   :  { %v1102_v34 = vadd.f32 %v1101_v5, %v1082_v26 }
 0x139   :  { %v1121_v62 = vpop.f32.mrf.mxu0 }
 0x13a   :  { %v1122_v13 = vadd.f32 %v1121_v62, %v1102_v34 }
 0x13b   :  { %v1061_v58 = vpop.f32.mrf.mxu1 }
 0x13c   :  { %v1062_v45 = vadd.f32 %v1061_v58, %v1042_v38 }
 0x13e   :  { %v1424_v35 = vmul.f32 %v1062_v45, %v1062_v45 }
 0x142   :  { %v1161_v11 = vpop.f32.mrf.mxu2 }
 0x145   :  { %v1181_v48 = vpop.f32.mrf.mxu3 }
 0x146   :  { %v1141_v61 = vpop.f32.mrf.mxu1 }
 0x147   :  { %v1142_v12 = vadd.f32 %v1141_v61, %v1122_v13 }
 0x149   :  { %v1162_v18 = vadd.f32 %v1161_v11, %v1142_v12 }
 0x14b   :  { %v1182_v21 = vadd.f32 %v1181_v48, %v1162_v18 }
 0x14d   :  { %v1425_v24 = vmul.f32 %v1182_v21, %v1182_v21 }
 0x14f   :  { %v1428_v44 = vadd.f32 %v1425_v24, %v1424_v35 }
 0x167   :  { %v1201_v32 = vpop.f32.mrf.mxu0 }
 0x168   :  { %v1202_v41 = vadd.f32 %v1201_v32, %v938_v2 }
 0x16f   :  { %v1241_v9 = vpop.f32.mrf.mxu2 }
 0x173   :  { %v1261_v10 = vpop.f32.mrf.mxu3 }
 0x185   :  { %v1221_v33 = vpop.f32.mrf.mxu1 }
 0x186   :  { %v1222_v6 = vadd.f32 %v1221_v33, %v1202_v41 }
 0x188   :  { %v1242_v52 = vadd.f32 %v1241_v9, %v1222_v6 }
 0x18a   :  { %v1262_v17 = vadd.f32 %v1261_v10, %v1242_v52 }
 0x18b   :  { %v1281_v15 = vpop.f32.mrf.mxu0 }
 0x18c   :  { %v1282_v7 = vadd.f32 %v1281_v15, %v1262_v17 }
 0x18d   :  { %v1301_v63 = vpop.f32.mrf.mxu1 }
 0x18e   :  { %v1302_v14 = vadd.f32 %v1301_v63, %v1282_v7 }
 0x190   :  { %v1426_v36 = vmul.f32 %v1302_v14, %v1302_v14 }
 0x192   :  { %v1429_v60 = vadd.f32 %v1428_v44, %v1426_v36 }
 0x1a9   :  { %v1321_v19 = vpop.f32.mrf.mxu2 }
 0x1aa   :  { %v1322_v29 = vadd.f32 %v1321_v19, %v939_v16 }
 0x1ac   :  { %v1341_v20 = vpop.f32.mrf.mxu3 }
 0x1ad   :  { %v1342_v22 = vadd.f32 %v1341_v20, %v1322_v29 }
 0x1ae   :  { %v1361_v8 = vpop.f32.mrf.mxu0 }
 0x1af   :  { %v1362_v23 = vadd.f32 %v1361_v8, %v1342_v22 }
 0x1b0   :  { %v1381_v25 = vpop.f32.mrf.mxu1 }
 0x1b1   :  { %v1382_v27 = vadd.f32 %v1381_v25, %v1362_v23 }
 0x1b2   :  { %v1401_v28 = vpop.f32.mrf.mxu2 }
 0x1b3   :  { %v1402_v39 = vadd.f32 %v1401_v28, %v1382_v27 }
 0x1b5   :  { %v1421_v42 = vpop.f32.mrf.mxu3 }
 0x1b6   :  { %v1422_v43 = vadd.f32 %v1421_v42, %v1402_v39 }
 0x1b8   :  { %v1427_v46 = vmul.f32 %v1422_v43, %v1422_v43 }
 0x1ba   :  { %v1430_v47 = vadd.f32 %v1429_v60, %v1427_v46 }
 0x1bc   :  { %1431 = vadd.xlane.f32.xlu0 %v1430_v47 }
 0x22f   :  { %v1432_v49 = vpop.xlane.xlu0 %1431 }
 0x230   :  { %v1433_v50 = vmax.f32 %v1432_v49, 1e-24 }
 0x232   :  { %1462 = vrsqrt.f32 %v1433_v50  ;;  %vm1440_vm8 = vweird.f32 %v1433_v50 }
 0x238   :  { %v1463_v37 = vpop.eup %1462 }
 0x239   :  { %v1435_v30 = vmul.f32 %v1463_v37, %v1433_v50  ;;  %vm1441_vm7 = vweird.f32 %v1463_v37 }
 0x23a   :  { %vm1442_vm9 = vmor %vm1440_vm8, %vm1441_vm7 }
 0x23b   :  { %v1436_v51 = vmul.f32 %v1463_v37, %v1435_v30 }
 0x23d   :  { %v1437_v53 = vmul.f32 0.5, %v1436_v51 }
 0x23f   :  { %v1438_v54 = vsub.f32 1.5, %v1437_v53 }
 0x241   :  { %v1439_v55 = vmul.f32 %v1463_v37, %v1438_v54 }
 0x243   :  { %v1443_v56 = vsel %vm1442_vm9, %v1463_v37, %v1439_v55 }
 0x244   :  { %v1444_v58 = vmul.f32 %v1443_v56, %v1062_v45  ;;  %v1445_v59 = vmul.f32 %v1443_v56, %v1182_v21  ;;  %v1446_v62 = vmul.f32 %v1443_v56, %v1302_v14  ;;  %v1447_v5 = vmul.f32 %v1443_v56, %v1422_v43 }
 0x246   :  { %1448 = vst [vmem:[%s1819_s3] sm:$0xff] %v1444_v58 }
 0x247   :  { %1449 = vst [vmem:[%s1819_s3 + $0x8] sm:$0xff] %v1445_v59 }
 0x248   :  { %1450 = vst [vmem:[%s1819_s3 + $0x10] sm:$0xff] %v1446_v62 }
 0x249   :  { %1451 = vst [vmem:[%s1819_s3 + $0x18] sm:$0xff] %v1447_v5 }
 0x24a   :  { %1456 = vsyncpa [#allocation4], 1 }
 0x24b   :  { %1457 = vsyncpa [#allocation6], 1 }

// kernel: _joint_forward.2
= control target key start
LH: loop header
LB: loop body
LE: loop exit
PB: predicated region body
PF: predicated region fallthrough
CT: control target
= control target key end

     0   :  { %8 = vsyncpa [#allocation4], 0  ;;  %s3085_s0 = inlined_call_operand.vmem [shape: bf16[8,16,1152], index: 0, kind: input, shape index: {}]   ;;  %s3086_s1 = inlined_call_operand.hbm [shape: f32[1152,512], index: 1, kind: input, shape index: {}]   ;;  %s3087_s2 = inlined_call_operand.hbm [shape: f32[1,512], index: 2, kind: input, shape index: {}]   ;;  %s3088_s3 = inlined_call_operand.vmem [shape: f32[8,512], index: 3, kind: output, shape index: {}]  }
   0x1   :  { %s16_s14 = sshll.u32 %s3086_s1, 4  ;;  %s17_s14 = int_to_ptr.hbm [resolvable:$true] %s16_s14 }
   0x2   :  { %9 = vsyncpa [#allocation6], 0  ;;  %s2382_s15 = smov [#allocation3]   ;;  %s30_s19 = sshll.u32 %s3087_s2, 4  ;;  %s31_s19 = int_to_ptr.hbm [resolvable:$true] %s30_s19 }
   0x3   :  { %s18_s16 = sshll.u32 %s2382_s15, 4  ;;  %s2383_s20 = smov 512   ;;  %s19_s16 = int_to_ptr.vmem [resolvable:$true] %s18_s16 }
   0x4   :  { %s2384_s21 = smov 32   ;;  %s2385_s22 = smov [#allocation5]  }
   0x5   :  { %24 = dma.hbm_to_vmem [thread:$0]  %s17_s14, 73728, %s19_s16, [#allocation4], %s2383_s20, %s2383_s20, %s2384_s21  }
   0x6   :  { %s32_s23 = sshll.u32 %s2385_s22, 4  ;;  %s33_s23 = int_to_ptr.vmem [resolvable:$true] %s32_s23 }
   0x7   :  { %35 = dma.hbm_to_vmem [thread:$0]  %s31_s19, 64, %s33_s23, [#allocation6]  }
   0x8   :  { %2378 = dma.done.wait [#allocation4], 73728  }
   0x9   :  { %2379 = vsyncadd [#allocation4], 4294893568 }
   0xa   :  { %2380 = dma.done.wait [#allocation6], 64  }
   0xb   :  { %2381 = vsyncadd [#allocation6], 4294967232  ;;  %v1044_v0 = vld [vmem:[#allocation3 + $0x1e0] sm:$0xff]  ;;  %vm866_vm0 = vcmask 1041409   ;;  %vm868_vm1 = vcmask 1042434   ;;  %vm870_vm2 = vcmask 1043459  }
   0xc   :  { %v1172_v1 = vld [vmem:[#allocation3 + $0x5e0] sm:$0xff]  ;;  %1570 = vmatpush.msra.mxu0 %v1044_v0  ;;  %vm872_vm3 = vcmask 1044484   ;;  %vm874_vm4 = vcmask 1045509   ;;  %vm876_vm5 = vcmask 1046534   ;;  %vm878_vm6 = vcmask 1047559  }
   0xd   :  { %v1040_v2 = vld [vmem:[#allocation3 + $0x1c0] sm:$0xff]  ;;  %1610 = vmatpush.msra.mxu2 %v1172_v1 }
   0xe   :  { %v1108_v3 = vld [vmem:[#allocation3 + $0x3e0] sm:$0xff]  ;;  %1571 = vmatpush.msra.mxu0 %v1040_v2 }
   0xf   :  { %v1168_v4 = vld [vmem:[#allocation3 + $0x5c0] sm:$0xff]  ;;  %1590 = vmatpush.msra.mxu1 %v1108_v3 }
  0x10   :  { %v1236_v5 = vld [vmem:[#allocation3 + $0x7e0] sm:$0xff]  ;;  %1611 = vmatpush.msra.mxu2 %v1168_v4 }
  0x11   :  { %1630 = vmatpush.msra.mxu3 %v1236_v5  ;;  %v1036_v6 = vld [vmem:[#allocation3 + $0x1a0] sm:$0xff] }
  0x12   :  { %v1104_v7 = vld [vmem:[#allocation3 + $0x3c0] sm:$0xff]  ;;  %1572 = vmatpush.msra.mxu0 %v1036_v6 }
  0x13   :  { %v1164_v8 = vld [vmem:[#allocation3 + $0x5a0] sm:$0xff]  ;;  %1591 = vmatpush.msra.mxu1 %v1104_v7 }
  0x14   :  { %v1232_v9 = vld [vmem:[#allocation3 + $0x7c0] sm:$0xff]  ;;  %1612 = vmatpush.msra.mxu2 %v1164_v8 }
  0x15   :  { %v1100_v10 = vld [vmem:[#allocation3 + $0x3a0] sm:$0xff]  ;;  %1631 = vmatpush.msra.mxu3 %v1232_v9 }
  0x16   :  { %v1032_v11 = vld [vmem:[#allocation3 + $0x180] sm:$0xff]  ;;  %1592 = vmatpush.msra.mxu1 %v1100_v10 }
  0x17   :  { %v1160_v12 = vld [vmem:[#allocation3 + $0x580] sm:$0xff]  ;;  %1573 = vmatpush.msra.mxu0 %v1032_v11 }
  0x18   :  { %v1228_v13 = vld [vmem:[#allocation3 + $0x7a0] sm:$0xff]  ;;  %1613 = vmatpush.msra.mxu2 %v1160_v12 }
  0x19   :  { %v1096_v14 = vld [vmem:[#allocation3 + $0x380] sm:$0xff]  ;;  %1632 = vmatpush.msra.mxu3 %v1228_v13 }
  0x1a   :  { %v1224_v15 = vld [vmem:[#allocation3 + $0x780] sm:$0xff]  ;;  %1593 = vmatpush.msra.mxu1 %v1096_v14 }
  0x1b   :  { %v1028_v16 = vld [vmem:[#allocation3 + $0x160] sm:$0xff]  ;;  %1633 = vmatpush.msra.mxu3 %v1224_v15 }
  0x1c   :  { %v1156_v17 = vld [vmem:[#allocation3 + $0x560] sm:$0xff]  ;;  %1574 = vmatpush.msra.mxu0 %v1028_v16 }
  0x1d   :  { %v1092_v18 = vld [vmem:[#allocation3 + $0x360] sm:$0xff]  ;;  %1614 = vmatpush.msra.mxu2 %v1156_v17 }
  0x1e   :  { %v1220_v19 = vld [vmem:[#allocation3 + $0x760] sm:$0xff]  ;;  %1594 = vmatpush.msra.mxu1 %v1092_v18 }
  0x1f   :  { %v1024_v20 = vld [vmem:[#allocation3 + $0x140] sm:$0xff]  ;;  %1634 = vmatpush.msra.mxu3 %v1220_v19 }
  0x20   :  { %v1152_v21 = vld [vmem:[#allocation3 + $0x540] sm:$0xff]  ;;  %1575 = vmatpush.msra.mxu0 %v1024_v20 }
  0x21   :  { %v1088_v22 = vld [vmem:[#allocation3 + $0x340] sm:$0xff]  ;;  %1615 = vmatpush.msra.mxu2 %v1152_v21 }
  0x22   :  { %v1216_v23 = vld [vmem:[#allocation3 + $0x740] sm:$0xff]  ;;  %1595 = vmatpush.msra.mxu1 %v1088_v22 }
  0x23   :  { %v1020_v24 = vld [vmem:[#allocation3 + $0x120] sm:$0xff]  ;;  %1635 = vmatpush.msra.mxu3 %v1216_v23 }
  0x24   :  { %v1148_v25 = vld [vmem:[#allocation3 + $0x520] sm:$0xff]  ;;  %1576 = vmatpush.msra.mxu0 %v1020_v24 }
  0x25   :  { %v1084_v26 = vld [vmem:[#allocation3 + $0x320] sm:$0xff]  ;;  %1616 = vmatpush.msra.mxu2 %v1148_v25 }
  0x26   :  { %v1212_v27 = vld [vmem:[#allocation3 + $0x720] sm:$0xff]  ;;  %1596 = vmatpush.msra.mxu1 %v1084_v26 }
  0x27   :  { %v1016_v28 = vld [vmem:[#allocation3 + $0x100] sm:$0xff]  ;;  %1636 = vmatpush.msra.mxu3 %v1212_v27 }
  0x28   :  { %v1144_v29 = vld [vmem:[#allocation3 + $0x500] sm:$0xff]  ;;  %1577 = vmatpush.msra.mxu0 %v1016_v28 }
  0x29   :  { %v1080_v30 = vld [vmem:[#allocation3 + $0x300] sm:$0xff]  ;;  %1617 = vmatpush.msra.mxu2 %v1144_v29 }
  0x2a   :  { %v1208_v31 = vld [vmem:[#allocation3 + $0x700] sm:$0xff]  ;;  %1597 = vmatpush.msra.mxu1 %v1080_v30 }
  0x2b   :  { %v1012_v32 = vld [vmem:[#allocation3 + $0xe0] sm:$0xff]  ;;  %1637 = vmatpush.msra.mxu3 %v1208_v31 }
  0x2c   :  { %v1140_v33 = vld [vmem:[#allocation3 + $0x4e0] sm:$0xff]  ;;  %1578 = vmatpush.msra.mxu0 %v1012_v32  ;;  %v2425_v32 = vld [vmem:[%s3085_s0 + $0x48] sm:$0xff] }
  0x2d   :  { %v1076_v34 = vld [vmem:[#allocation3 + $0x2e0] sm:$0xff]  ;;  %1618 = vmatpush.msra.mxu2 %v1140_v33 }
  0x2e   :  { %v1204_v35 = vld [vmem:[#allocation3 + $0x6e0] sm:$0xff]  ;;  %1598 = vmatpush.msra.mxu1 %v1076_v34 }
  0x2f   :  { %v1008_v36 = vld [vmem:[#allocation3 + $0xc0] sm:$0xff]  ;;  %1638 = vmatpush.msra.mxu3 %v1204_v35  ;;  %v2430_v35 = vld [vmem:[%s3085_s0 + $0x6c] sm:$0xff] }
  0x30   :  { %v1136_v37 = vld [vmem:[#allocation3 + $0x4c0] sm:$0xff]  ;;  %1579 = vmatpush.msra.mxu0 %v1008_v36  ;;  %v2435_v36 = vld [vmem:[%s3085_s0 + $0x90] sm:$0xff] }
  0x31   :  { %v1072_v38 = vld [vmem:[#allocation3 + $0x2c0] sm:$0xff]  ;;  %1619 = vmatpush.msra.mxu2 %v1136_v37  ;;  %v2440_v37 = vld [vmem:[%s3085_s0 + $0xb4] sm:$0xff] }
  0x32   :  { %v1200_v39 = vld [vmem:[#allocation3 + $0x6c0] sm:$0xff]  ;;  %1599 = vmatpush.msra.mxu1 %v1072_v38 }
  0x33   :  { %v1004_v40 = vld [vmem:[#allocation3 + $0xa0] sm:$0xff]  ;;  %1639 = vmatpush.msra.mxu3 %v1200_v39 }
  0x34   :  { %v1132_v41 = vld [vmem:[#allocation3 + $0x4a0] sm:$0xff]  ;;  %1580 = vmatpush.msra.mxu0 %v1004_v40  ;;  %v164_v40 = vunpack.c.l.bf16 %v2425_v32 }
  0x35   :  { %v1068_v42 = vld [vmem:[#allocation3 + $0x2a0] sm:$0xff]  ;;  %1620 = vmatpush.msra.mxu2 %v1132_v41 }
  0x36   :  { %v1196_v43 = vld [vmem:[#allocation3 + $0x6a0] sm:$0xff]  ;;  %1600 = vmatpush.msra.mxu1 %v1068_v42 }
  0x37   :  { %v1000_v44 = vld [vmem:[#allocation3 + $0x80] sm:$0xff]  ;;  %1640 = vmatpush.msra.mxu3 %v1196_v43 }
  0x38   :  { %v1128_v45 = vld [vmem:[#allocation3 + $0x480] sm:$0xff]  ;;  %1581 = vmatpush.msra.mxu0 %v1000_v44  ;;  %v2449_v44 = vld [vmem:[%s3085_s0 + $0xd8] sm:$0xff] }
  0x39   :  { %v1064_v46 = vld [vmem:[#allocation3 + $0x280] sm:$0xff]  ;;  %1621 = vmatpush.msra.mxu2 %v1128_v45 }
  0x3a   :  { %v1192_v47 = vld [vmem:[#allocation3 + $0x680] sm:$0xff]  ;;  %1601 = vmatpush.msra.mxu1 %v1064_v46 }
  0x3b   :  { %v996_v48 = vld [vmem:[#allocation3 + $0x60] sm:$0xff]  ;;  %1641 = vmatpush.msra.mxu3 %v1192_v47  ;;  %v173_v47 = vunpack.c.l.bf16 %v2430_v35 }
  0x3c   :  { %v1124_v49 = vld [vmem:[#allocation3 + $0x460] sm:$0xff]  ;;  %1582 = vmatpush.msra.mxu0 %v996_v48  ;;  %v182_v48 = vunpack.c.l.bf16 %v2435_v36 }
  0x3d   :  { %v1060_v50 = vld [vmem:[#allocation3 + $0x260] sm:$0xff]  ;;  %1622 = vmatpush.msra.mxu2 %v1124_v49  ;;  %v191_v49 = vunpack.c.l.bf16 %v2440_v37 }
  0x3e   :  { %v1188_v51 = vld [vmem:[#allocation3 + $0x660] sm:$0xff]  ;;  %1602 = vmatpush.msra.mxu1 %v1060_v50 }
  0x3f   :  { %v992_v52 = vld [vmem:[#allocation3 + $0x40] sm:$0xff]  ;;  %1642 = vmatpush.msra.mxu3 %v1188_v51 }
  0x40   :  { %v1120_v53 = vld [vmem:[#allocation3 + $0x440] sm:$0xff]  ;;  %1583 = vmatpush.msra.mxu0 %v992_v52 }
  0x41   :  { %v1056_v54 = vld [vmem:[#allocation3 + $0x240] sm:$0xff]  ;;  %1623 = vmatpush.msra.mxu2 %v1120_v53  ;;  %v2473_v53 = vld [vmem:[%s3085_s0 + $0x168] sm:$0xff] }
  0x42   :  { %v1184_v55 = vld [vmem:[#allocation3 + $0x640] sm:$0xff]  ;;  %1603 = vmatpush.msra.mxu1 %v1056_v54  ;;  %v2478_v54 = vld [vmem:[%s3085_s0 + $0x18c] sm:$0xff] }
  0x43   :  { %v988_v56 = vld [vmem:[#allocation3 + $0x20] sm:$0xff]  ;;  %1643 = vmatpush.msra.mxu3 %v1184_v55  ;;  %v200_v55 = vunpack.c.l.bf16 %v2449_v44 }
  0x44   :  { %v1116_v57 = vld [vmem:[#allocation3 + $0x420] sm:$0xff]  ;;  %1584 = vmatpush.msra.mxu0 %v988_v56 }
  0x45   :  { %v1052_v58 = vld [vmem:[#allocation3 + $0x220] sm:$0xff]  ;;  %1624 = vmatpush.msra.mxu2 %v1116_v57 }
  0x46   :  { %v1180_v59 = vld [vmem:[#allocation3 + $0x620] sm:$0xff]  ;;  %1604 = vmatpush.msra.mxu1 %v1052_v58 }
  0x47   :  { %v984_v60 = vld [vmem:[#allocation3] sm:$0xff]  ;;  %1644 = vmatpush.msra.mxu3 %v1180_v59  ;;  %v2486_v59 = vld [vmem:[%s3085_s0 + $0x1b0] sm:$0xff] }
  0x48   :  { %v1112_v61 = vld [vmem:[#allocation3 + $0x400] sm:$0xff]  ;;  %1585 = vmatpush.msra.mxu0 %v984_v60  ;;  %v2491_v60 = vld [vmem:[%s3085_s0 + $0x1d4] sm:$0xff] }
  0x49   :  { %v1300_v62 = vld [vmem:[#allocation3 + $0x9e0] sm:$0xff]  ;;  %1625 = vmatpush.msra.mxu2 %v1112_v61  ;;  %v2496_v61 = vld [vmem:[%s3085_s0 + $0x1f8] sm:$0xff] }
  0x4a   :  { %v1428_v63 = vld [vmem:[#allocation3 + $0xde0] sm:$0xff]  ;;  %1650 = vmatpush.msrb.mxu0 %v1300_v62 }
  0x4b   :  { %v1048_v0 = vld [vmem:[#allocation3 + $0x200] sm:$0xff]  ;;  %1690 = vmatpush.msrb.mxu2 %v1428_v63  ;;  %v236_v63 = vunpack.c.l.bf16 %v2473_v53 }
  0x4c   :  { %v1176_v1 = vld [vmem:[#allocation3 + $0x600] sm:$0xff]  ;;  %1605 = vmatpush.msra.mxu1 %v1048_v0  ;;  %v245_v0 = vunpack.c.l.bf16 %v2478_v54 }
  0x4d   :  { %v1296_v2 = vld [vmem:[#allocation3 + $0x9c0] sm:$0xff]  ;;  %1645 = vmatpush.msra.mxu3 %v1176_v1  ;;  %v353_v1 = vadd.f32 %v173_v47, %v164_v40 }
  0x4e   :  { %v1364_v3 = vld [vmem:[#allocation3 + $0xbe0] sm:$0xff]  ;;  %1651 = vmatpush.msrb.mxu0 %v1296_v2 }
  0x4f   :  { %v1424_v4 = vld [vmem:[#allocation3 + $0xdc0] sm:$0xff]  ;;  %1670 = vmatpush.msrb.mxu1 %v1364_v3 }
  0x50   :  { %v1492_v5 = vld [vmem:[#allocation3 + $0xfe0] sm:$0xff]  ;;  %1691 = vmatpush.msrb.mxu2 %v1424_v4  ;;  %v254_v4 = vunpack.c.l.bf16 %v2486_v59 }
  0x51   :  { %v1292_v6 = vld [vmem:[#allocation3 + $0x9a0] sm:$0xff]  ;;  %1710 = vmatpush.msrb.mxu3 %v1492_v5  ;;  %v263_v5 = vunpack.c.l.bf16 %v2491_v60 }
  0x52   :  { %v1360_v7 = vld [vmem:[#allocation3 + $0xbc0] sm:$0xff]  ;;  %1652 = vmatpush.msrb.mxu0 %v1292_v6  ;;  %v272_v6 = vunpack.c.l.bf16 %v2496_v61 }
  0x53   :  { %v1420_v8 = vld [vmem:[#allocation3 + $0xda0] sm:$0xff]  ;;  %1671 = vmatpush.msrb.mxu1 %v1360_v7 }
  0x54   :  { %v1488_v9 = vld [vmem:[#allocation3 + $0xfc0] sm:$0xff]  ;;  %1692 = vmatpush.msrb.mxu2 %v1420_v8  ;;  %v2512_v8 = vld [vmem:[%s3085_s0 + $0x8] sm:$0xff] }
  0x55   :  { %v1288_v10 = vld [vmem:[#allocation3 + $0x980] sm:$0xff]  ;;  %1711 = vmatpush.msrb.mxu3 %v1488_v9 }
  0x56   :  { %v1356_v11 = vld [vmem:[#allocation3 + $0xba0] sm:$0xff]  ;;  %1653 = vmatpush.msrb.mxu0 %v1288_v10 }
  0x57   :  { %v1416_v12 = vld [vmem:[#allocation3 + $0xd80] sm:$0xff]  ;;  %1672 = vmatpush.msrb.mxu1 %v1356_v11 }
  0x58   :  { %v1484_v13 = vld [vmem:[#allocation3 + $0xfa0] sm:$0xff]  ;;  %1693 = vmatpush.msrb.mxu2 %v1416_v12  ;;  %v354_v12 = vrot.slane %v353_v1, 4 }
  0x59   :  { %v1284_v14 = vld [vmem:[#allocation3 + $0x960] sm:$0xff]  ;;  %1712 = vmatpush.msrb.mxu3 %v1484_v13  ;;  %v416_v13 = vadd.f32 %v191_v49, %v182_v48 }
  0x5a   :  { %v1352_v15 = vld [vmem:[#allocation3 + $0xb80] sm:$0xff]  ;;  %1654 = vmatpush.msrb.mxu0 %v1284_v14 }
  0x5b   :  { %v1412_v16 = vld [vmem:[#allocation3 + $0xd60] sm:$0xff]  ;;  %1673 = vmatpush.msrb.mxu1 %v1352_v15 }
  0x5c   :  { %v1480_v17 = vld [vmem:[#allocation3 + $0xf80] sm:$0xff]  ;;  %1694 = vmatpush.msrb.mxu2 %v1412_v16 }
  0x5d   :  { %v1280_v18 = vld [vmem:[#allocation3 + $0x940] sm:$0xff]  ;;  %1713 = vmatpush.msrb.mxu3 %v1480_v17 }
  0x5e   :  { %v1348_v19 = vld [vmem:[#allocation3 + $0xb60] sm:$0xff]  ;;  %1655 = vmatpush.msrb.mxu0 %v1280_v18 }
  0x5f   :  { %v1408_v20 = vld [vmem:[#allocation3 + $0xd40] sm:$0xff]  ;;  %1674 = vmatpush.msrb.mxu1 %v1348_v19  ;;  %v605_v19 = vadd.f32 %v245_v0, %v236_v63 }
  0x60   :  { %v1476_v21 = vld [vmem:[#allocation3 + $0xf60] sm:$0xff]  ;;  %1695 = vmatpush.msrb.mxu2 %v1408_v20  ;;  %v148_v20 = vunpack.c.l.bf16 %v2512_v8 }
  0x61   :  { %v1276_v22 = vld [vmem:[#allocation3 + $0x920] sm:$0xff]  ;;  %1714 = vmatpush.msrb.mxu3 %v1476_v21 }
  0x62   :  { %v1344_v23 = vld [vmem:[#allocation3 + $0xb40] sm:$0xff]  ;;  %1656 = vmatpush.msrb.mxu0 %v1276_v22 }
  0x63   :  { %v1404_v24 = vld [vmem:[#allocation3 + $0xd20] sm:$0xff]  ;;  %1675 = vmatpush.msrb.mxu1 %v1344_v23  ;;  %v355_v23 = vadd.f32 %v354_v12, %v353_v1 }
  0x64   :  { %v1472_v25 = vld [vmem:[#allocation3 + $0xf40] sm:$0xff]  ;;  %1696 = vmatpush.msrb.mxu2 %v1404_v24  ;;  %v417_v24 = vrot.slane %v416_v13, 4 }
  0x65   :  { %v1272_v26 = vld [vmem:[#allocation3 + $0x900] sm:$0xff]  ;;  %1715 = vmatpush.msrb.mxu3 %v1472_v25 }
  0x66   :  { %v1340_v27 = vld [vmem:[#allocation3 + $0xb20] sm:$0xff]  ;;  %1657 = vmatpush.msrb.mxu0 %v1272_v26  ;;  %v668_v26 = vadd.f32 %v263_v5, %v254_v4 }
  0x67   :  { %v1400_v28 = vld [vmem:[#allocation3 + $0xd00] sm:$0xff]  ;;  %1676 = vmatpush.msrb.mxu1 %v1340_v27 }
  0x68   :  { %v1468_v29 = vld [vmem:[#allocation3 + $0xf20] sm:$0xff]  ;;  %1697 = vmatpush.msrb.mxu2 %v1400_v28  ;;  %v669_v48 = vrot.slane %v668_v26, 4 }
  0x69   :  { %v2415_v30 = vld [vmem:[%s3085_s0] sm:$0xff]  ;;  %1716 = vmatpush.msrb.mxu3 %v1468_v29 }
  0x6a   :  { %v2420_v31 = vld [vmem:[%s3085_s0 + $0x24] sm:$0xff]  ;;  %v146_v38 = vunpack.c.l.bf16 %v2415_v30  ;;  %v2454_v45 = vld [vmem:[%s3085_s0 + $0xfc] sm:$0xff] }
  0x6b   :  { %v1268_v33 = vld [vmem:[#allocation3 + $0x8e0] sm:$0xff]  ;;  %v155_v39 = vunpack.c.l.bf16 %v2420_v31  ;;  %v209_v56 = vunpack.c.l.bf16 %v2454_v45 }
  0x6c   :  { %v1336_v34 = vld [vmem:[#allocation3 + $0xb00] sm:$0xff]  ;;  %1658 = vmatpush.msrb.mxu0 %v1268_v33 }
  0x6d   :  { %v1396_v42 = vld [vmem:[#allocation3 + $0xce0] sm:$0xff]  ;;  %v290_v58 = vadd.f32 %v155_v39, %v146_v38  ;;  %1677 = vmatpush.msrb.mxu1 %v1336_v34  ;;  %v479_v14 = vadd.f32 %v209_v56, %v200_v55  ;;  %v606_v34 = vrot.slane %v605_v19, 4 }
  0x6e   :  { %v1464_v43 = vld [vmem:[#allocation3 + $0xf00] sm:$0xff]  ;;  %1698 = vmatpush.msrb.mxu2 %v1396_v42  ;;  %v356_v42 = vrot.slane %v355_v23, 2 }
  0x6f   :  { %v2459_v46 = vld [vmem:[%s3085_s0 + $0x120] sm:$0xff]  ;;  %v291_v7 = vrot.slane %v290_v58, 4  ;;  %1717 = vmatpush.msrb.mxu3 %v1464_v43  ;;  %v480_v25 = vrot.slane %v479_v14, 4  ;;  %v418_v43 = vadd.f32 %v417_v24, %v416_v13 }
  0x70   :  { %v1264_v51 = vld [vmem:[#allocation3 + $0x8c0] sm:$0xff]  ;;  %v218_v57 = vunpack.c.l.bf16 %v2459_v46 }
  0x71   :  { %v2468_v52 = vld [vmem:[%s3085_s0 + $0x144] sm:$0xff]  ;;  %v2504_v3 = vld [vmem:[%s3085_s0 + $0x21c] sm:$0xff]  ;;  %v292_v17 = vadd.f32 %v291_v7, %v290_v58  ;;  %1659 = vmatpush.msrb.mxu0 %v1264_v51  ;;  %v481_v47 = vadd.f32 %v480_v25, %v479_v14  ;;  %v607_v58 = vadd.f32 %v606_v34, %v605_v19  ;;  %v419_v4 = vrot.slane %v418_v43, 2 }
  0x72   :  { %v227_v62 = vunpack.c.l.bf16 %v2468_v52  ;;  %v1332_v2 = vld [vmem:[#allocation3 + $0xae0] sm:$0xff]  ;;  %v281_v11 = vunpack.c.l.bf16 %v2504_v3 }
  0x73   :  { %v1392_v9 = vld [vmem:[#allocation3 + $0xcc0] sm:$0xff]  ;;  %1678 = vmatpush.msrb.mxu1 %v1332_v2  ;;  %v293_v29 = vrot.slane %v292_v17, 2  ;;  %v357_v2 = vadd.f32 %v356_v42, %v355_v23  ;;  %v482_v5 = vrot.slane %v481_v47, 2  ;;  %v608_v13 = vrot.slane %v607_v58, 2 }
  0x74   :  { %v1460_v10 = vld [vmem:[#allocation3 + $0xee0] sm:$0xff]  ;;  %v542_v18 = vadd.f32 %v227_v62, %v218_v57  ;;  %1699 = vmatpush.msrb.mxu2 %v1392_v9  ;;  %v731_v38 = vadd.f32 %v281_v11, %v272_v6  ;;  %v670_v6 = vadd.f32 %v669_v48, %v668_v26 }
  0x75   :  { %v1260_v15 = vld [vmem:[#allocation3 + $0x8a0] sm:$0xff]  ;;  %1718 = vmatpush.msrb.mxu3 %v1460_v10  ;;  %v294_v56 = vadd.f32 %v293_v29, %v292_v17  ;;  %v358_v17 = vrot.slane %v357_v2, 1  ;;  %v483_v19 = vadd.f32 %v482_v5, %v481_v47 }
  0x76   :  { %v1328_v16 = vld [vmem:[#allocation3 + $0xac0] sm:$0xff]  ;;  %v543_v33 = vrot.slane %v542_v18, 4  ;;  %1660 = vmatpush.msrb.mxu0 %v1260_v15  ;;  %v732_v62 = vrot.slane %v731_v38, 4 }
  0x77   :  { %v1388_v21 = vld [vmem:[#allocation3 + $0xca0] sm:$0xff]  ;;  %1679 = vmatpush.msrb.mxu1 %v1328_v16  ;;  %v295_v11 = vrot.slane %v294_v56, 1 }
  0x78   :  { %v1456_v22 = vld [vmem:[#allocation3 + $0xec0] sm:$0xff]  ;;  %1700 = vmatpush.msrb.mxu2 %v1388_v21  ;;  %v544_v57 = vadd.f32 %v543_v33, %v542_v18  ;;  %v733_v14 = vadd.f32 %v732_v62, %v731_v38  ;;  %v420_v18 = vadd.f32 %v419_v4, %v418_v43  ;;  %v671_v21 = vrot.slane %v670_v6, 2  ;;  %v2524_v43 = vld [vmem:[%s3085_s0 + $0x50] sm:$0xff]  ;;  %v2556_v4 = vld [vmem:[%s3085_s0 + $0x128] sm:$0xff] }
  0x79   :  { %v1256_v27 = vld [vmem:[#allocation3 + $0x880] sm:$0xff]  ;;  %1719 = vmatpush.msrb.mxu3 %v1456_v22  ;;  %v2519_v22 = vld [vmem:[%s3085_s0 + $0x2c] sm:$0xff]  ;;  %v296_v26 = vadd.f32 %v295_v11, %v294_v56  ;;  %v359_v38 = vadd.f32 %v358_v17, %v357_v2  ;;  %v166_v11 = vunpack.c.l.bf16 %v2524_v43 }
  0x7a   :  { %v1324_v28 = vld [vmem:[#allocation3 + $0xaa0] sm:$0xff]  ;;  %1661 = vmatpush.msrb.mxu0 %v1256_v27  ;;  %v545_v12 = vrot.slane %v544_v57, 2  ;;  %v734_v29 = vrot.slane %v733_v14, 2  ;;  %v672_v42 = vadd.f32 %v671_v21, %v670_v6 }
  0x7b   :  { %v1384_v39 = vld [vmem:[#allocation3 + $0xc80] sm:$0xff]  ;;  %1680 = vmatpush.msrb.mxu1 %v1324_v28  ;;  %v609_v28 = vadd.f32 %v608_v13, %v607_v58 }
  0x7c   :  { %v1452_v40 = vld [vmem:[#allocation3 + $0xea0] sm:$0xff]  ;;  %1701 = vmatpush.msrb.mxu2 %v1384_v39  ;;  %v546_v27 = vadd.f32 %v545_v12, %v544_v57  ;;  %v421_v39 = vrot.slane %v420_v18, 1  ;;  %v157_v57 = vunpack.c.l.bf16 %v2519_v22 }
  0x7d   :  { %v1252_v49 = vld [vmem:[#allocation3 + $0x860] sm:$0xff]  ;;  %1720 = vmatpush.msrb.mxu3 %v1452_v40  ;;  %v484_v40 = vrot.slane %v483_v19, 1  ;;  %v610_v48 = vrot.slane %v609_v28, 1 }
  0x7e   :  { %v1320_v51 = vld [vmem:[#allocation3 + $0xa80] sm:$0xff]  ;;  %1662 = vmatpush.msrb.mxu0 %v1252_v49  ;;  %v547_v47 = vrot.slane %v546_v27, 1  ;;  %v735_v49 = vadd.f32 %v734_v29, %v733_v14  ;;  %v422_v58 = vadd.f32 %v421_v39, %v420_v18 }
  0x7f   :  { %v1380_v55 = vld [vmem:[#allocation3 + $0xc60] sm:$0xff]  ;;  %1681 = vmatpush.msrb.mxu1 %v1320_v51  ;;  %v2529_v51 = vld [vmem:[%s3085_s0 + $0x74] sm:$0xff]  ;;  %v485_v62 = vadd.f32 %v484_v40, %v483_v19  ;;  %v611_v6 = vadd.f32 %v610_v48, %v609_v28 }
  0x80   :  { %v1448_v63 = vld [vmem:[#allocation3 + $0xe80] sm:$0xff]  ;;  %1702 = vmatpush.msrb.mxu2 %v1380_v55  ;;  %v2534_v55 = vld [vmem:[%s3085_s0 + $0x98] sm:$0xff]  ;;  %v548_v5 = vadd.f32 %v547_v47, %v546_v27  ;;  %v175_v17 = vunpack.c.l.bf16 %v2529_v51 }
  0x81   :  { %v1248_v0 = vld [vmem:[#allocation3 + $0x840] sm:$0xff]  ;;  %1721 = vmatpush.msrb.mxu3 %v1448_v63  ;;  %v673_v63 = vrot.slane %v672_v42, 1  ;;  %v184_v18 = vunpack.c.l.bf16 %v2534_v55 }
  0x82   :  { %v1316_v1 = vld [vmem:[#allocation3 + $0xa60] sm:$0xff]  ;;  %1663 = vmatpush.msrb.mxu0 %v1248_v0  ;;  %v867_v0 = vsel %vm866_vm0, %v359_v38, %v296_v26 }
  0x83   :  { %v1376_v7 = vld [vmem:[#allocation3 + $0xc40] sm:$0xff]  ;;  %1682 = vmatpush.msrb.mxu1 %v1316_v1  ;;  %v674_v13 = vadd.f32 %v673_v63, %v672_v42  ;;  %v869_v14 = vsel %vm868_vm1, %v422_v58, %v867_v0  ;;  %v304_v0 = vadd.f32 %v157_v57, %v148_v20 }
  0x84   :  { %v1444_v9 = vld [vmem:[#allocation3 + $0xe60] sm:$0xff]  ;;  %1703 = vmatpush.msrb.mxu2 %v1376_v7  ;;  %v736_v7 = vrot.slane %v735_v49, 1 }
  0x85   :  { %v1244_v10 = vld [vmem:[#allocation3 + $0x820] sm:$0xff]  ;;  %1722 = vmatpush.msrb.mxu3 %v1444_v9  ;;  %v2561_v9 = vld [vmem:[%s3085_s0 + $0x14c] sm:$0xff] }
  0x86   :  { %v1312_v15 = vld [vmem:[#allocation3 + $0xa40] sm:$0xff]  ;;  %1664 = vmatpush.msrb.mxu0 %v1244_v10  ;;  %v2566_v10 = vld [vmem:[%s3085_s0 + $0x170] sm:$0xff]  ;;  %v737_v21 = vadd.f32 %v736_v7, %v735_v49  ;;  %v229_v38 = vunpack.c.l.bf16 %v2561_v9 }
  0x87   :  { %v1372_v16 = vld [vmem:[#allocation3 + $0xc20] sm:$0xff]  ;;  %1683 = vmatpush.msrb.mxu1 %v1312_v15  ;;  %v2573_v15 = vld [vmem:[%s3085_s0 + $0x194] sm:$0xff]  ;;  %v238_v40 = vunpack.c.l.bf16 %v2566_v10 }
  0x88   :  { %v1440_v23 = vld [vmem:[#allocation3 + $0xe40] sm:$0xff]  ;;  %1704 = vmatpush.msrb.mxu2 %v1372_v16  ;;  %v2578_v16 = vld [vmem:[%s3085_s0 + $0x1b8] sm:$0xff]  ;;  %v247_v42 = vunpack.c.l.bf16 %v2573_v15 }
  0x89   :  { %v1240_v24 = vld [vmem:[#allocation3 + $0x800] sm:$0xff]  ;;  %1723 = vmatpush.msrb.mxu3 %v1440_v23  ;;  %v871_v23 = vsel %vm870_vm2, %v485_v62, %v869_v14  ;;  %v256_v47 = vunpack.c.l.bf16 %v2578_v16 }
  0x8a   :  { %v1308_v25 = vld [vmem:[#allocation3 + $0xa20] sm:$0xff]  ;;  %1665 = vmatpush.msrb.mxu0 %v1240_v24  ;;  %v873_v29 = vsel %vm872_vm3, %v548_v5, %v871_v23  ;;  %v367_v5 = vadd.f32 %v175_v17, %v166_v11 }
  0x8b   :  { %v1368_v33 = vld [vmem:[#allocation3 + $0xc00] sm:$0xff]  ;;  %1684 = vmatpush.msrb.mxu1 %v1308_v25  ;;  %v875_v39 = vsel %vm874_vm4, %v611_v6, %v873_v29 }
  0x8c   :  { %v1436_v34 = vld [vmem:[#allocation3 + $0xe20] sm:$0xff]  ;;  %1705 = vmatpush.msrb.mxu2 %v1368_v33  ;;  %v877_v48 = vsel %vm876_vm5, %v674_v13, %v875_v39  ;;  %v305_v13 = vrot.slane %v304_v0, 4  ;;  %v368_v29 = vrot.slane %v367_v5, 4 }
  0x8d   :  { %v2539_v56 = vld [vmem:[%s3085_s0 + $0xbc] sm:$0xff]  ;;  %v2551_v2 = vld [vmem:[%s3085_s0 + $0x104] sm:$0xff]  ;;  %1724 = vmatpush.msrb.mxu3 %v1436_v34  ;;  %v220_v34 = vunpack.c.l.bf16 %v2556_v4  ;;  %v879_v63 = vsel %vm878_vm6, %v737_v21, %v877_v48 }
  0x8e   :  { %v2546_v1 = vld [vmem:[%s3085_s0 + $0xe0] sm:$0xff]  ;;  %v193_v27 = vunpack.c.l.bf16 %v2539_v56  ;;  %v211_v33 = vunpack.c.l.bf16 %v2551_v2  ;;  %v2615_v7 = vmul.f32 0.0625, %v879_v63  ;;  %v369_v20 = vadd.f32 %v368_v29, %v367_v5 }
  0x8f   :  { %v1304_v12 = vld [vmem:[#allocation3 + $0xa00] sm:$0xff]  ;;  %v202_v28 = vunpack.c.l.bf16 %v2546_v1  ;;  %v556_v14 = vadd.f32 %v229_v38, %v220_v34 }
  0x90   :  { %v1432_v19 = vld [vmem:[#allocation3 + $0xe00] sm:$0xff]  ;;  %1685 = vmatpush.msrb.mxu1 %v1304_v12  ;;  %v430_v6 = vadd.f32 %v193_v27, %v184_v18  ;;  %3107 = vst [vmem:[#allocation12_spill] sm:$0xff] %v2615_v7  ;;  %1586 = vmatmul.f32.vlgmr.msra.gmra.mxu0 %v2615_v7  ;;  %v370_v34 = vrot.slane %v369_v20, 2 }
  0x91   :  { %v2586_v24 = vld [vmem:[%s3085_s0 + $0x1dc] sm:$0xff]  ;;  %v2596_v26 = vld [vmem:[%s3085_s0 + $0x224] sm:$0xff]  ;;  %1725 = vmatpush.msrb.mxu3 %v1432_v19  ;;  %v493_v12 = vadd.f32 %v211_v33, %v202_v28  ;;  %v619_v19 = vadd.f32 %v247_v42, %v238_v40 }
  0x92   :  { %3104 = vst [vmem:[#allocation9_spill] sm:$0xff] %v2586_v24  ;;  %v2591_v25 = vld [vmem:[%s3085_s0 + $0x200] sm:$0xff]  ;;  %v265_v49 = vunpack.c.l.bf16 %v2586_v24  ;;  %v283_v62 = vunpack.c.l.bf16 %v2596_v26  ;;  %v431_v39 = vrot.slane %v430_v6, 4  ;;  %v371_v24 = vadd.f32 %v370_v34, %v369_v20 }
  0x93   :  { %3105 = vst [vmem:[#allocation10_spill] sm:$0xff] %v2591_v25  ;;  %v274_v58 = vunpack.c.l.bf16 %v2591_v25  ;;  %v1556_v23 = vld [vmem:[#allocation3 + $0x11e0] sm:$0xff]  ;;  %v494_v41 = vrot.slane %v493_v12, 4  ;;  %v620_v21 = vrot.slane %v619_v19, 4  ;;  %v306_v25 = vadd.f32 %v305_v13, %v304_v0 }
  0x94   :  { %3106 = vst [vmem:[#allocation11_spill] sm:$0xff] %v2596_v26  ;;  %v682_v50 = vadd.f32 %v265_v49, %v256_v47  ;;  %v557_v26 = vrot.slane %v556_v14, 4  ;;  %v432_v57 = vadd.f32 %v431_v39, %v430_v6  ;;  %1730 = vmatpush.msra.mxu0 %v1556_v23 }
  0x95   :  { %v745_v48 = vadd.f32 %v283_v62, %v274_v58  ;;  %v495_v17 = vadd.f32 %v494_v41, %v493_v12  ;;  %v621_v27 = vadd.f32 %v620_v21, %v619_v19  ;;  %v307_v33 = vrot.slane %v306_v25, 2 }
  0x96   :  { %v683_v11 = vrot.slane %v682_v50, 4  ;;  %v558_v18 = vadd.f32 %v557_v26, %v556_v14  ;;  %v433_v38 = vrot.slane %v432_v57, 2  ;;  %v372_v26 = vrot.slane %v371_v24, 1 }
  0x97   :  { %v746_v28 = vrot.slane %v745_v48, 4  ;;  %v496_v42 = vrot.slane %v495_v17, 2  ;;  %v622_v49 = vrot.slane %v621_v27, 2  ;;  %v308_v7 = vadd.f32 %v307_v33, %v306_v25 }
  0x98   :  { %v684_v40 = vadd.f32 %v683_v11, %v682_v50  ;;  %v559_v47 = vrot.slane %v558_v18, 2  ;;  %v434_v58 = vadd.f32 %v433_v38, %v432_v57  ;;  %v373_v21 = vadd.f32 %v372_v26, %v371_v24 }
  0x99   :  { %v747_v63 = vadd.f32 %v746_v28, %v745_v48  ;;  %v497_v0 = vadd.f32 %v496_v42, %v495_v17  ;;  %v623_v6 = vadd.f32 %v622_v49, %v621_v27  ;;  %v309_v41 = vrot.slane %v308_v7, 1 }
  0x9a   :  { %v685_v62 = vrot.slane %v684_v40, 2  ;;  %v560_v5 = vadd.f32 %v559_v47, %v558_v18  ;;  %v435_v12 = vrot.slane %v434_v58, 1  ;;  %v165_v27 = vunpack.c.h.bf16 %v2425_v32 }
  0x9b   :  { %v748_v23 = vrot.slane %v747_v63, 2  ;;  %v498_v19 = vrot.slane %v497_v0, 1  ;;  %v624_v29 = vrot.slane %v623_v6, 1  ;;  %v310_v39 = vadd.f32 %v309_v41, %v308_v7 }
  0x9c   :  { %v686_v14 = vadd.f32 %v685_v62, %v684_v40  ;;  %v561_v13 = vrot.slane %v560_v5, 1  ;;  %v436_v11 = vadd.f32 %v435_v12, %v434_v58  ;;  %v174_v33 = vunpack.c.h.bf16 %v2430_v35 }
  0x9d   :  { %v749_v50 = vadd.f32 %v748_v23, %v747_v63  ;;  %v499_v25 = vadd.f32 %v498_v19, %v497_v0  ;;  %v625_v57 = vadd.f32 %v624_v29, %v623_v6  ;;  %v887_v18 = vsel %vm866_vm0, %v373_v21, %v310_v39 }
  0x9e   :  { %v687_v48 = vrot.slane %v686_v14, 1  ;;  %v562_v20 = vadd.f32 %v561_v13, %v560_v5  ;;  %v888_v38 = vsel %vm868_vm1, %v436_v11, %v887_v18  ;;  %v183_v40 = vunpack.c.h.bf16 %v2435_v36 }
  0x9f   :  { %v750_v28 = vrot.slane %v749_v50, 1  ;;  %v192_v24 = vunpack.c.h.bf16 %v2440_v37  ;;  %v889_v7 = vsel %vm870_vm2, %v499_v25, %v888_v38  ;;  %v201_v42 = vunpack.c.h.bf16 %v2449_v44 }
  0xa0   :  { %v688_v17 = vadd.f32 %v687_v48, %v686_v14  ;;  %v210_v47 = vunpack.c.h.bf16 %v2454_v45  ;;  %v219_v49 = vunpack.c.h.bf16 %v2459_v46  ;;  %v890_v63 = vsel %vm872_vm3, %v562_v20, %v889_v7 }
  0xa1   :  { %v751_v34 = vadd.f32 %v750_v28, %v749_v50  ;;  %v228_v32 = vunpack.c.h.bf16 %v2468_v52  ;;  %v237_v35 = vunpack.c.h.bf16 %v2473_v53  ;;  %v246_v58 = vunpack.c.h.bf16 %v2478_v54 }
  0xa2   :  { %v891_v36 = vsel %vm874_vm4, %v625_v57, %v890_v63  ;;  %v255_v37 = vunpack.c.h.bf16 %v2486_v59  ;;  %v264_v62 = vunpack.c.h.bf16 %v2491_v60  ;;  %v273_v44 = vunpack.c.h.bf16 %v2496_v61  ;;  %v1109_v60 = vld [vmem:[#allocation3 + $0x3e8] sm:$0xff] }
  0xa3   :  { %v892_v45 = vsel %vm876_vm5, %v688_v17, %v891_v36  ;;  %v282_v46 = vunpack.c.h.bf16 %v2504_v3  ;;  %v3108_v0 = vunpack.c.h.bf16 %v2415_v30  ;;  %v3109_v52 = vunpack.c.h.bf16 %v2420_v31 }
  0xa4   :  { %v360_v53 = vadd.f32 %v174_v33, %v165_v27  ;;  %v893_v54 = vsel %vm878_vm6, %v751_v34, %v892_v45  ;;  %v423_v6 = vadd.f32 %v192_v24, %v183_v40  ;;  %v486_v23 = vadd.f32 %v210_v47, %v201_v42  ;;  %v1552_v45 = vld [vmem:[#allocation3 + $0x11c0] sm:$0xff] }
  0xa5   :  { %v297_v5 = vadd.f32 %v3109_v52, %v3108_v0  ;;  %v549_v41 = vadd.f32 %v228_v32, %v219_v49  ;;  %v2643_v59 = vmul.f32 0.0625, %v893_v54  ;;  %v612_v12 = vadd.f32 %v246_v58, %v237_v35  ;;  %1731 = vmatpush.msra.mxu0 %v1552_v45 }
  0xa6   :  { %v361_v61 = vrot.slane %v360_v53, 4  ;;  %v424_v14 = vrot.slane %v423_v6, 4  ;;  %v487_v19 = vrot.slane %v486_v23, 4  ;;  %v675_v13 = vadd.f32 %v264_v62, %v255_v37 }
  0xa7   :  { %3110 = vst [vmem:[#allocation13_spill] sm:$0xff] %v2643_v59  ;;  %v298_v26 = vrot.slane %v297_v5, 4  ;;  %v550_v3 = vrot.slane %v549_v41, 4  ;;  %1626 = vmatmul.f32.vlgmr.msra.gmra.mxu2 %v2643_v59  ;;  %v613_v29 = vrot.slane %v612_v12, 4  ;;  %v738_v50 = vadd.f32 %v282_v46, %v273_v44  ;;  %v1105_v46 = vld [vmem:[#allocation3 + $0x3c8] sm:$0xff] }
  0xa8   :  { %v362_v31 = vadd.f32 %v361_v61, %v360_v53  ;;  %1770 = vmatpush.msra.mxu2 %v1109_v60  ;;  %v425_v39 = vadd.f32 %v424_v14, %v423_v6  ;;  %v488_v21 = vadd.f32 %v487_v19, %v486_v23  ;;  %v676_v48 = vrot.slane %v675_v13, 4  ;;  %v1548_v60 = vld [vmem:[#allocation3 + $0x11a0] sm:$0xff] }
  0xa9   :  { %v299_v30 = vadd.f32 %v298_v26, %v297_v5  ;;  %v551_v11 = vadd.f32 %v550_v3, %v549_v41  ;;  %v614_v57 = vadd.f32 %v613_v29, %v612_v12  ;;  %v739_v28 = vrot.slane %v738_v50, 4  ;;  %v1101_v26 = vld [vmem:[#allocation3 + $0x3a8] sm:$0xff]  ;;  %1732 = vmatpush.msra.mxu0 %v1548_v60  ;;  %v1544_v29 = vld [vmem:[#allocation3 + $0x1180] sm:$0xff] }
  0xaa   :  { %v363_v20 = vrot.slane %v362_v31, 2  ;;  %v426_v17 = vrot.slane %v425_v39, 2  ;;  %v489_v18 = vrot.slane %v488_v21, 2  ;;  %v677_v33 = vadd.f32 %v676_v48, %v675_v13  ;;  %1771 = vmatpush.msra.mxu2 %v1105_v46 }
  0xab   :  { %v300_v25 = vrot.slane %v299_v30, 2  ;;  %v552_v27 = vrot.slane %v551_v11, 2  ;;  %v615_v40 = vrot.slane %v614_v57, 2  ;;  %v740_v24 = vadd.f32 %v739_v28, %v738_v50  ;;  %v1097_v50 = vld [vmem:[#allocation3 + $0x388] sm:$0xff]  ;;  %1733 = vmatpush.msra.mxu0 %v1544_v29 }
  0xac   :  { %v364_v38 = vadd.f32 %v363_v20, %v362_v31  ;;  %v427_v7 = vadd.f32 %v426_v17, %v425_v39  ;;  %v490_v42 = vadd.f32 %v489_v18, %v488_v21  ;;  %v678_v49 = vrot.slane %v677_v33, 2  ;;  %1772 = vmatpush.msra.mxu2 %v1101_v26 }
  0xad   :  { %v301_v34 = vadd.f32 %v300_v25, %v299_v30  ;;  %v553_v47 = vadd.f32 %v552_v27, %v551_v11  ;;  %v616_v35 = vadd.f32 %v615_v40, %v614_v57  ;;  %v741_v58 = vrot.slane %v740_v24, 2  ;;  %v3111_v27 = vld [vmem:[#allocation9_spill] sm:$0xff] }
  0xae   :  { %v365_v32 = vrot.slane %v364_v38, 1  ;;  %v428_v36 = vrot.slane %v427_v7, 1  ;;  %v491_v37 = vrot.slane %v490_v42, 1  ;;  %v679_v44 = vadd.f32 %v678_v49, %v677_v33  ;;  %1773 = vmatpush.msra.mxu2 %v1097_v50  ;;  %v3112_v33 = vld [vmem:[#allocation10_spill] sm:$0xff] }
  0xaf   :  { %v302_v63 = vrot.slane %v301_v34, 1  ;;  %v554_v62 = vrot.slane %v553_v47, 1  ;;  %v617_v5 = vrot.slane %v616_v35, 1  ;;  %v742_v53 = vadd.f32 %v741_v58, %v740_v24  ;;  %v1041_v58 = vld [vmem:[#allocation3 + $0x1c8] sm:$0xff] }
  0xb0   :  { %v366_v52 = vadd.f32 %v365_v32, %v364_v38  ;;  %v429_v54 = vadd.f32 %v428_v36, %v427_v7  ;;  %v492_v6 = vadd.f32 %v491_v37, %v490_v42  ;;  %v680_v41 = vrot.slane %v679_v44, 1  ;;  %v1045_v7 = vld [vmem:[#allocation3 + $0x1e8] sm:$0xff] }
  0xb1   :  { %v303_v0 = vadd.f32 %v302_v63, %v301_v34  ;;  %v555_v23 = vadd.f32 %v554_v62, %v553_v47  ;;  %v618_v61 = vadd.f32 %v617_v5, %v616_v35  ;;  %v743_v12 = vrot.slane %v742_v53, 1  ;;  %v3113_v34 = vld [vmem:[#allocation11_spill] sm:$0xff]  ;;  %v1037_v5 = vld [vmem:[#allocation3 + $0x1a8] sm:$0xff] }
  0xb2   :  { %v149_v19 = vunpack.c.h.bf16 %v2512_v8  ;;  %v681_v3 = vadd.f32 %v680_v41, %v679_v44  ;;  %v158_v30 = vunpack.c.h.bf16 %v2519_v22  ;;  %v167_v31 = vunpack.c.h.bf16 %v2524_v43 }
  0xb3   :  { %v880_v14 = vsel %vm866_vm0, %v366_v52, %v303_v0  ;;  %v744_v39 = vadd.f32 %v743_v12, %v742_v53  ;;  %v176_v11 = vunpack.c.h.bf16 %v2529_v51  ;;  %v185_v48 = vunpack.c.h.bf16 %v2534_v55 }
  0xb4   :  { %v881_v13 = vsel %vm868_vm1, %v429_v54, %v880_v14  ;;  %v194_v25 = vunpack.c.h.bf16 %v2539_v56  ;;  %v203_v20 = vunpack.c.h.bf16 %v2546_v1  ;;  %v212_v22 = vunpack.c.h.bf16 %v2551_v2 }
  0xb5   :  { %v882_v21 = vsel %vm870_vm2, %v492_v6, %v881_v13  ;;  %v221_v57 = vunpack.c.h.bf16 %v2556_v4  ;;  %v230_v28 = vunpack.c.h.bf16 %v2561_v9  ;;  %v239_v51 = vunpack.c.h.bf16 %v2566_v10 }
  0xb6   :  { %v883_v8 = vsel %vm872_vm3, %v555_v23, %v882_v21  ;;  %v248_v17 = vunpack.c.h.bf16 %v2573_v15  ;;  %v257_v18 = vunpack.c.h.bf16 %v2578_v16  ;;  %v266_v56 = vunpack.c.h.bf16 %v3111_v27  ;;  %v2680_v27 = vld [vmem:[%s3085_s0 + $0x3c] sm:$0xff] }
  0xb7   :  { %v884_v43 = vsel %vm874_vm4, %v618_v61, %v883_v8  ;;  %v275_v2 = vunpack.c.h.bf16 %v3112_v33  ;;  %v284_v38 = vunpack.c.h.bf16 %v3113_v34  ;;  %v311_v40 = vadd.f32 %v158_v30, %v149_v19  ;;  %v1033_v8 = vld [vmem:[#allocation3 + $0x188] sm:$0xff] }
  0xb8   :  { %v885_v55 = vsel %vm876_vm5, %v681_v3, %v884_v43  ;;  %v374_v9 = vadd.f32 %v176_v11, %v167_v31  ;;  %v437_v24 = vadd.f32 %v194_v25, %v185_v48  ;;  %v500_v10 = vadd.f32 %v212_v22, %v203_v20  ;;  %v1540_v48 = vld [vmem:[#allocation3 + $0x1160] sm:$0xff]  ;;  %v1093_v25 = vld [vmem:[#allocation3 + $0x368] sm:$0xff] }
  0xb9   :  { %v886_v1 = vsel %vm878_vm6, %v744_v39, %v885_v55  ;;  %v312_v42 = vrot.slane %v311_v40, 4  ;;  %v563_v47 = vadd.f32 %v230_v28, %v221_v57  ;;  %v626_v15 = vadd.f32 %v248_v17, %v239_v51  ;;  %v2675_v28 = vld [vmem:[%s3085_s0 + $0x18] sm:$0xff]  ;;  %1734 = vmatpush.msra.mxu0 %v1540_v48  ;;  %1774 = vmatpush.msra.mxu2 %v1093_v25  ;;  %v1173_v25 = vld [vmem:[#allocation3 + $0x5e8] sm:$0xff] }
  0xba   :  { %v2669_v4 = vmul.f32 0.0625, %v886_v1  ;;  %v689_v49 = vadd.f32 %v266_v56, %v257_v18  ;;  %v375_v16 = vrot.slane %v374_v9, 4  ;;  %v438_v63 = vrot.slane %v437_v24, 4  ;;  %v2685_v56 = vld [vmem:[%s3085_s0 + $0x60] sm:$0xff] }
  0xbb   :  { %v501_v32 = vrot.slane %v500_v10, 4  ;;  %v752_v35 = vadd.f32 %v284_v38, %v275_v2  ;;  %v313_v36 = vadd.f32 %v312_v42, %v311_v40  ;;  %v564_v37 = vrot.slane %v563_v47, 4  ;;  %v2690_v38 = vld [vmem:[%s3085_s0 + $0x84] sm:$0xff]  ;;  %v2705_v42 = vld [vmem:[%s3085_s0 + $0xf0] sm:$0xff] }
  0xbc   :  { %3114 = vst [vmem:[#allocation9_spill] sm:$0xff] %v2669_v4  ;;  %1606 = vmatmul.f32.vlgmr.msra.gmra.mxu1 %v2669_v4  ;;  %v627_v62 = vrot.slane %v626_v15, 4  ;;  %v690_v44 = vrot.slane %v689_v49, 4  ;;  %v376_v45 = vadd.f32 %v375_v16, %v374_v9  ;;  %v439_v46 = vadd.f32 %v438_v63, %v437_v24  ;;  %v2695_v40 = vld [vmem:[%s3085_s0 + $0xa8] sm:$0xff] }
  0xbd   :  { %1750 = vmatpush.msra.mxu1 %v1045_v7  ;;  %v502_v0 = vadd.f32 %v501_v32, %v500_v10  ;;  %v753_v52 = vrot.slane %v752_v35, 4  ;;  %v314_v53 = vrot.slane %v313_v36, 2  ;;  %v565_v54 = vadd.f32 %v564_v37, %v563_v47  ;;  %v2700_v9 = vld [vmem:[%s3085_s0 + $0xcc] sm:$0xff]  ;;  %v2710_v47 = vld [vmem:[%s3085_s0 + $0x114] sm:$0xff]  ;;  %v2722_v32 = vld [vmem:[%s3085_s0 + $0x15c] sm:$0xff] }
  0xbe   :  { %v628_v6 = vadd.f32 %v627_v62, %v626_v15  ;;  %v691_v23 = vadd.f32 %v690_v44, %v689_v49  ;;  %v377_v41 = vrot.slane %v376_v45, 2  ;;  %v440_v60 = vrot.slane %v439_v46, 2  ;;  %v2715_v15 = vld [vmem:[%s3085_s0 + $0x138] sm:$0xff]  ;;  %v2740_v44 = vld [vmem:[%s3085_s0 + $0x1c8] sm:$0xff] }
  0xbf   :  { %1751 = vmatpush.msra.mxu1 %v1041_v58  ;;  %v503_v26 = vrot.slane %v502_v0, 2  ;;  %v754_v61 = vadd.f32 %v753_v52, %v752_v35  ;;  %v315_v12 = vadd.f32 %v314_v53, %v313_v36  ;;  %v566_v14 = vrot.slane %v565_v54, 2  ;;  %v2727_v35 = vld [vmem:[%s3085_s0 + $0x180] sm:$0xff] }
  0xc0   :  { %v629_v19 = vrot.slane %v628_v6, 2  ;;  %v692_v3 = vrot.slane %v691_v23, 2  ;;  %v378_v13 = vadd.f32 %v377_v41, %v376_v45  ;;  %v441_v30 = vadd.f32 %v440_v60, %v439_v46  ;;  %v2732_v58 = vld [vmem:[%s3085_s0 + $0x1a4] sm:$0xff]  ;;  %v2745_v45 = vld [vmem:[%s3085_s0 + $0x1ec] sm:$0xff] }
  0xc1   :  { %1752 = vmatpush.msra.mxu1 %v1037_v5  ;;  %v504_v31 = vadd.f32 %v503_v26, %v502_v0  ;;  %v755_v29 = vrot.slane %v754_v61, 2  ;;  %v316_v50 = vrot.slane %v315_v12, 1  ;;  %v567_v39 = vadd.f32 %v566_v14, %v565_v54  ;;  %v2750_v46 = vld [vmem:[%s3085_s0 + $0x210] sm:$0xff] }
  0xc2   :  { %v630_v21 = vadd.f32 %v629_v19, %v628_v6  ;;  %v693_v11 = vadd.f32 %v692_v3, %v691_v23  ;;  %v379_v20 = vrot.slane %v378_v13, 1  ;;  %v442_v22 = vrot.slane %v441_v30, 1  ;;  %v2759_v54 = vld [vmem:[%s3085_s0 + $0x234] sm:$0xff] }
  0xc3   :  { %v505_v43 = vrot.slane %v504_v31, 1  ;;  %v756_v57 = vadd.f32 %v755_v29, %v754_v61  ;;  %1753 = vmatpush.msra.mxu1 %v1033_v8  ;;  %v317_v51 = vadd.f32 %v316_v50, %v315_v12  ;;  %v568_v55 = vrot.slane %v567_v39, 1 }
  0xc4   :  { %v631_v17 = vrot.slane %v630_v21, 1  ;;  %v694_v18 = vrot.slane %v693_v11, 1  ;;  %v380_v1 = vadd.f32 %v379_v20, %v378_v13  ;;  %v443_v33 = vadd.f32 %v442_v22, %v441_v30 }
  0xc5   :  { %v506_v2 = vadd.f32 %v505_v43, %v504_v31  ;;  %v757_v34 = vrot.slane %v756_v57, 1  ;;  %v569_v24 = vadd.f32 %v568_v55, %v567_v39  ;;  %v152_v49 = vunpack.c.l.bf16 %v2675_v28 }
  0xc6   :  { %v632_v10 = vadd.f32 %v631_v17, %v630_v21  ;;  %v695_v7 = vadd.f32 %v694_v18, %v693_v11  ;;  %v894_v63 = vsel %vm866_vm0, %v380_v1, %v317_v51  ;;  %v161_v36 = vunpack.c.l.bf16 %v2680_v27  ;;  %v1169_v18 = vld [vmem:[#allocation3 + $0x5c8] sm:$0xff] }
  0xc7   :  { %v758_v16 = vadd.f32 %v757_v34, %v756_v57  ;;  %v170_v37 = vunpack.c.l.bf16 %v2685_v56  ;;  %v895_v62 = vsel %vm868_vm1, %v443_v33, %v894_v63  ;;  %v179_v0 = vunpack.c.l.bf16 %v2690_v38 }
  0xc8   :  { %v188_v52 = vunpack.c.l.bf16 %v2695_v40  ;;  %v197_v5 = vunpack.c.l.bf16 %v2700_v9  ;;  %v896_v53 = vsel %vm870_vm2, %v506_v2, %v895_v62  ;;  %v206_v6 = vunpack.c.l.bf16 %v2705_v42 }
  0xc9   :  { %v215_v23 = vunpack.c.l.bf16 %v2710_v47  ;;  %v224_v41 = vunpack.c.l.bf16 %v2715_v15  ;;  %v897_v60 = vsel %vm872_vm3, %v569_v24, %v896_v53  ;;  %v233_v26 = vunpack.c.l.bf16 %v2722_v32 }
  0xca   :  { %v242_v61 = vunpack.c.l.bf16 %v2727_v35  ;;  %v251_v12 = vunpack.c.l.bf16 %v2732_v58  ;;  %v898_v14 = vsel %vm874_vm4, %v632_v10, %v897_v60  ;;  %v260_v19 = vunpack.c.l.bf16 %v2740_v44 }
  0xcb   :  { %v269_v3 = vunpack.c.l.bf16 %v2745_v45  ;;  %v278_v13 = vunpack.c.l.bf16 %v2750_v46  ;;  %v899_v30 = vsel %vm876_vm5, %v695_v7, %v898_v14  ;;  %v287_v31 = vunpack.c.l.bf16 %v2759_v54 }
  0xcc   :  { %v332_v29 = vadd.f32 %v161_v36, %v152_v49  ;;  %v395_v50 = vadd.f32 %v179_v0, %v170_v37  ;;  %v900_v39 = vsel %vm878_vm6, %v758_v16, %v899_v30  ;;  %v458_v21 = vadd.f32 %v197_v5, %v188_v52  ;;  %v1165_v16 = vld [vmem:[#allocation3 + $0x5a8] sm:$0xff] }
  0xcd   :  { %v521_v11 = vadd.f32 %v215_v23, %v206_v6  ;;  %v584_v48 = vadd.f32 %v233_v26, %v224_v41  ;;  %v2775_v8 = vmul.f32 0.0625, %v900_v39  ;;  %v647_v43 = vadd.f32 %v251_v12, %v242_v61  ;;  %v1161_v26 = vld [vmem:[#allocation3 + $0x588] sm:$0xff] }
  0xce   :  { %v333_v20 = vrot.slane %v332_v29, 4  ;;  %v396_v22 = vrot.slane %v395_v50, 4  ;;  %v459_v57 = vrot.slane %v458_v21, 4  ;;  %v710_v17 = vadd.f32 %v269_v3, %v260_v19 }
  0xcf   :  { %3115 = vst [vmem:[#allocation10_spill] sm:$0xff] %v2775_v8  ;;  %v522_v51 = vrot.slane %v521_v11, 4  ;;  %v585_v55 = vrot.slane %v584_v48, 4  ;;  %1646 = vmatmul.f32.vlgmr.msra.gmra.mxu3 %v2775_v8  ;;  %v648_v2 = vrot.slane %v647_v43, 4  ;;  %v773_v34 = vadd.f32 %v287_v31, %v278_v13 }
  0xd0   :  { %v334_v1 = vadd.f32 %v333_v20, %v332_v29  ;;  %v397_v33 = vadd.f32 %v396_v22, %v395_v50  ;;  %1790 = vmatpush.msra.mxu3 %v1173_v25  ;;  %v460_v24 = vadd.f32 %v459_v57, %v458_v21  ;;  %v711_v49 = vrot.slane %v710_v17, 4  ;;  %v2791_v57 = vld [vmem:[%s3085_s0 + $0x58] sm:$0xff] }
  0xd1   :  { %v523_v10 = vadd.f32 %v522_v51, %v521_v11  ;;  %v586_v7 = vadd.f32 %v585_v55, %v584_v48  ;;  %v649_v37 = vadd.f32 %v648_v2, %v647_v43  ;;  %v774_v62 = vrot.slane %v773_v34, 4  ;;  %v2781_v11 = vld [vmem:[%s3085_s0 + $0x10] sm:$0xff] }
  0xd2   :  { %v335_v63 = vrot.slane %v334_v1, 2  ;;  %v398_v36 = vrot.slane %v397_v33, 2  ;;  %1791 = vmatpush.msra.mxu3 %v1169_v18  ;;  %v461_v0 = vrot.slane %v460_v24, 2  ;;  %v712_v53 = vadd.f32 %v711_v49, %v710_v17  ;;  %v2786_v43 = vld [vmem:[%s3085_s0 + $0x34] sm:$0xff]  ;;  %v2817_v49 = vld [vmem:[%s3085_s0 + $0x10c] sm:$0xff] }
  0xd3   :  { %v524_v52 = vrot.slane %v523_v10, 2  ;;  %v587_v5 = vrot.slane %v586_v7, 2  ;;  %v650_v41 = vrot.slane %v649_v37, 2  ;;  %v775_v60 = vadd.f32 %v774_v62, %v773_v34  ;;  %v2829_v62 = vld [vmem:[%s3085_s0 + $0x154] sm:$0xff] }
  0xd4   :  { %v336_v6 = vadd.f32 %v335_v63, %v334_v1  ;;  %v399_v23 = vadd.f32 %v398_v36, %v397_v33  ;;  %1792 = vmatpush.msra.mxu3 %v1165_v16  ;;  %v462_v61 = vadd.f32 %v461_v0, %v460_v24  ;;  %v713_v19 = vrot.slane %v712_v53, 2  ;;  %v2796_v1 = vld [vmem:[%s3085_s0 + $0x7c] sm:$0xff] }
  0xd5   :  { %v525_v12 = vadd.f32 %v524_v52, %v523_v10  ;;  %v588_v14 = vadd.f32 %v587_v5, %v586_v7  ;;  %v651_v30 = vadd.f32 %v650_v41, %v649_v37  ;;  %v776_v31 = vrot.slane %v775_v60, 2  ;;  %v2801_v33 = vld [vmem:[%s3085_s0 + $0xa0] sm:$0xff]  ;;  %v2812_v7 = vld [vmem:[%s3085_s0 + $0xe8] sm:$0xff]  ;;  %v2824_v37 = vld [vmem:[%s3085_s0 + $0x130] sm:$0xff] }
  0xd6   :  { %v337_v3 = vrot.slane %v336_v6, 1  ;;  %v400_v13 = vrot.slane %v399_v23, 1  ;;  %v463_v29 = vrot.slane %v462_v61, 1  ;;  %v714_v21 = vadd.f32 %v713_v19, %v712_v53  ;;  %1793 = vmatpush.msra.mxu3 %v1161_v26  ;;  %v2807_v10 = vld [vmem:[%s3085_s0 + $0xc4] sm:$0xff]  ;;  %v2834_v0 = vld [vmem:[%s3085_s0 + $0x178] sm:$0xff]  ;;  %v2865_v19 = vld [vmem:[%s3085_s0 + $0x22c] sm:$0xff] }
  0xd7   :  { %v526_v50 = vrot.slane %v525_v12, 1  ;;  %v589_v39 = vrot.slane %v588_v14, 1  ;;  %v652_v20 = vrot.slane %v651_v30, 1  ;;  %v777_v22 = vadd.f32 %v776_v31, %v775_v60  ;;  %v2847_v41 = vld [vmem:[%s3085_s0 + $0x1c0] sm:$0xff]  ;;  %3117 = vst [vmem:[#allocation14_spill] sm:$0xff] %v2865_v19 }
  0xd8   :  { %v338_v48 = vadd.f32 %v337_v3, %v336_v6  ;;  %v401_v25 = vadd.f32 %v400_v13, %v399_v23  ;;  %v464_v51 = vadd.f32 %v463_v29, %v462_v61  ;;  %v715_v18 = vrot.slane %v714_v21, 1  ;;  %v2842_v23 = vld [vmem:[%s3085_s0 + $0x19c] sm:$0xff]  ;;  %v2852_v60 = vld [vmem:[%s3085_s0 + $0x1e4] sm:$0xff] }
  0xd9   :  { %v527_v55 = vadd.f32 %v526_v50, %v525_v12  ;;  %v590_v17 = vadd.f32 %v589_v39, %v588_v14  ;;  %v653_v2 = vadd.f32 %v652_v20, %v651_v30  ;;  %v778_v34 = vrot.slane %v777_v22, 1  ;;  %v2860_v14 = vld [vmem:[%s3085_s0 + $0x208] sm:$0xff] }
  0xda   :  { %v915_v24 = vsel %vm866_vm0, %v401_v25, %v338_v48  ;;  %v150_v16 = vunpack.c.l.bf16 %v2781_v11  ;;  %v716_v63 = vadd.f32 %v715_v18, %v714_v21  ;;  %v159_v52 = vunpack.c.l.bf16 %v2786_v43  ;;  %3116 = vst [vmem:[#allocation11_spill] sm:$0xff] %v2860_v14 }
  0xdb   :  { %v916_v36 = vsel %vm868_vm1, %v464_v51, %v915_v24  ;;  %v168_v5 = vunpack.c.l.bf16 %v2791_v57  ;;  %v779_v53 = vadd.f32 %v778_v34, %v777_v22  ;;  %v177_v26 = vunpack.c.l.bf16 %v2796_v1 }
  0xdc   :  { %v917_v6 = vsel %vm870_vm2, %v527_v55, %v916_v36  ;;  %v186_v61 = vunpack.c.l.bf16 %v2801_v33  ;;  %v195_v3 = vunpack.c.l.bf16 %v2807_v10  ;;  %v204_v13 = vunpack.c.l.bf16 %v2812_v7 }
  0xdd   :  { %v918_v12 = vsel %vm872_vm3, %v590_v17, %v917_v6  ;;  %v213_v30 = vunpack.c.l.bf16 %v2817_v49  ;;  %v222_v29 = vunpack.c.l.bf16 %v2824_v37  ;;  %v231_v50 = vunpack.c.l.bf16 %v2829_v62 }
  0xde   :  { %v919_v31 = vsel %vm874_vm4, %v653_v2, %v918_v12  ;;  %v240_v39 = vunpack.c.l.bf16 %v2834_v0  ;;  %v249_v48 = vunpack.c.l.bf16 %v2842_v23  ;;  %v258_v25 = vunpack.c.l.bf16 %v2847_v41 }
  0xdf   :  { %v920_v21 = vsel %vm876_vm5, %v716_v63, %v919_v31  ;;  %v267_v20 = vunpack.c.l.bf16 %v2852_v60  ;;  %v276_v51 = vunpack.c.l.bf16 %v2860_v14  ;;  %v285_v55 = vunpack.c.l.bf16 %v2865_v19 }
  0xe0   :  { %v921_v22 = vsel %vm878_vm6, %v779_v53, %v920_v21  ;;  %v318_v17 = vadd.f32 %v159_v52, %v150_v16  ;;  %v381_v2 = vadd.f32 %v177_v26, %v168_v5  ;;  %v444_v34 = vadd.f32 %v195_v3, %v186_v61 }
  0xe1   :  { %v2881_v18 = vmul.f32 0.0625, %v921_v22  ;;  %v507_v24 = vadd.f32 %v213_v30, %v204_v13  ;;  %v570_v63 = vadd.f32 %v231_v50, %v222_v29  ;;  %v633_v6 = vadd.f32 %v249_v48, %v240_v39 }
  0xe2   :  { %v319_v36 = vrot.slane %v318_v17, 4  ;;  %v696_v12 = vadd.f32 %v267_v20, %v258_v25  ;;  %v382_v31 = vrot.slane %v381_v2, 4  ;;  %v445_v8 = vrot.slane %v444_v34, 4 }
  0xe3   :  { %3118 = vst [vmem:[#allocation15_spill] sm:$0xff] %v2881_v18  ;;  %1706 = vmatmul.f32.vlgmr.msrb.gmra.mxu2 %v2881_v18  ;;  %v508_v59 = vrot.slane %v507_v24, 4  ;;  %v759_v53 = vadd.f32 %v285_v55, %v276_v51  ;;  %v571_v4 = vrot.slane %v570_v63, 4  ;;  %v634_v14 = vrot.slane %v633_v6, 4 }
  0xe4   :  { %v320_v21 = vadd.f32 %v319_v36, %v318_v17  ;;  %v697_v19 = vrot.slane %v696_v12, 4  ;;  %v383_v16 = vadd.f32 %v382_v31, %v381_v2  ;;  %v446_v52 = vadd.f32 %v445_v8, %v444_v34  ;;  %v1157_v31 = vld [vmem:[#allocation3 + $0x568] sm:$0xff] }
  0xe5   :  { %v509_v22 = vadd.f32 %v508_v59, %v507_v24  ;;  %v760_v5 = vrot.slane %v759_v53, 4  ;;  %v572_v61 = vadd.f32 %v571_v4, %v570_v63  ;;  %v635_v3 = vadd.f32 %v634_v14, %v633_v6  ;;  %v1536_v24 = vld [vmem:[#allocation3 + $0x1140] sm:$0xff]  ;;  %v1029_v4 = vld [vmem:[#allocation3 + $0x168] sm:$0xff]  ;;  %1794 = vmatpush.msra.mxu3 %v1157_v31 }
  0xe6   :  { %v321_v26 = vrot.slane %v320_v21, 2  ;;  %v698_v13 = vadd.f32 %v697_v19, %v696_v12  ;;  %v384_v30 = vrot.slane %v383_v16, 2  ;;  %v447_v29 = vrot.slane %v446_v52, 2  ;;  %v1089_v14 = vld [vmem:[#allocation3 + $0x348] sm:$0xff]  ;;  %1735 = vmatpush.msra.mxu0 %v1536_v24  ;;  %1754 = vmatpush.msra.mxu1 %v1029_v4 }
  0xe7   :  { %v510_v50 = vrot.slane %v509_v22, 2  ;;  %v761_v39 = vadd.f32 %v760_v5, %v759_v53  ;;  %v573_v25 = vrot.slane %v572_v61, 2  ;;  %v636_v20 = vrot.slane %v635_v3, 2  ;;  %1775 = vmatpush.msra.mxu2 %v1089_v14 }
  0xe8   :  { %v322_v48 = vadd.f32 %v321_v26, %v320_v21  ;;  %v699_v51 = vrot.slane %v698_v13, 2  ;;  %v385_v55 = vadd.f32 %v384_v30, %v383_v16  ;;  %v448_v17 = vadd.f32 %v447_v29, %v446_v52 }
  0xe9   :  { %v511_v36 = vadd.f32 %v510_v50, %v509_v22  ;;  %v762_v18 = vrot.slane %v761_v39, 2  ;;  %v574_v8 = vadd.f32 %v573_v25, %v572_v61  ;;  %v637_v59 = vadd.f32 %v636_v20, %v635_v3 }
  0xea   :  { %v323_v2 = vrot.slane %v322_v48, 1  ;;  %v700_v34 = vadd.f32 %v699_v51, %v698_v13  ;;  %v386_v19 = vrot.slane %v385_v55, 1  ;;  %v449_v63 = vrot.slane %v448_v17, 1 }
  0xeb   :  { %v512_v6 = vrot.slane %v511_v36, 1  ;;  %v763_v12 = vadd.f32 %v762_v18, %v761_v39  ;;  %v575_v21 = vrot.slane %v574_v8, 1  ;;  %v638_v16 = vrot.slane %v637_v59, 1 }
  0xec   :  { %v324_v53 = vadd.f32 %v323_v2, %v322_v48  ;;  %v701_v52 = vrot.slane %v700_v34, 1  ;;  %v387_v22 = vadd.f32 %v386_v19, %v385_v55  ;;  %v450_v5 = vadd.f32 %v449_v63, %v448_v17 }
  0xed   :  { %v513_v26 = vadd.f32 %v512_v6, %v511_v36  ;;  %v764_v61 = vrot.slane %v763_v12, 1  ;;  %v576_v3 = vadd.f32 %v575_v21, %v574_v8  ;;  %v639_v13 = vadd.f32 %v638_v16, %v637_v59 }
  0xee   :  { %v702_v30 = vadd.f32 %v701_v52, %v700_v34  ;;  %v153_v29 = vunpack.c.h.bf16 %v2675_v28  ;;  %v901_v18 = vsel %vm866_vm0, %v387_v22, %v324_v53  ;;  %v162_v39 = vunpack.c.h.bf16 %v2680_v27 }
  0xef   :  { %v765_v50 = vadd.f32 %v764_v61, %v763_v12  ;;  %v171_v48 = vunpack.c.h.bf16 %v2685_v56  ;;  %v902_v25 = vsel %vm868_vm1, %v450_v5, %v901_v18  ;;  %v180_v20 = vunpack.c.h.bf16 %v2690_v38 }
  0xf0   :  { %v189_v51 = vunpack.c.h.bf16 %v2695_v40  ;;  %v198_v55 = vunpack.c.h.bf16 %v2700_v9  ;;  %v903_v17 = vsel %vm870_vm2, %v513_v26, %v902_v25  ;;  %v207_v36 = vunpack.c.h.bf16 %v2705_v42 }
  0xf1   :  { %v216_v28 = vunpack.c.h.bf16 %v2710_v47  ;;  %v225_v2 = vunpack.c.h.bf16 %v2715_v15  ;;  %v904_v27 = vsel %vm872_vm3, %v576_v3, %v903_v17  ;;  %v234_v56 = vunpack.c.h.bf16 %v2722_v32 }
  0xf2   :  { %v243_v8 = vunpack.c.h.bf16 %v2727_v35  ;;  %v252_v38 = vunpack.c.h.bf16 %v2732_v58  ;;  %v905_v40 = vsel %vm874_vm4, %v639_v13, %v904_v27  ;;  %v261_v9 = vunpack.c.h.bf16 %v2740_v44 }
  0xf3   :  { %v270_v59 = vunpack.c.h.bf16 %v2745_v45  ;;  %v279_v42 = vunpack.c.h.bf16 %v2750_v46  ;;  %v906_v47 = vsel %vm876_vm5, %v702_v30, %v905_v40  ;;  %v288_v15 = vunpack.c.h.bf16 %v2759_v54 }
  0xf4   :  { %v339_v34 = vadd.f32 %v162_v39, %v153_v29  ;;  %v402_v24 = vadd.f32 %v180_v20, %v171_v48  ;;  %v907_v32 = vsel %vm878_vm6, %v765_v50, %v906_v47  ;;  %v465_v4 = vadd.f32 %v198_v55, %v189_v51  ;;  %v1085_v47 = vld [vmem:[#allocation3 + $0x328] sm:$0xff] }
  0xf5   :  { %v528_v35 = vadd.f32 %v216_v28, %v207_v36  ;;  %v591_v14 = vadd.f32 %v234_v56, %v225_v2  ;;  %v2907_v58 = vmul.f32 0.0625, %v907_v32  ;;  %v654_v44 = vadd.f32 %v252_v38, %v243_v8  ;;  %1776 = vmatpush.msra.mxu2 %v1085_v47 }
  0xf6   :  { %v340_v19 = vrot.slane %v339_v34, 4  ;;  %v403_v63 = vrot.slane %v402_v24, 4  ;;  %v466_v6 = vrot.slane %v465_v4, 4  ;;  %v717_v46 = vadd.f32 %v270_v59, %v261_v9  ;;  %v1532_v59 = vld [vmem:[#allocation3 + $0x1120] sm:$0xff] }
  0xf7   :  { %v529_v45 = vrot.slane %v528_v35, 4  ;;  %v592_v12 = vrot.slane %v591_v14, 4  ;;  %1666 = vmatmul.f32.vlgmr.msrb.gmra.mxu0 %v2907_v58  ;;  %v655_v53 = vrot.slane %v654_v44, 4  ;;  %v780_v21 = vadd.f32 %v288_v15, %v279_v42  ;;  %v1025_v42 = vld [vmem:[#allocation3 + $0x148] sm:$0xff] }
  0xf8   :  { %v341_v31 = vadd.f32 %v340_v19, %v339_v34  ;;  %v404_v54 = vadd.f32 %v403_v63, %v402_v24  ;;  %v467_v16 = vadd.f32 %v466_v6, %v465_v4  ;;  %v718_v5 = vrot.slane %v717_v46, 4  ;;  %1736 = vmatpush.msra.mxu0 %v1532_v59  ;;  %1755 = vmatpush.msra.mxu1 %v1025_v42  ;;  %v1153_v4 = vld [vmem:[#allocation3 + $0x548] sm:$0xff] }
  0xf9   :  { %v530_v52 = vadd.f32 %v529_v45, %v528_v35  ;;  %v593_v22 = vadd.f32 %v592_v12, %v591_v14  ;;  %v656_v3 = vadd.f32 %v655_v53, %v654_v44  ;;  %v781_v13 = vrot.slane %v780_v21, 4  ;;  %v1528_v35 = vld [vmem:[#allocation3 + $0x1100] sm:$0xff]  ;;  %v1021_v14 = vld [vmem:[#allocation3 + $0x128] sm:$0xff]  ;;  %1795 = vmatpush.msra.mxu3 %v1153_v4 }
  0xfa   :  { %v342_v26 = vrot.slane %v341_v31, 2  ;;  %v405_v61 = vrot.slane %v404_v54, 2  ;;  %v468_v30 = vrot.slane %v467_v16, 2  ;;  %v719_v18 = vadd.f32 %v718_v5, %v717_v46  ;;  %v1081_v45 = vld [vmem:[#allocation3 + $0x308] sm:$0xff]  ;;  %v1524_v46 = vld [vmem:[#allocation3 + $0x10e0] sm:$0xff]  ;;  %1737 = vmatpush.msra.mxu0 %v1528_v35  ;;  %1756 = vmatpush.msra.mxu1 %v1021_v14 }
  0xfb   :  { %v531_v29 = vrot.slane %v530_v52, 2  ;;  %v594_v50 = vrot.slane %v593_v22, 2  ;;  %v657_v25 = vrot.slane %v656_v3, 2  ;;  %v782_v20 = vadd.f32 %v781_v13, %v780_v21  ;;  %v1149_v12 = vld [vmem:[#allocation3 + $0x528] sm:$0xff]  ;;  %1777 = vmatpush.msra.mxu2 %v1081_v45  ;;  %v1520_v13 = vld [vmem:[#allocation3 + $0x10c0] sm:$0xff] }
  0xfc   :  { %v343_v39 = vadd.f32 %v342_v26, %v341_v31  ;;  %v406_v48 = vadd.f32 %v405_v61, %v404_v54  ;;  %v469_v51 = vadd.f32 %v468_v30, %v467_v16  ;;  %v720_v36 = vrot.slane %v719_v18, 2  ;;  %v1017_v16 = vld [vmem:[#allocation3 + $0x108] sm:$0xff]  ;;  %1796 = vmatpush.msra.mxu3 %v1149_v12  ;;  %1738 = vmatpush.msra.mxu0 %v1524_v46  ;;  %v1504_v12 = vld [vmem:[#allocation3 + $0x1040] sm:$0xff] }
  0xfd   :  { %v532_v55 = vadd.f32 %v531_v29, %v530_v52  ;;  %v595_v17 = vadd.f32 %v594_v50, %v593_v22  ;;  %v658_v27 = vadd.f32 %v657_v25, %v656_v3  ;;  %v783_v56 = vrot.slane %v782_v20, 2  ;;  %v1077_v52 = vld [vmem:[#allocation3 + $0x2e8] sm:$0xff]  ;;  %1757 = vmatpush.msra.mxu1 %v1017_v16 }
  0xfe   :  { %v344_v28 = vrot.slane %v343_v39, 1  ;;  %v407_v2 = vrot.slane %v406_v48, 1  ;;  %v470_v8 = vrot.slane %v469_v51, 1  ;;  %v721_v9 = vadd.f32 %v720_v36, %v719_v18  ;;  %v1145_v22 = vld [vmem:[#allocation3 + $0x508] sm:$0xff]  ;;  %1778 = vmatpush.msra.mxu2 %v1077_v52  ;;  %1739 = vmatpush.msra.mxu0 %v1520_v13 }
  0xff   :  { %v533_v38 = vrot.slane %v532_v55, 1  ;;  %v596_v40 = vrot.slane %v595_v17, 1  ;;  %v659_v24 = vrot.slane %v658_v27, 1  ;;  %v784_v32 = vadd.f32 %v783_v56, %v782_v20  ;;  %v1013_v30 = vld [vmem:[#allocation3 + $0xe8] sm:$0xff]  ;;  %1797 = vmatpush.msra.mxu3 %v1145_v22  ;;  %v1512_v56 = vld [vmem:[#allocation3 + $0x1080] sm:$0xff] }
 0x100   :  { %v345_v15 = vadd.f32 %v344_v28, %v343_v39  ;;  %v408_v34 = vadd.f32 %v407_v2, %v406_v48  ;;  %v471_v19 = vadd.f32 %v470_v8, %v469_v51  ;;  %v722_v6 = vrot.slane %v721_v9, 1  ;;  %v1073_v39 = vld [vmem:[#allocation3 + $0x2c8] sm:$0xff]  ;;  %v1516_v51 = vld [vmem:[#allocation3 + $0x10a0] sm:$0xff]  ;;  %1758 = vmatpush.msra.mxu1 %v1013_v30  ;;  %v3119_v8 = vld [vmem:[#allocation11_spill] sm:$0xff] }
 0x101   :  { %v534_v63 = vadd.f32 %v533_v38, %v532_v55  ;;  %v597_v44 = vadd.f32 %v596_v40, %v595_v17  ;;  %v660_v31 = vadd.f32 %v659_v24, %v658_v27  ;;  %v785_v54 = vrot.slane %v784_v32, 1  ;;  %v1141_v48 = vld [vmem:[#allocation3 + $0x4e8] sm:$0xff]  ;;  %1779 = vmatpush.msra.mxu2 %v1073_v39  ;;  %1740 = vmatpush.msra.mxu0 %v1516_v51 }
 0x102   :  { %v922_v53 = vsel %vm866_vm0, %v408_v34, %v345_v15  ;;  %v151_v21 = vunpack.c.h.bf16 %v2781_v11  ;;  %v723_v5 = vadd.f32 %v722_v6, %v721_v9  ;;  %v160_v61 = vunpack.c.h.bf16 %v2786_v43  ;;  %v1009_v55 = vld [vmem:[#allocation3 + $0xc8] sm:$0xff]  ;;  %1798 = vmatpush.msra.mxu3 %v1141_v48  ;;  %v1508_v15 = vld [vmem:[#allocation3 + $0x1060] sm:$0xff] }
 0x103   :  { %v923_v26 = vsel %vm868_vm1, %v471_v19, %v922_v53  ;;  %v169_v3 = vunpack.c.h.bf16 %v2791_v57  ;;  %v786_v29 = vadd.f32 %v785_v54, %v784_v32  ;;  %v178_v11 = vunpack.c.h.bf16 %v2796_v1  ;;  %v1069_v28 = vld [vmem:[#allocation3 + $0x2a8] sm:$0xff]  ;;  %1759 = vmatpush.msra.mxu1 %v1009_v55  ;;  %1741 = vmatpush.msra.mxu0 %v1512_v56 }
 0x104   :  { %v924_v50 = vsel %vm870_vm2, %v534_v63, %v923_v26  ;;  %v187_v18 = vunpack.c.h.bf16 %v2801_v33  ;;  %v196_v43 = vunpack.c.h.bf16 %v2807_v10  ;;  %v205_v57 = vunpack.c.h.bf16 %v2812_v7  ;;  %v1137_v10 = vld [vmem:[#allocation3 + $0x4c8] sm:$0xff]  ;;  %1780 = vmatpush.msra.mxu2 %v1069_v28 }
 0x105   :  { %v925_v25 = vsel %vm872_vm3, %v597_v44, %v924_v50  ;;  %v214_v20 = vunpack.c.h.bf16 %v2817_v49  ;;  %v223_v33 = vunpack.c.h.bf16 %v2824_v37  ;;  %v232_v17 = vunpack.c.h.bf16 %v2829_v62  ;;  %v1005_v37 = vld [vmem:[#allocation3 + $0xa8] sm:$0xff]  ;;  %1799 = vmatpush.msra.mxu3 %v1137_v10  ;;  %1742 = vmatpush.msra.mxu0 %v1508_v15  ;;  %v2959_v15 = vld [vmem:[%s3085_s0 + $0xb0] sm:$0xf] }
 0x106   :  { %v926_v1 = vsel %vm874_vm4, %v660_v31, %v925_v25  ;;  %v241_v36 = vunpack.c.h.bf16 %v2834_v0  ;;  %v250_v49 = vunpack.c.h.bf16 %v2842_v23  ;;  %v259_v2 = vunpack.c.h.bf16 %v2847_v41  ;;  %v3120_v38 = vld [vmem:[#allocation14_spill] sm:$0xff]  ;;  %1760 = vmatpush.msra.mxu1 %v1005_v37 }
 0x107   :  { %v927_v7 = vsel %vm876_vm5, %v723_v5, %v926_v1  ;;  %v268_v27 = vunpack.c.h.bf16 %v2852_v60  ;;  %v277_v0 = vunpack.c.h.bf16 %v3119_v8  ;;  %v286_v40 = vunpack.c.h.bf16 %v3120_v38  ;;  %v1065_v59 = vld [vmem:[#allocation3 + $0x288] sm:$0xff]  ;;  %1743 = vmatpush.msra.mxu0 %v1504_v12 }
 0x108   :  { %v928_v62 = vsel %vm878_vm6, %v786_v29, %v927_v7  ;;  %v325_v9 = vadd.f32 %v160_v61, %v151_v21  ;;  %v388_v23 = vadd.f32 %v178_v11, %v169_v3  ;;  %v451_v41 = vadd.f32 %v196_v43, %v187_v18  ;;  %v1133_v60 = vld [vmem:[#allocation3 + $0x4a8] sm:$0xff]  ;;  %1781 = vmatpush.msra.mxu2 %v1065_v59  ;;  %v1500_v3 = vld [vmem:[#allocation3 + $0x1020] sm:$0xff] }
 0x109   :  { %v2933_v42 = vmul.f32 0.0625, %v928_v62  ;;  %v514_v47 = vadd.f32 %v214_v20, %v205_v57  ;;  %v577_v24 = vadd.f32 %v232_v17, %v223_v33  ;;  %v640_v32 = vadd.f32 %v250_v49, %v241_v36  ;;  %v1001_v35 = vld [vmem:[#allocation3 + $0x88] sm:$0xff]  ;;  %1800 = vmatpush.msra.mxu3 %v1133_v60  ;;  %v1496_v20 = vld [vmem:[#allocation3 + $0x1000] sm:$0xff]  ;;  %1744 = vmatpush.msra.mxu0 %v1500_v3 }
 0x10a   :  { %v326_v34 = vrot.slane %v325_v9, 4  ;;  %v703_v4 = vadd.f32 %v268_v27, %v259_v2  ;;  %v1061_v14 = vld [vmem:[#allocation3 + $0x268] sm:$0xff]  ;;  %v389_v19 = vrot.slane %v388_v23, 4  ;;  %v452_v63 = vrot.slane %v451_v41, 4  ;;  %1761 = vmatpush.msra.mxu1 %v1001_v35  ;;  %v2939_v27 = vld [vmem:[%s3085_s0 + $0x20] sm:$0xf] }
 0x10b   :  { %1726 = vmatmul.f32.vlgmr.msrb.gmra.mxu3 %v2933_v42  ;;  %v515_v44 = vrot.slane %v514_v47, 4  ;;  %v766_v6 = vadd.f32 %v286_v40, %v277_v0  ;;  %v1129_v45 = vld [vmem:[#allocation3 + $0x488] sm:$0xff]  ;;  %v578_v31 = vrot.slane %v577_v24, 4  ;;  %v641_v54 = vrot.slane %v640_v32, 4  ;;  %1782 = vmatpush.msra.mxu2 %v1061_v14  ;;  %v2944_v0 = vld [vmem:[%s3085_s0 + $0x44] sm:$0xf] }
 0x10c   :  { %v327_v46 = vadd.f32 %v326_v34, %v325_v9  ;;  %v704_v53 = vrot.slane %v703_v4, 4  ;;  %v997_v21 = vld [vmem:[#allocation3 + $0x68] sm:$0xff]  ;;  %v390_v52 = vadd.f32 %v389_v19, %v388_v23  ;;  %v453_v22 = vadd.f32 %v452_v63, %v451_v41  ;;  %1801 = vmatpush.msra.mxu3 %v1129_v45  ;;  %1745 = vmatpush.msra.mxu0 %v1496_v20  ;;  %v2964_v34 = vld [vmem:[%s3085_s0 + $0xd4] sm:$0xf]  ;;  %v2979_v45 = vld [vmem:[%s3085_s0 + $0x140] sm:$0xf] }
 0x10d   :  { %v1057_v16 = vld [vmem:[#allocation3 + $0x248] sm:$0xff]  ;;  %v516_v5 = vadd.f32 %v515_v44, %v514_v47  ;;  %v767_v26 = vrot.slane %v766_v6, 4  ;;  %v579_v30 = vadd.f32 %v578_v31, %v577_v24  ;;  %v642_v29 = vadd.f32 %v641_v54, %v640_v32  ;;  %1762 = vmatpush.msra.mxu1 %v997_v21  ;;  %v2969_v44 = vld [vmem:[%s3085_s0 + $0xf8] sm:$0xf] }
 0x10e   :  { %v1125_v61 = vld [vmem:[#allocation3 + $0x468] sm:$0xff]  ;;  %v328_v13 = vrot.slane %v327_v46, 2  ;;  %v705_v50 = vadd.f32 %v704_v53, %v703_v4  ;;  %v391_v39 = vrot.slane %v390_v52, 2  ;;  %v454_v48 = vrot.slane %v453_v22, 2  ;;  %1783 = vmatpush.msra.mxu2 %v1057_v16  ;;  %v2984_v16 = vld [vmem:[%s3085_s0 + $0x164] sm:$0xf] }
 0x10f   :  { %v993_v11 = vld [vmem:[#allocation3 + $0x48] sm:$0xff]  ;;  %v517_v25 = vrot.slane %v516_v5, 2  ;;  %v768_v43 = vadd.f32 %v767_v26, %v766_v6  ;;  %v580_v55 = vrot.slane %v579_v30, 2  ;;  %v643_v1 = vrot.slane %v642_v29, 2  ;;  %1802 = vmatpush.msra.mxu3 %v1125_v61  ;;  %v2974_v6 = vld [vmem:[%s3085_s0 + $0x11c] sm:$0xf] }
 0x110   :  { %v1053_v18 = vld [vmem:[#allocation3 + $0x228] sm:$0xff]  ;;  %v329_v51 = vadd.f32 %v328_v13, %v327_v46  ;;  %v706_v33 = vrot.slane %v705_v50, 2  ;;  %v392_v28 = vadd.f32 %v391_v39, %v390_v52  ;;  %v455_v10 = vadd.f32 %v454_v48, %v453_v22  ;;  %1763 = vmatpush.msra.mxu1 %v993_v11  ;;  %v135_v39 = vld [vmem:[%s3085_s0 + $0x1f4] sm:$0xf]  ;;  %v3012_v20 = vld [vmem:[%s3085_s0 + $0x218] sm:$0xf] }
 0x111   :  { %v1121_v57 = vld [vmem:[#allocation3 + $0x448] sm:$0xff]  ;;  %v518_v7 = vadd.f32 %v517_v25, %v516_v5  ;;  %v769_v49 = vrot.slane %v768_v43, 2  ;;  %1784 = vmatpush.msra.mxu2 %v1053_v18  ;;  %v581_v37 = vadd.f32 %v580_v55, %v579_v30  ;;  %v644_v62 = vadd.f32 %v643_v1, %v642_v29  ;;  %v3001_v18 = vld [vmem:[%s3085_s0 + $0x1d0] sm:$0xf] }
 0x112   :  { %v989_v17 = vld [vmem:[#allocation3 + $0x28] sm:$0xff]  ;;  %v330_v56 = vrot.slane %v329_v51, 1  ;;  %v707_v8 = vadd.f32 %v706_v33, %v705_v50  ;;  %1803 = vmatpush.msra.mxu3 %v1121_v57  ;;  %v393_v59 = vrot.slane %v392_v28, 1  ;;  %v456_v23 = vrot.slane %v455_v10, 1 }
 0x113   :  { %v1049_v36 = vld [vmem:[#allocation3 + $0x208] sm:$0xff]  ;;  %v519_v41 = vrot.slane %v518_v7, 1  ;;  %v770_v47 = vadd.f32 %v769_v49, %v768_v43  ;;  %1764 = vmatpush.msra.mxu1 %v989_v17  ;;  %v582_v14 = vrot.slane %v581_v37, 1  ;;  %v645_v19 = vrot.slane %v644_v62, 1 }
 0x114   :  { %v1117_v2 = vld [vmem:[#allocation3 + $0x428] sm:$0xff]  ;;  %1785 = vmatpush.msra.mxu2 %v1049_v36  ;;  %v331_v35 = vadd.f32 %v330_v56, %v329_v51  ;;  %v708_v63 = vrot.slane %v707_v8, 1  ;;  %v394_v31 = vadd.f32 %v393_v59, %v392_v28  ;;  %v457_v54 = vadd.f32 %v456_v23, %v455_v10  ;;  %v145_v10 = vld [vmem:[%s3085_s0 + $0x23c] sm:$0xf] }
 0x115   :  { %v2949_v38 = vld [vmem:[%s3085_s0 + $0x68] sm:$0xf]  ;;  %v2954_v60 = vld [vmem:[%s3085_s0 + $0x8c] sm:$0xf]  ;;  %1804 = vmatpush.msra.mxu3 %v1117_v2  ;;  %v520_v53 = vadd.f32 %v519_v41, %v518_v7  ;;  %v771_v21 = vrot.slane %v770_v47, 1  ;;  %v583_v5 = vadd.f32 %v582_v14, %v581_v37  ;;  %v646_v26 = vadd.f32 %v645_v19, %v644_v62 }
 0x116   :  { %v1237_v40 = vld [vmem:[#allocation3 + $0x7e8] sm:$0xff]  ;;  %v709_v61 = vadd.f32 %v708_v63, %v707_v8  ;;  %v154_v13 = vunpack.c.l.bf16 %v2939_v27  ;;  %v908_v11 = vsel %vm866_vm0, %v394_v31, %v331_v35  ;;  %v163_v48 = vunpack.c.l.bf16 %v2944_v0 }
 0x117   :  { %v1365_v9 = vld [vmem:[#allocation3 + $0xbe8] sm:$0xff]  ;;  %1810 = vmatpush.msrb.mxu0 %v1237_v40  ;;  %v772_v50 = vadd.f32 %v771_v21, %v770_v47  ;;  %v172_v25 = vunpack.c.l.bf16 %v2949_v38  ;;  %v909_v57 = vsel %vm868_vm1, %v457_v54, %v908_v11  ;;  %v181_v51 = vunpack.c.l.bf16 %v2954_v60 }
 0x118   :  { %v985_v24 = vld [vmem:[#allocation3 + $0x8] sm:$0xff]  ;;  %1850 = vmatpush.msrb.mxu2 %v1365_v9  ;;  %v190_v55 = vunpack.c.l.bf16 %v2959_v15  ;;  %v199_v1 = vunpack.c.l.bf16 %v2964_v34  ;;  %v910_v28 = vsel %vm870_vm2, %v520_v53, %v909_v57  ;;  %v208_v7 = vunpack.c.l.bf16 %v2969_v44 }
 0x119   :  { %v1113_v32 = vld [vmem:[#allocation3 + $0x408] sm:$0xff]  ;;  %1765 = vmatpush.msra.mxu1 %v985_v24  ;;  %v217_v49 = vunpack.c.l.bf16 %v2974_v6  ;;  %v226_v2 = vunpack.c.l.bf16 %v2979_v45  ;;  %v911_v56 = vsel %vm872_vm3, %v583_v5, %v910_v28  ;;  %v235_v37 = vunpack.c.l.bf16 %v2984_v16 }
 0x11a   :  { %v1233_v4 = vld [vmem:[#allocation3 + $0x7c8] sm:$0xff]  ;;  %1805 = vmatpush.msra.mxu3 %v1113_v32  ;;  %v912_v40 = vsel %vm874_vm4, %v646_v26, %v911_v56  ;;  %v262_v9 = vunpack.c.l.bf16 %v3001_v18  ;;  %v271_v59 = vunpack.c.l.bf16 %v135_v39  ;;  %v280_v23 = vunpack.c.l.bf16 %v3012_v20 }
 0x11b   :  { %v1361_v12 = vld [vmem:[#allocation3 + $0xbc8] sm:$0xff]  ;;  %1811 = vmatpush.msrb.mxu0 %v1233_v4  ;;  %v913_v60 = vsel %vm876_vm5, %v709_v61, %v912_v40  ;;  %v289_v15 = vunpack.c.l.bf16 %v145_v10  ;;  %v346_v34 = vadd.f32 %v163_v48, %v154_v13  ;;  %v409_v24 = vadd.f32 %v181_v51, %v172_v25 }
 0x11c   :  { %v1429_v46 = vld [vmem:[#allocation3 + $0xde8] sm:$0xff]  ;;  %1851 = vmatpush.msrb.mxu2 %v1361_v12  ;;  %v914_v4 = vsel %vm878_vm6, %v772_v50, %v913_v60  ;;  %v472_v35 = vadd.f32 %v199_v1, %v190_v55  ;;  %v535_v14 = vadd.f32 %v217_v49, %v208_v7  ;;  %v598_v19 = vadd.f32 %v235_v37, %v226_v2 }
 0x11d   :  { %v2989_v52 = vld [vmem:[%s3085_s0 + $0x188] sm:$0xf]  ;;  %v2994_v3 = vld [vmem:[%s3085_s0 + $0x1ac] sm:$0xf]  ;;  %1870 = vmatpush.msrb.mxu3 %v1429_v46  ;;  %v3035_v44 = vmul.f32 0.0625, %v914_v4  ;;  %v347_v6 = vrot.slane %v346_v34, 4  ;;  %v724_v16 = vadd.f32 %v271_v59, %v262_v9 }
 0x11e   :  { %v1229_v22 = vld [vmem:[#allocation3 + $0x7a8] sm:$0xff]  ;;  %v244_v62 = vunpack.c.l.bf16 %v2989_v52  ;;  %v253_v8 = vunpack.c.l.bf16 %v2994_v3  ;;  %v410_v45 = vrot.slane %v409_v24, 4  ;;  %v473_v54 = vrot.slane %v472_v35, 4 }
 0x11f   :  { %v1357_v30 = vld [vmem:[#allocation3 + $0xba8] sm:$0xff]  ;;  %1812 = vmatpush.msrb.mxu0 %v1229_v22  ;;  %v536_v53 = vrot.slane %v535_v14, 4  ;;  %v599_v21 = vrot.slane %v598_v19, 4  ;;  %1686 = vmatmul.f32.vlgmr.msrb.gmra.mxu1 %v3035_v44  ;;  %v348_v5 = vadd.f32 %v347_v6, %v346_v34  ;;  %v787_v3 = vadd.f32 %v289_v15, %v280_v23 }
 0x120   :  { %v1425_v29 = vld [vmem:[#allocation3 + $0xdc8] sm:$0xff]  ;;  %1852 = vmatpush.msrb.mxu2 %v1357_v30  ;;  %v661_v12 = vadd.f32 %v253_v8, %v244_v62  ;;  %v411_v26 = vadd.f32 %v410_v45, %v409_v24  ;;  %v725_v18 = vrot.slane %v724_v16, 4 }
 0x121   :  { %v1225_v43 = vld [vmem:[#allocation3 + $0x788] sm:$0xff]  ;;  %1871 = vmatpush.msrb.mxu3 %v1425_v29  ;;  %v474_v29 = vadd.f32 %v473_v54, %v472_v35  ;;  %v537_v50 = vadd.f32 %v536_v53, %v535_v14  ;;  %v600_v11 = vadd.f32 %v599_v21, %v598_v19  ;;  %v349_v25 = vrot.slane %v348_v5, 2 }
 0x122   :  { %v1353_v33 = vld [vmem:[#allocation3 + $0xb88] sm:$0xff]  ;;  %1813 = vmatpush.msrb.mxu0 %v1225_v43  ;;  %v662_v61 = vrot.slane %v661_v12, 4  ;;  %v412_v43 = vrot.slane %v411_v26, 2  ;;  %v788_v20 = vrot.slane %v787_v3, 4  ;;  %v726_v28 = vadd.f32 %v725_v18, %v724_v16 }
 0x123   :  { %v1421_v17 = vld [vmem:[#allocation3 + $0xda8] sm:$0xff]  ;;  %1853 = vmatpush.msrb.mxu2 %v1353_v33  ;;  %v475_v1 = vrot.slane %v474_v29, 2  ;;  %v538_v33 = vrot.slane %v537_v50, 2  ;;  %v350_v49 = vadd.f32 %v349_v25, %v348_v5 }
 0x124   :  { %v3121_v36 = vld [vmem:[#allocation9_spill] sm:$0xff]  ;;  %1872 = vmatpush.msrb.mxu3 %v1421_v17  ;;  %v663_v57 = vadd.f32 %v662_v61, %v661_v12  ;;  %v601_v17 = vrot.slane %v600_v11, 2  ;;  %v413_v2 = vadd.f32 %v412_v43, %v411_v26  ;;  %v789_v56 = vadd.f32 %v788_v20, %v787_v3 }
 0x125   :  { %1786 = vmatmul.f32.vlgmr.msra.gmra.mxu2 %v3121_v36  ;;  %v1221_v27 = vld [vmem:[#allocation3 + $0x768] sm:$0xff]  ;;  %v476_v8 = vadd.f32 %v475_v1, %v474_v29  ;;  %v727_v9 = vrot.slane %v726_v28, 2 }
 0x126   :  { %v1349_v0 = vld [vmem:[#allocation3 + $0xb68] sm:$0xff]  ;;  %1814 = vmatpush.msrb.mxu0 %v1221_v27  ;;  %v664_v27 = vrot.slane %v663_v57, 2  ;;  %v602_v40 = vadd.f32 %v601_v17, %v600_v11  ;;  %v790_v15 = vrot.slane %v789_v56, 2 }
 0x127   :  { %v3122_v38 = vld [vmem:[#allocation13_spill] sm:$0xff]  ;;  %1854 = vmatpush.msrb.mxu2 %v1349_v0  ;;  %v539_v0 = vadd.f32 %v538_v33, %v537_v50  ;;  %v728_v14 = vadd.f32 %v727_v9, %v726_v28 }
 0x128   :  { %1806 = vmatmul.f32.vlgmr.msra.gmra.mxu3 %v3122_v38  ;;  %v1417_v41 = vld [vmem:[#allocation3 + $0xd88] sm:$0xff]  ;;  %v665_v60 = vadd.f32 %v664_v27, %v663_v57  ;;  %v603_v35 = vrot.slane %v602_v40, 1 }
 0x129   :  { %v1217_v47 = vld [vmem:[#allocation3 + $0x748] sm:$0xff]  ;;  %1873 = vmatpush.msrb.mxu3 %v1417_v41  ;;  %v351_v41 = vrot.slane %v350_v49, 1  ;;  %v540_v4 = vrot.slane %v539_v0, 1 }
 0x12a   :  { %v1345_v32 = vld [vmem:[#allocation3 + $0xb48] sm:$0xff]  ;;  %1815 = vmatpush.msrb.mxu0 %v1217_v47  ;;  %v414_v47 = vrot.slane %v413_v2, 1  ;;  %v666_v12 = vrot.slane %v665_v60, 1  ;;  %v604_v16 = vadd.f32 %v603_v35, %v602_v40 }
 0x12b   :  { %v1413_v63 = vld [vmem:[#allocation3 + $0xd68] sm:$0xff]  ;;  %1855 = vmatpush.msrb.mxu2 %v1345_v32  ;;  %v477_v32 = vrot.slane %v476_v8, 1  ;;  %v352_v6 = vadd.f32 %v351_v41, %v350_v49  ;;  %v541_v21 = vadd.f32 %v540_v4, %v539_v0  ;;  %v1046_v0 = vld [vmem:[#allocation3 + $0x1f0] sm:$0xff] }
 0x12c   :  { %v1301_v46 = vld [vmem:[#allocation3 + $0x9e8] sm:$0xff]  ;;  %1874 = vmatpush.msrb.mxu3 %v1413_v63  ;;  %v415_v45 = vadd.f32 %v414_v47, %v413_v2  ;;  %v667_v26 = vadd.f32 %v666_v12, %v665_v60  ;;  %v1042_v41 = vld [vmem:[#allocation3 + $0x1d0] sm:$0xff] }
 0x12d   :  { %v1213_v31 = vld [vmem:[#allocation3 + $0x728] sm:$0xff]  ;;  %1830 = vmatpush.msrb.mxu1 %v1301_v46  ;;  %v791_v46 = vadd.f32 %v790_v15, %v789_v56  ;;  %v478_v53 = vadd.f32 %v477_v32, %v476_v8  ;;  %v1110_v47 = vld [vmem:[#allocation3 + $0x3f0] sm:$0xff] }
 0x12e   :  { %v1341_v52 = vld [vmem:[#allocation3 + $0xb28] sm:$0xff]  ;;  %1816 = vmatpush.msrb.mxu0 %v1213_v31  ;;  %v929_v3 = vsel %vm866_vm0, %v415_v45, %v352_v6  ;;  %v1106_v32 = vld [vmem:[#allocation3 + $0x3d0] sm:$0xff] }
 0x12f   :  { %v1409_v22 = vld [vmem:[#allocation3 + $0xd48] sm:$0xff]  ;;  %1856 = vmatpush.msrb.mxu2 %v1341_v52  ;;  %v729_v52 = vrot.slane %v728_v14, 1  ;;  %v792_v61 = vrot.slane %v791_v46, 1  ;;  %v930_v50 = vsel %vm868_vm1, %v478_v53, %v929_v3  ;;  %v1030_v12 = vld [vmem:[#allocation3 + $0x170] sm:$0xff] }
 0x130   :  { %v1297_v13 = vld [vmem:[#allocation3 + $0x9c8] sm:$0xff]  ;;  %1875 = vmatpush.msrb.mxu3 %v1409_v22  ;;  %v1026_v53 = vld [vmem:[#allocation3 + $0x150] sm:$0xff] }
 0x131   :  { %v1209_v30 = vld [vmem:[#allocation3 + $0x708] sm:$0xff]  ;;  %1831 = vmatpush.msrb.mxu1 %v1297_v13  ;;  %v730_v29 = vadd.f32 %v729_v52, %v728_v14  ;;  %v1034_v14 = vld [vmem:[#allocation3 + $0x190] sm:$0xff] }
 0x132   :  { %v1337_v39 = vld [vmem:[#allocation3 + $0xb08] sm:$0xff]  ;;  %1817 = vmatpush.msrb.mxu0 %v1209_v30  ;;  %v1094_v52 = vld [vmem:[#allocation3 + $0x370] sm:$0xff] }
 0x133   :  { %v1405_v48 = vld [vmem:[#allocation3 + $0xd28] sm:$0xff]  ;;  %1857 = vmatpush.msrb.mxu2 %v1337_v39  ;;  %v793_v39 = vadd.f32 %v792_v61, %v791_v46  ;;  %v1098_v46 = vld [vmem:[#allocation3 + $0x390] sm:$0xff] }
 0x134   :  { %v1293_v51 = vld [vmem:[#allocation3 + $0x9a8] sm:$0xff]  ;;  %1876 = vmatpush.msrb.mxu3 %v1405_v48  ;;  %v931_v48 = vsel %vm870_vm2, %v541_v21, %v930_v50  ;;  %v1022_v61 = vld [vmem:[#allocation3 + $0x130] sm:$0xff] }
 0x135   :  { %v1205_v55 = vld [vmem:[#allocation3 + $0x6e8] sm:$0xff]  ;;  %1832 = vmatpush.msrb.mxu1 %v1293_v51  ;;  %v932_v57 = vsel %vm872_vm3, %v604_v16, %v931_v48  ;;  %v1090_v3 = vld [vmem:[#allocation3 + $0x350] sm:$0xff] }
 0x136   :  { %v1333_v10 = vld [vmem:[#allocation3 + $0xae8] sm:$0xff]  ;;  %1818 = vmatpush.msrb.mxu0 %v1205_v55  ;;  %v933_v55 = vsel %vm874_vm4, %v667_v26, %v932_v57  ;;  %v1086_v50 = vld [vmem:[#allocation3 + $0x330] sm:$0xff] }
 0x137   :  { %v1401_v7 = vld [vmem:[#allocation3 + $0xd08] sm:$0xff]  ;;  %1858 = vmatpush.msrb.mxu2 %v1333_v10  ;;  %v934_v17 = vsel %vm876_vm5, %v730_v29, %v933_v55  ;;  %v1018_v29 = vld [vmem:[#allocation3 + $0x110] sm:$0xff] }
 0x138   :  { %v1289_v37 = vld [vmem:[#allocation3 + $0x988] sm:$0xff]  ;;  %1877 = vmatpush.msrb.mxu3 %v1401_v7  ;;  %v935_v7 = vsel %vm878_vm6, %v793_v39, %v934_v17  ;;  %v1014_v39 = vld [vmem:[#allocation3 + $0xf0] sm:$0xff] }
 0x139   :  { %v1201_v62 = vld [vmem:[#allocation3 + $0x6c8] sm:$0xff]  ;;  %1833 = vmatpush.msrb.mxu1 %v1289_v37  ;;  %v3045_v2 = vmul.f32 0.0625, %v935_v7  ;;  %v1082_v48 = vld [vmem:[#allocation3 + $0x310] sm:$0xff] }
 0x13a   :  { %v1329_v59 = vld [vmem:[#allocation3 + $0xac8] sm:$0xff]  ;;  %1819 = vmatpush.msrb.mxu0 %v1201_v62  ;;  %v1010_v57 = vld [vmem:[#allocation3 + $0xd0] sm:$0xff] }
 0x13b   :  { %v1397_v23 = vld [vmem:[#allocation3 + $0xce8] sm:$0xff]  ;;  %1859 = vmatpush.msrb.mxu2 %v1329_v59  ;;  %1746 = vmatmul.f32.vlgmr.msra.gmra.mxu0 %v3045_v2  ;;  %v1070_v7 = vld [vmem:[#allocation3 + $0x2b0] sm:$0xff] }
 0x13c   :  { %v1285_v34 = vld [vmem:[#allocation3 + $0x968] sm:$0xff]  ;;  %1878 = vmatpush.msrb.mxu3 %v1397_v23 }
 0x13d   :  { %v1197_v24 = vld [vmem:[#allocation3 + $0x6a8] sm:$0xff]  ;;  %1834 = vmatpush.msrb.mxu1 %v1285_v34  ;;  %v3123_v34 = vld [vmem:[#allocation12_spill] sm:$0xff] }
 0x13e   :  { %v1325_v19 = vld [vmem:[#allocation3 + $0xaa8] sm:$0xff]  ;;  %1820 = vmatpush.msrb.mxu0 %v1197_v24  ;;  %1766 = vmatmul.f32.vlgmr.msra.gmra.mxu1 %v3123_v34  ;;  %v1038_v24 = vld [vmem:[#allocation3 + $0x1b0] sm:$0xff] }
 0x13f   :  { %v1393_v63 = vld [vmem:[#allocation3 + $0xcc8] sm:$0xff]  ;;  %1860 = vmatpush.msrb.mxu2 %v1325_v19  ;;  %v1102_v19 = vld [vmem:[#allocation3 + $0x3b0] sm:$0xff] }
 0x140   :  { %v1281_v31 = vld [vmem:[#allocation3 + $0x948] sm:$0xff]  ;;  %1879 = vmatpush.msrb.mxu3 %v1393_v63 }
 0x141   :  { %v1193_v54 = vld [vmem:[#allocation3 + $0x688] sm:$0xff]  ;;  %1835 = vmatpush.msrb.mxu1 %v1281_v31 }
 0x142   :  { %v1321_v22 = vld [vmem:[#allocation3 + $0xa88] sm:$0xff]  ;;  %1821 = vmatpush.msrb.mxu0 %v1193_v54 }
 0x143   :  { %v1389_v5 = vld [vmem:[#allocation3 + $0xca8] sm:$0xff]  ;;  %1861 = vmatpush.msrb.mxu2 %v1321_v22  ;;  %v3125_v22 = vld [vmem:[#allocation15_spill] sm:$0xff] }
 0x144   :  { %v1277_v13 = vld [vmem:[#allocation3 + $0x928] sm:$0xff]  ;;  %1880 = vmatpush.msrb.mxu3 %v1389_v5 }
 0x145   :  { %v1189_v30 = vld [vmem:[#allocation3 + $0x668] sm:$0xff]  ;;  %1836 = vmatpush.msrb.mxu1 %v1277_v13 }
 0x146   :  { %v1317_v11 = vld [vmem:[#allocation3 + $0xa68] sm:$0xff]  ;;  %1822 = vmatpush.msrb.mxu0 %v1189_v30 }
 0x147   :  { %v1385_v18 = vld [vmem:[#allocation3 + $0xc88] sm:$0xff]  ;;  %1862 = vmatpush.msrb.mxu2 %v1317_v11 }
 0x148   :  { %v1273_v25 = vld [vmem:[#allocation3 + $0x908] sm:$0xff]  ;;  %1881 = vmatpush.msrb.mxu3 %v1385_v18 }
 0x149   :  { %v1185_v43 = vld [vmem:[#allocation3 + $0x648] sm:$0xff]  ;;  %1837 = vmatpush.msrb.mxu1 %v1273_v25 }
 0x14a   :  { %v1313_v20 = vld [vmem:[#allocation3 + $0xa48] sm:$0xff]  ;;  %1823 = vmatpush.msrb.mxu0 %v1185_v43 }
 0x14b   :  { %v1381_v51 = vld [vmem:[#allocation3 + $0xc68] sm:$0xff]  ;;  %1863 = vmatpush.msrb.mxu2 %v1313_v20  ;;  %v1078_v20 = vld [vmem:[#allocation3 + $0x2f0] sm:$0xff] }
 0x14c   :  { %v1269_v1 = vld [vmem:[#allocation3 + $0x8e8] sm:$0xff]  ;;  %1882 = vmatpush.msrb.mxu3 %v1381_v51 }
 0x14d   :  { %v1181_v33 = vld [vmem:[#allocation3 + $0x628] sm:$0xff]  ;;  %1838 = vmatpush.msrb.mxu1 %v1269_v1  ;;  %v1006_v1 = vld [vmem:[#allocation3 + $0xb0] sm:$0xff] }
 0x14e   :  { %v1309_v28 = vld [vmem:[#allocation3 + $0xa28] sm:$0xff]  ;;  %1824 = vmatpush.msrb.mxu0 %v1181_v33  ;;  %v1074_v33 = vld [vmem:[#allocation3 + $0x2d0] sm:$0xff] }
 0x14f   :  { %v1377_v10 = vld [vmem:[#allocation3 + $0xc48] sm:$0xff]  ;;  %1864 = vmatpush.msrb.mxu2 %v1309_v28 }
 0x150   :  { %v1265_v49 = vld [vmem:[#allocation3 + $0x8c8] sm:$0xff]  ;;  %1883 = vmatpush.msrb.mxu3 %v1377_v10  ;;  %v1002_v10 = vld [vmem:[#allocation3 + $0x90] sm:$0xff] }
 0x151   :  { %v1177_v27 = vld [vmem:[#allocation3 + $0x608] sm:$0xff]  ;;  %1839 = vmatpush.msrb.mxu1 %v1265_v49 }
 0x152   :  { %v1305_v56 = vld [vmem:[#allocation3 + $0xa08] sm:$0xff]  ;;  %1825 = vmatpush.msrb.mxu0 %v1177_v27 }
 0x153   :  { %v1261_v37 = vld [vmem:[#allocation3 + $0x8a8] sm:$0xff]  ;;  %1865 = vmatpush.msrb.mxu2 %v1305_v56  ;;  %v998_v56 = vld [vmem:[#allocation3 + $0x70] sm:$0xff] }
 0x154   :  { %v1373_v62 = vld [vmem:[#allocation3 + $0xc28] sm:$0xff]  ;;  %1840 = vmatpush.msrb.mxu1 %v1261_v37  ;;  %1866 = vmatmul.f32.vlgmr.msrb.gmra.mxu2 %v3035_v44  ;;  %v1066_v37 = vld [vmem:[#allocation3 + $0x290] sm:$0xff] }
 0x155   :  { %v1493_v8 = vld [vmem:[#allocation3 + $0xfe8] sm:$0xff]  ;;  %1884 = vmatpush.msrb.mxu3 %v1373_v62  ;;  %1930 = vmatpush.msra.mxu2 %v1046_v0  ;;  %v994_v0 = vld [vmem:[#allocation3 + $0x50] sm:$0xff] }
 0x156   :  { %v1257_v40 = vld [vmem:[#allocation3 + $0x888] sm:$0xff]  ;;  %1890 = vmatpush.msra.mxu0 %v1493_v8 }
 0x157   :  { %v1369_v9 = vld [vmem:[#allocation3 + $0xc08] sm:$0xff]  ;;  %1841 = vmatpush.msrb.mxu1 %v1257_v40  ;;  %1931 = vmatpush.msra.mxu2 %v1042_v41  ;;  %v1062_v40 = vld [vmem:[#allocation3 + $0x270] sm:$0xff] }
 0x158   :  { %v1489_v59 = vld [vmem:[#allocation3 + $0xfc8] sm:$0xff]  ;;  %1885 = vmatpush.msrb.mxu3 %v1369_v9  ;;  %v1058_v41 = vld [vmem:[#allocation3 + $0x250] sm:$0xff] }
 0x159   :  { %v1253_v23 = vld [vmem:[#allocation3 + $0x868] sm:$0xff]  ;;  %1891 = vmatpush.msra.mxu0 %v1489_v59  ;;  %1932 = vmatpush.msra.mxu2 %v1038_v24  ;;  %v1054_v24 = vld [vmem:[#allocation3 + $0x230] sm:$0xff] }
 0x15a   :  { %v1485_v60 = vld [vmem:[#allocation3 + $0xfa8] sm:$0xff]  ;;  %1842 = vmatpush.msrb.mxu1 %v1253_v23  ;;  %1950 = vmatpush.msra.mxu3 %v1110_v47  ;;  %v990_v23 = vld [vmem:[#allocation3 + $0x30] sm:$0xff] }
 0x15b   :  { %v1249_v15 = vld [vmem:[#allocation3 + $0x848] sm:$0xff]  ;;  %1892 = vmatpush.msra.mxu0 %v1485_v60  ;;  %1933 = vmatpush.msra.mxu2 %v1034_v14  ;;  %v1050_v14 = vld [vmem:[#allocation3 + $0x210] sm:$0xff] }
 0x15c   :  { %v1481_v4 = vld [vmem:[#allocation3 + $0xf88] sm:$0xff]  ;;  %1843 = vmatpush.msrb.mxu1 %v1249_v15  ;;  %1951 = vmatpush.msra.mxu3 %v1106_v32  ;;  %v986_v15 = vld [vmem:[#allocation3 + $0x10] sm:$0xff] }
 0x15d   :  { %v1245_v35 = vld [vmem:[#allocation3 + $0x828] sm:$0xff]  ;;  %1893 = vmatpush.msra.mxu0 %v1481_v4  ;;  %1934 = vmatpush.msra.mxu2 %v1030_v12  ;;  %v1174_v4 = vld [vmem:[#allocation3 + $0x5f0] sm:$0xff] }
 0x15e   :  { %v1241_v63 = vld [vmem:[#allocation3 + $0x808] sm:$0xff]  ;;  %1844 = vmatpush.msrb.mxu1 %v1245_v35  ;;  %1952 = vmatpush.msra.mxu3 %v1102_v19  ;;  %v1302_v35 = vld [vmem:[#allocation3 + $0x9f0] sm:$0xff] }
 0x15f   :  { %v1477_v6 = vld [vmem:[#allocation3 + $0xf68] sm:$0xff]  ;;  %1886 = vmatmul.f32.vlgmr.msrb.gmra.mxu3 %v3125_v22  ;;  %1935 = vmatpush.msra.mxu2 %v1026_v53  ;;  %v1362_v53 = vld [vmem:[#allocation3 + $0xbd0] sm:$0xff] }
 0x160   :  { %v1557_v45 = vld [vmem:[#allocation3 + $0x11e8] sm:$0xff]  ;;  %1845 = vmatpush.msrb.mxu1 %v1241_v63  ;;  %1894 = vmatpush.msra.mxu0 %v1477_v6  ;;  %v1170_v63 = vld [vmem:[#allocation3 + $0x5d0] sm:$0xff] }
 0x161   :  { %v1553_v31 = vld [vmem:[#allocation3 + $0x11c8] sm:$0xff]  ;;  %1953 = vmatpush.msra.mxu3 %v1098_v46  ;;  %1846 = vmatmul.f32.vlgmr.msrb.gmra.mxu1 %v2907_v58  ;;  %v1298_v6 = vld [vmem:[#allocation3 + $0x9d0] sm:$0xff] }
 0x162   :  { %1910 = vmatpush.msra.mxu1 %v1557_v45  ;;  %v1473_v54 = vld [vmem:[#allocation3 + $0xf48] sm:$0xff]  ;;  %1936 = vmatpush.msra.mxu2 %v1022_v61  ;;  %v1366_v45 = vld [vmem:[#allocation3 + $0xbf0] sm:$0xff] }
 0x163   :  { %v1549_v21 = vld [vmem:[#allocation3 + $0x11a8] sm:$0xff]  ;;  %1895 = vmatpush.msra.mxu0 %v1473_v54  ;;  %1954 = vmatpush.msra.mxu3 %v1094_v52  ;;  %v1166_v46 = vld [vmem:[#allocation3 + $0x5b0] sm:$0xff] }
 0x164   :  { %v3124_v16 = vld [vmem:[#allocation10_spill] sm:$0xff]  ;;  %1911 = vmatpush.msra.mxu1 %v1553_v31  ;;  %1937 = vmatpush.msra.mxu2 %v1018_v29 }
 0x165   :  { %1826 = vmatmul.f32.vlgmr.msrb.gmra.mxu0 %v3124_v16  ;;  %v1469_v5 = vld [vmem:[#allocation3 + $0xf28] sm:$0xff]  ;;  %1955 = vmatpush.msra.mxu3 %v1090_v3  ;;  %v1294_v31 = vld [vmem:[#allocation3 + $0x9b0] sm:$0xff] }
 0x166   :  { %v1545_v26 = vld [vmem:[#allocation3 + $0x1188] sm:$0xff]  ;;  %1912 = vmatpush.msra.mxu1 %v1549_v21  ;;  %1896 = vmatpush.msra.mxu0 %v1469_v5  ;;  %v1238_v54 = vld [vmem:[#allocation3 + $0x7f0] sm:$0xff] }
 0x167   :  { %v1465_v13 = vld [vmem:[#allocation3 + $0xf08] sm:$0xff]  ;;  %1956 = vmatpush.msra.mxu3 %v1086_v50  ;;  %1938 = vmatpush.msra.mxu2 %v1014_v39  ;;  %v1162_v21 = vld [vmem:[#allocation3 + $0x590] sm:$0xff] }
 0x168   :  { %v1541_v30 = vld [vmem:[#allocation3 + $0x1168] sm:$0xff]  ;;  %1913 = vmatpush.msra.mxu1 %v1545_v26  ;;  %1897 = vmatpush.msra.mxu0 %v1465_v13  ;;  %v1290_v52 = vld [vmem:[#allocation3 + $0x990] sm:$0xff] }
 0x169   :  { %v1461_v11 = vld [vmem:[#allocation3 + $0xee8] sm:$0xff]  ;;  %1957 = vmatpush.msra.mxu3 %v1082_v48  ;;  %1939 = vmatpush.msra.mxu2 %v1010_v57  ;;  %v1234_v5 = vld [vmem:[#allocation3 + $0x7d0] sm:$0xff] }
 0x16a   :  { %v1537_v18 = vld [vmem:[#allocation3 + $0x1148] sm:$0xff]  ;;  %1914 = vmatpush.msra.mxu1 %v1541_v30  ;;  %1898 = vmatpush.msra.mxu0 %v1461_v11  ;;  %v1358_v26 = vld [vmem:[#allocation3 + $0xbb0] sm:$0xff] }
 0x16b   :  { %v1457_v25 = vld [vmem:[#allocation3 + $0xec8] sm:$0xff]  ;;  %1958 = vmatpush.msra.mxu3 %v1078_v20  ;;  %1940 = vmatpush.msra.mxu2 %v1006_v1  ;;  %v1158_v61 = vld [vmem:[#allocation3 + $0x570] sm:$0xff] }
 0x16c   :  { %v1533_v43 = vld [vmem:[#allocation3 + $0x1128] sm:$0xff]  ;;  %1915 = vmatpush.msra.mxu1 %v1537_v18  ;;  %1899 = vmatpush.msra.mxu0 %v1457_v25  ;;  %v1286_v3 = vld [vmem:[#allocation3 + $0x970] sm:$0xff] }
 0x16d   :  { %v1453_v51 = vld [vmem:[#allocation3 + $0xea8] sm:$0xff]  ;;  %1959 = vmatpush.msra.mxu3 %v1074_v33  ;;  %1941 = vmatpush.msra.mxu2 %v1002_v10  ;;  %v1230_v13 = vld [vmem:[#allocation3 + $0x7b0] sm:$0xff] }
 0x16e   :  { %v1529_v55 = vld [vmem:[#allocation3 + $0x1108] sm:$0xff]  ;;  %1916 = vmatpush.msra.mxu1 %v1533_v43  ;;  %1900 = vmatpush.msra.mxu0 %v1453_v51  ;;  %v1354_v30 = vld [vmem:[#allocation3 + $0xb90] sm:$0xff] }
 0x16f   :  { %v1449_v17 = vld [vmem:[#allocation3 + $0xe88] sm:$0xff]  ;;  %1960 = vmatpush.msra.mxu3 %v1070_v7  ;;  %1942 = vmatpush.msra.mxu2 %v998_v56  ;;  %v1154_v29 = vld [vmem:[#allocation3 + $0x550] sm:$0xff] }
 0x170   :  { %v1525_v28 = vld [vmem:[#allocation3 + $0x10e8] sm:$0xff]  ;;  %1917 = vmatpush.msra.mxu1 %v1529_v55  ;;  %1901 = vmatpush.msra.mxu0 %v1449_v17  ;;  %v1282_v50 = vld [vmem:[#allocation3 + $0x950] sm:$0xff] }
 0x171   :  { %v1445_v49 = vld [vmem:[#allocation3 + $0xe68] sm:$0xff]  ;;  %1961 = vmatpush.msra.mxu3 %v1066_v37  ;;  %1943 = vmatpush.msra.mxu2 %v994_v0  ;;  %v1226_v11 = vld [vmem:[#allocation3 + $0x790] sm:$0xff] }
 0x172   :  { %v1521_v27 = vld [vmem:[#allocation3 + $0x10c8] sm:$0xff]  ;;  %1918 = vmatpush.msra.mxu1 %v1525_v28  ;;  %1902 = vmatpush.msra.mxu0 %v1445_v49  ;;  %v1350_v18 = vld [vmem:[#allocation3 + $0xb70] sm:$0xff] }
 0x173   :  { %v1441_v62 = vld [vmem:[#allocation3 + $0xe48] sm:$0xff]  ;;  %1962 = vmatpush.msra.mxu3 %v1062_v40  ;;  %1944 = vmatpush.msra.mxu2 %v990_v23  ;;  %v1150_v39 = vld [vmem:[#allocation3 + $0x530] sm:$0xff] }
 0x174   :  { %v1517_v8 = vld [vmem:[#allocation3 + $0x10a8] sm:$0xff]  ;;  %1919 = vmatpush.msra.mxu1 %v1521_v27  ;;  %1903 = vmatpush.msra.mxu0 %v1441_v62  ;;  %v1278_v48 = vld [vmem:[#allocation3 + $0x930] sm:$0xff] }
 0x175   :  { %v1437_v9 = vld [vmem:[#allocation3 + $0xe28] sm:$0xff]  ;;  %1963 = vmatpush.msra.mxu3 %v1058_v41  ;;  %1945 = vmatpush.msra.mxu2 %v986_v15  ;;  %v1222_v25 = vld [vmem:[#allocation3 + $0x770] sm:$0xff] }
 0x176   :  { %v1513_v59 = vld [vmem:[#allocation3 + $0x1088] sm:$0xff]  ;;  %1920 = vmatpush.msra.mxu1 %v1517_v8  ;;  %1904 = vmatpush.msra.mxu0 %v1437_v9  ;;  %v1346_v43 = vld [vmem:[#allocation3 + $0xb50] sm:$0xff] }
 0x177   :  { %v1433_v47 = vld [vmem:[#allocation3 + $0xe08] sm:$0xff]  ;;  %1964 = vmatpush.msra.mxu3 %v1054_v24  ;;  %2010 = vmatpush.msrb.mxu2 %v1302_v35  ;;  %v1146_v57 = vld [vmem:[#allocation3 + $0x510] sm:$0xff] }
 0x178   :  { %v1509_v60 = vld [vmem:[#allocation3 + $0x1068] sm:$0xff]  ;;  %1921 = vmatpush.msra.mxu1 %v1513_v59  ;;  %1905 = vmatpush.msra.mxu0 %v1433_v47  ;;  %v1274_v20 = vld [vmem:[#allocation3 + $0x910] sm:$0xff] }
 0x179   :  { %v1505_v32 = vld [vmem:[#allocation3 + $0x1048] sm:$0xff]  ;;  %1906 = vmatmul.f32.vlgmr.msra.gmra.mxu0 %v2933_v42  ;;  %1965 = vmatpush.msra.mxu3 %v1050_v14  ;;  %v1218_v51 = vld [vmem:[#allocation3 + $0x750] sm:$0xff] }
 0x17a   :  { %1922 = vmatpush.msra.mxu1 %v1509_v60  ;;  %v1501_v19 = vld [vmem:[#allocation3 + $0x1028] sm:$0xff]  ;;  %1970 = vmatpush.msrb.mxu0 %v1174_v4  ;;  %v1342_v55 = vld [vmem:[#allocation3 + $0xb30] sm:$0xff] }
 0x17b   :  { %v1497_v12 = vld [vmem:[#allocation3 + $0x1008] sm:$0xff]  ;;  %2011 = vmatpush.msrb.mxu2 %v1298_v6  ;;  %2030 = vmatpush.msrb.mxu3 %v1366_v45  ;;  %v1142_v1 = vld [vmem:[#allocation3 + $0x4f0] sm:$0xff] }
 0x17c   :  { %1923 = vmatpush.msra.mxu1 %v1505_v32  ;;  %1971 = vmatpush.msrb.mxu0 %v1170_v63  ;;  %v1270_v33 = vld [vmem:[#allocation3 + $0x8f0] sm:$0xff] }
 0x17d   :  { %2012 = vmatpush.msrb.mxu2 %v1294_v31  ;;  %2031 = vmatpush.msrb.mxu3 %v1362_v53  ;;  %v1214_v17 = vld [vmem:[#allocation3 + $0x730] sm:$0xff] }
 0x17e   :  { %1924 = vmatpush.msra.mxu1 %v1501_v19  ;;  %1972 = vmatpush.msrb.mxu0 %v1166_v46  ;;  %v1338_v28 = vld [vmem:[#allocation3 + $0xb10] sm:$0xff] }
 0x17f   :  { %2013 = vmatpush.msrb.mxu2 %v1290_v52  ;;  %2032 = vmatpush.msrb.mxu3 %v1358_v26  ;;  %v1138_v10 = vld [vmem:[#allocation3 + $0x4d0] sm:$0xff] }
 0x180   :  { %1925 = vmatpush.msra.mxu1 %v1497_v12  ;;  %1973 = vmatpush.msrb.mxu0 %v1162_v21  ;;  %v1266_v7 = vld [vmem:[#allocation3 + $0x8d0] sm:$0xff] }
 0x181   :  { %1926 = vmatmul.f32.vlgmr.msra.gmra.mxu1 %v3045_v2  ;;  %2014 = vmatpush.msrb.mxu2 %v1286_v3  ;;  %v1210_v49 = vld [vmem:[#allocation3 + $0x710] sm:$0xff]  ;;  %v1047_v3 = vld [vmem:[#allocation3 + $0x1f8] sm:$0xff] }
 0x182   :  { %1990 = vmatpush.msrb.mxu1 %v1238_v54  ;;  %1974 = vmatpush.msrb.mxu0 %v1158_v61  ;;  %v1334_v27 = vld [vmem:[#allocation3 + $0xaf0] sm:$0xff] }
 0x183   :  { %2033 = vmatpush.msrb.mxu3 %v1354_v30  ;;  %2015 = vmatpush.msrb.mxu2 %v1282_v50  ;;  %v1134_v56 = vld [vmem:[#allocation3 + $0x4b0] sm:$0xff]  ;;  %v1043_v50 = vld [vmem:[#allocation3 + $0x1d8] sm:$0xff] }
 0x184   :  { %1991 = vmatpush.msrb.mxu1 %v1234_v5  ;;  %1975 = vmatpush.msrb.mxu0 %v1154_v29  ;;  %v1262_v37 = vld [vmem:[#allocation3 + $0x8b0] sm:$0xff] }
 0x185   :  { %2034 = vmatpush.msrb.mxu3 %v1350_v18  ;;  %2016 = vmatpush.msrb.mxu2 %v1278_v48  ;;  %v1206_v62 = vld [vmem:[#allocation3 + $0x6f0] sm:$0xff]  ;;  %v1039_v48 = vld [vmem:[#allocation3 + $0x1b8] sm:$0xff] }
 0x186   :  { %1992 = vmatpush.msrb.mxu1 %v1230_v13  ;;  %1976 = vmatpush.msrb.mxu0 %v1150_v39  ;;  %v1330_v8 = vld [vmem:[#allocation3 + $0xad0] sm:$0xff] }
 0x187   :  { %2035 = vmatpush.msrb.mxu3 %v1346_v43  ;;  %2017 = vmatpush.msrb.mxu2 %v1274_v20  ;;  %v1130_v0 = vld [vmem:[#allocation3 + $0x490] sm:$0xff]  ;;  %v1035_v20 = vld [vmem:[#allocation3 + $0x198] sm:$0xff] }
 0x188   :  { %1993 = vmatpush.msrb.mxu1 %v1226_v11  ;;  %1977 = vmatpush.msrb.mxu0 %v1146_v57  ;;  %v1258_v40 = vld [vmem:[#allocation3 + $0x890] sm:$0xff] }
 0x189   :  { %2036 = vmatpush.msrb.mxu3 %v1342_v55  ;;  %2018 = vmatpush.msrb.mxu2 %v1270_v33  ;;  %v1202_v9 = vld [vmem:[#allocation3 + $0x6d0] sm:$0xff]  ;;  %v1031_v33 = vld [vmem:[#allocation3 + $0x178] sm:$0xff] }
 0x18a   :  { %1994 = vmatpush.msrb.mxu1 %v1222_v25  ;;  %1978 = vmatpush.msrb.mxu0 %v1142_v1  ;;  %v1326_v59 = vld [vmem:[#allocation3 + $0xab0] sm:$0xff] }
 0x18b   :  { %2037 = vmatpush.msrb.mxu3 %v1338_v28  ;;  %2019 = vmatpush.msrb.mxu2 %v1266_v7  ;;  %v1126_v23 = vld [vmem:[#allocation3 + $0x470] sm:$0xff]  ;;  %v1027_v7 = vld [vmem:[#allocation3 + $0x158] sm:$0xff] }
 0x18c   :  { %1995 = vmatpush.msrb.mxu1 %v1218_v51  ;;  %1979 = vmatpush.msrb.mxu0 %v1138_v10  ;;  %v1254_v41 = vld [vmem:[#allocation3 + $0x870] sm:$0xff] }
 0x18d   :  { %2038 = vmatpush.msrb.mxu3 %v1334_v27  ;;  %2020 = vmatpush.msrb.mxu2 %v1262_v37  ;;  %v1198_v47 = vld [vmem:[#allocation3 + $0x6b0] sm:$0xff]  ;;  %v1023_v37 = vld [vmem:[#allocation3 + $0x138] sm:$0xff] }
 0x18e   :  { %1996 = vmatpush.msrb.mxu1 %v1214_v17  ;;  %1980 = vmatpush.msrb.mxu0 %v1134_v56  ;;  %v1322_v60 = vld [vmem:[#allocation3 + $0xa90] sm:$0xff] }
 0x18f   :  { %2039 = vmatpush.msrb.mxu3 %v1330_v8  ;;  %2021 = vmatpush.msrb.mxu2 %v1258_v40  ;;  %v1122_v15 = vld [vmem:[#allocation3 + $0x450] sm:$0xff]  ;;  %v1019_v40 = vld [vmem:[#allocation3 + $0x118] sm:$0xff] }
 0x190   :  { %1997 = vmatpush.msrb.mxu1 %v1210_v49  ;;  %1981 = vmatpush.msrb.mxu0 %v1130_v0  ;;  %v1250_v24 = vld [vmem:[#allocation3 + $0x850] sm:$0xff] }
 0x191   :  { %2040 = vmatpush.msrb.mxu3 %v1326_v59  ;;  %v1194_v32 = vld [vmem:[#allocation3 + $0x690] sm:$0xff]  ;;  %2022 = vmatpush.msrb.mxu2 %v1254_v41  ;;  %v1015_v41 = vld [vmem:[#allocation3 + $0xf8] sm:$0xff] }
 0x192   :  { %1998 = vmatpush.msrb.mxu1 %v1206_v62  ;;  %1982 = vmatpush.msrb.mxu0 %v1126_v23  ;;  %v1318_v4 = vld [vmem:[#allocation3 + $0xa70] sm:$0xff] }
 0x193   :  { %2041 = vmatpush.msrb.mxu3 %v1322_v60  ;;  %v1118_v35 = vld [vmem:[#allocation3 + $0x430] sm:$0xff]  ;;  %2023 = vmatpush.msrb.mxu2 %v1250_v24  ;;  %v1011_v24 = vld [vmem:[#allocation3 + $0xd8] sm:$0xff] }
 0x194   :  { %1999 = vmatpush.msrb.mxu1 %v1202_v9  ;;  %v1246_v14 = vld [vmem:[#allocation3 + $0x830] sm:$0xff]  ;;  %1983 = vmatpush.msrb.mxu0 %v1122_v15 }
 0x195   :  { %v1190_v19 = vld [vmem:[#allocation3 + $0x670] sm:$0xff]  ;;  %2042 = vmatpush.msrb.mxu3 %v1318_v4  ;;  %2024 = vmatpush.msrb.mxu2 %v1246_v14  ;;  %v1007_v14 = vld [vmem:[#allocation3 + $0xb8] sm:$0xff] }
 0x196   :  { %2000 = vmatpush.msrb.mxu1 %v1198_v47  ;;  %v1314_v63 = vld [vmem:[#allocation3 + $0xa50] sm:$0xff]  ;;  %1984 = vmatpush.msrb.mxu0 %v1118_v35 }
 0x197   :  { %v1114_v6 = vld [vmem:[#allocation3 + $0x410] sm:$0xff]  ;;  %2043 = vmatpush.msrb.mxu3 %v1314_v63  ;;  %1946 = vmatmul.f32.vlgmr.msra.gmra.mxu2 %v3123_v34 }
 0x198   :  { %2001 = vmatpush.msrb.mxu1 %v1194_v32  ;;  %v1242_v45 = vld [vmem:[#allocation3 + $0x810] sm:$0xff]  ;;  %1985 = vmatpush.msrb.mxu0 %v1114_v6 }
 0x199   :  { %v1186_v12 = vld [vmem:[#allocation3 + $0x650] sm:$0xff]  ;;  %2025 = vmatpush.msrb.mxu2 %v1242_v45  ;;  %1966 = vmatmul.f32.vlgmr.msra.gmra.mxu3 %v3121_v36  ;;  %v1003_v45 = vld [vmem:[#allocation3 + $0x98] sm:$0xff] }
 0x19a   :  { %v1310_v46 = vld [vmem:[#allocation3 + $0xa30] sm:$0xff]  ;;  %2002 = vmatpush.msrb.mxu1 %v1190_v19  ;;  %1986 = vmatmul.f32.vlgmr.msrb.gmra.mxu0 %v3122_v38 }
 0x19b   :  { %v1430_v31 = vld [vmem:[#allocation3 + $0xdf0] sm:$0xff]  ;;  %2044 = vmatpush.msrb.mxu3 %v1310_v46 }
 0x19c   :  { %v1182_v54 = vld [vmem:[#allocation3 + $0x630] sm:$0xff]  ;;  %2003 = vmatpush.msrb.mxu1 %v1186_v12  ;;  %2050 = vmatpush.msra.mxu0 %v1430_v31 }
 0x19d   :  { %v1558_v53 = vld [vmem:[#allocation3 + $0x11f0] sm:$0xff] }
 0x19e   :  { %v1306_v21 = vld [vmem:[#allocation3 + $0xa10] sm:$0xff]  ;;  %2004 = vmatpush.msrb.mxu1 %v1182_v54  ;;  %2090 = vmatpush.msra.mxu2 %v1558_v53  ;;  %v999_v54 = vld [vmem:[#allocation3 + $0x78] sm:$0xff] }
 0x19f   :  { %v1426_v52 = vld [vmem:[#allocation3 + $0xdd0] sm:$0xff]  ;;  %2045 = vmatpush.msrb.mxu3 %v1306_v21  ;;  %2026 = vmatmul.f32.vlgmr.msrb.gmra.mxu2 %v2907_v58 }
 0x1a0   :  { %v1178_v5 = vld [vmem:[#allocation3 + $0x610] sm:$0xff]  ;;  %2051 = vmatpush.msra.mxu0 %v1426_v52 }
 0x1a1   :  { %v1494_v26 = vld [vmem:[#allocation3 + $0xff0] sm:$0xff]  ;;  %2005 = vmatpush.msrb.mxu1 %v1178_v5  ;;  %2110 = vmatpush.msra.mxu3 %v1047_v3  ;;  %v995_v5 = vld [vmem:[#allocation3 + $0x58] sm:$0xff] }
 0x1a2   :  { %v1554_v61 = vld [vmem:[#allocation3 + $0x11d0] sm:$0xff]  ;;  %2046 = vmatmul.f32.vlgmr.msrb.gmra.mxu3 %v3035_v44  ;;  %2006 = vmatmul.f32.vlgmr.msrb.gmra.mxu1 %v3124_v16 }
 0x1a3   :  { %v1422_v13 = vld [vmem:[#allocation3 + $0xdb0] sm:$0xff]  ;;  %2070 = vmatpush.msra.mxu1 %v1494_v26  ;;  %2091 = vmatpush.msra.mxu2 %v1554_v61 }
 0x1a4   :  { %v1490_v30 = vld [vmem:[#allocation3 + $0xfd0] sm:$0xff]  ;;  %2052 = vmatpush.msra.mxu0 %v1422_v13  ;;  %2111 = vmatpush.msra.mxu3 %v1043_v50  ;;  %v991_v13 = vld [vmem:[#allocation3 + $0x38] sm:$0xff] }
 0x1a5   :  { %v1550_v29 = vld [vmem:[#allocation3 + $0x11b0] sm:$0xff]  ;;  %2071 = vmatpush.msra.mxu1 %v1490_v30  ;;  %v1111_v30 = vld [vmem:[#allocation3 + $0x3f8] sm:$0xff] }
 0x1a6   :  { %v1418_v11 = vld [vmem:[#allocation3 + $0xd90] sm:$0xff]  ;;  %2092 = vmatpush.msra.mxu2 %v1550_v29  ;;  %2112 = vmatpush.msra.mxu3 %v1039_v48  ;;  %v1239_v29 = vld [vmem:[#allocation3 + $0x7f8] sm:$0xff] }
 0x1a7   :  { %v1486_v18 = vld [vmem:[#allocation3 + $0xfb0] sm:$0xff]  ;;  %2053 = vmatpush.msra.mxu0 %v1418_v11  ;;  %v987_v11 = vld [vmem:[#allocation3 + $0x18] sm:$0xff] }
 0x1a8   :  { %v1546_v39 = vld [vmem:[#allocation3 + $0x1190] sm:$0xff]  ;;  %2072 = vmatpush.msra.mxu1 %v1486_v18  ;;  %2113 = vmatpush.msra.mxu3 %v1035_v20  ;;  %v1107_v18 = vld [vmem:[#allocation3 + $0x3d8] sm:$0xff] }
 0x1a9   :  { %v1414_v25 = vld [vmem:[#allocation3 + $0xd70] sm:$0xff]  ;;  %2093 = vmatpush.msra.mxu2 %v1546_v39  ;;  %v1175_v39 = vld [vmem:[#allocation3 + $0x5f8] sm:$0xff] }
 0x1aa   :  { %v1482_v43 = vld [vmem:[#allocation3 + $0xf90] sm:$0xff]  ;;  %2054 = vmatpush.msra.mxu0 %v1414_v25  ;;  %2114 = vmatpush.msra.mxu3 %v1031_v33  ;;  %v1235_v48 = vld [vmem:[#allocation3 + $0x7d8] sm:$0xff] }
 0x1ab   :  { %v1542_v57 = vld [vmem:[#allocation3 + $0x1170] sm:$0xff]  ;;  %2073 = vmatpush.msra.mxu1 %v1482_v43  ;;  %v1303_v25 = vld [vmem:[#allocation3 + $0x9f8] sm:$0xff] }
 0x1ac   :  { %v1410_v51 = vld [vmem:[#allocation3 + $0xd50] sm:$0xff]  ;;  %2094 = vmatpush.msra.mxu2 %v1542_v57  ;;  %2115 = vmatpush.msra.mxu3 %v1027_v7  ;;  %v1103_v43 = vld [vmem:[#allocation3 + $0x3b8] sm:$0xff] }
 0x1ad   :  { %v1478_v55 = vld [vmem:[#allocation3 + $0xf70] sm:$0xff]  ;;  %2055 = vmatpush.msra.mxu0 %v1410_v51  ;;  %v1171_v57 = vld [vmem:[#allocation3 + $0x5d8] sm:$0xff] }
 0x1ae   :  { %v1538_v1 = vld [vmem:[#allocation3 + $0x1150] sm:$0xff]  ;;  %2074 = vmatpush.msra.mxu1 %v1478_v55  ;;  %2116 = vmatpush.msra.mxu3 %v1023_v37  ;;  %v1231_v20 = vld [vmem:[#allocation3 + $0x7b8] sm:$0xff] }
 0x1af   :  { %v1406_v17 = vld [vmem:[#allocation3 + $0xd30] sm:$0xff]  ;;  %2095 = vmatpush.msra.mxu2 %v1538_v1  ;;  %v1299_v51 = vld [vmem:[#allocation3 + $0x9d8] sm:$0xff] }
 0x1b0   :  { %v1474_v28 = vld [vmem:[#allocation3 + $0xf50] sm:$0xff]  ;;  %2056 = vmatpush.msra.mxu0 %v1406_v17  ;;  %2117 = vmatpush.msra.mxu3 %v1019_v40  ;;  %v1099_v55 = vld [vmem:[#allocation3 + $0x398] sm:$0xff] }
 0x1b1   :  { %v1534_v10 = vld [vmem:[#allocation3 + $0x1130] sm:$0xff]  ;;  %2075 = vmatpush.msra.mxu1 %v1474_v28  ;;  %v1167_v1 = vld [vmem:[#allocation3 + $0x5b8] sm:$0xff] }
 0x1b2   :  { %v1402_v49 = vld [vmem:[#allocation3 + $0xd10] sm:$0xff]  ;;  %2096 = vmatpush.msra.mxu2 %v1534_v10  ;;  %2118 = vmatpush.msra.mxu3 %v1015_v41  ;;  %v1227_v33 = vld [vmem:[#allocation3 + $0x798] sm:$0xff] }
 0x1b3   :  { %v1470_v27 = vld [vmem:[#allocation3 + $0xf30] sm:$0xff]  ;;  %2057 = vmatpush.msra.mxu0 %v1402_v49  ;;  %v1295_v17 = vld [vmem:[#allocation3 + $0x9b8] sm:$0xff] }
 0x1b4   :  { %v1530_v56 = vld [vmem:[#allocation3 + $0x1110] sm:$0xff]  ;;  %2076 = vmatpush.msra.mxu1 %v1470_v27  ;;  %2119 = vmatpush.msra.mxu3 %v1011_v24  ;;  %v1095_v28 = vld [vmem:[#allocation3 + $0x378] sm:$0xff] }
 0x1b5   :  { %v1398_v62 = vld [vmem:[#allocation3 + $0xcf0] sm:$0xff]  ;;  %2097 = vmatpush.msra.mxu2 %v1530_v56  ;;  %v1163_v10 = vld [vmem:[#allocation3 + $0x598] sm:$0xff] }
 0x1b6   :  { %v1466_v8 = vld [vmem:[#allocation3 + $0xf10] sm:$0xff]  ;;  %2058 = vmatpush.msra.mxu0 %v1398_v62  ;;  %2120 = vmatpush.msra.mxu3 %v1007_v14  ;;  %v1223_v7 = vld [vmem:[#allocation3 + $0x778] sm:$0xff] }
 0x1b7   :  { %v1526_v0 = vld [vmem:[#allocation3 + $0x10f0] sm:$0xff]  ;;  %2077 = vmatpush.msra.mxu1 %v1466_v8  ;;  %v1291_v49 = vld [vmem:[#allocation3 + $0x998] sm:$0xff] }
 0x1b8   :  { %v1394_v9 = vld [vmem:[#allocation3 + $0xcd0] sm:$0xff]  ;;  %2098 = vmatpush.msra.mxu2 %v1526_v0  ;;  %2121 = vmatpush.msra.mxu3 %v1003_v45  ;;  %v1091_v27 = vld [vmem:[#allocation3 + $0x358] sm:$0xff] }
 0x1b9   :  { %v1462_v59 = vld [vmem:[#allocation3 + $0xef0] sm:$0xff]  ;;  %2059 = vmatpush.msra.mxu0 %v1394_v9  ;;  %v1159_v56 = vld [vmem:[#allocation3 + $0x578] sm:$0xff] }
 0x1ba   :  { %v1522_v23 = vld [vmem:[#allocation3 + $0x10d0] sm:$0xff]  ;;  %2078 = vmatpush.msra.mxu1 %v1462_v59  ;;  %2122 = vmatpush.msra.mxu3 %v999_v54  ;;  %v1219_v37 = vld [vmem:[#allocation3 + $0x758] sm:$0xff] }
 0x1bb   :  { %v1390_v47 = vld [vmem:[#allocation3 + $0xcb0] sm:$0xff]  ;;  %2099 = vmatpush.msra.mxu2 %v1522_v23  ;;  %v1287_v62 = vld [vmem:[#allocation3 + $0x978] sm:$0xff] }
 0x1bc   :  { %v1458_v60 = vld [vmem:[#allocation3 + $0xed0] sm:$0xff]  ;;  %2060 = vmatpush.msra.mxu0 %v1390_v47  ;;  %2123 = vmatpush.msra.mxu3 %v995_v5  ;;  %v1087_v8 = vld [vmem:[#allocation3 + $0x338] sm:$0xff] }
 0x1bd   :  { %v1518_v15 = vld [vmem:[#allocation3 + $0x10b0] sm:$0xff]  ;;  %2079 = vmatpush.msra.mxu1 %v1458_v60  ;;  %v1155_v0 = vld [vmem:[#allocation3 + $0x558] sm:$0xff] }
 0x1be   :  { %v1386_v32 = vld [vmem:[#allocation3 + $0xc90] sm:$0xff]  ;;  %2100 = vmatpush.msra.mxu2 %v1518_v15  ;;  %2124 = vmatpush.msra.mxu3 %v991_v13  ;;  %v1215_v40 = vld [vmem:[#allocation3 + $0x738] sm:$0xff] }
 0x1bf   :  { %v1454_v4 = vld [vmem:[#allocation3 + $0xeb0] sm:$0xff]  ;;  %2061 = vmatpush.msra.mxu0 %v1386_v32  ;;  %v1283_v9 = vld [vmem:[#allocation3 + $0x958] sm:$0xff] }
 0x1c0   :  { %v1514_v35 = vld [vmem:[#allocation3 + $0x1090] sm:$0xff]  ;;  %2080 = vmatpush.msra.mxu1 %v1454_v4  ;;  %2125 = vmatpush.msra.mxu3 %v987_v11  ;;  %v1083_v59 = vld [vmem:[#allocation3 + $0x318] sm:$0xff] }
 0x1c1   :  { %v1382_v19 = vld [vmem:[#allocation3 + $0xc70] sm:$0xff]  ;;  %2101 = vmatpush.msra.mxu2 %v1514_v35  ;;  %v1151_v23 = vld [vmem:[#allocation3 + $0x538] sm:$0xff]  ;;  %2126 = vmatmul.f32.vlgmr.msra.gmra.mxu3 %v3123_v34 }
 0x1c2   :  { %v1450_v63 = vld [vmem:[#allocation3 + $0xe90] sm:$0xff]  ;;  %2062 = vmatpush.msra.mxu0 %v1382_v19  ;;  %2190 = vmatpush.msrb.mxu3 %v1303_v25  ;;  %v1211_v41 = vld [vmem:[#allocation3 + $0x718] sm:$0xff] }
 0x1c3   :  { %v1510_v6 = vld [vmem:[#allocation3 + $0x1070] sm:$0xff]  ;;  %2081 = vmatpush.msra.mxu1 %v1450_v63  ;;  %v1279_v47 = vld [vmem:[#allocation3 + $0x938] sm:$0xff] }
 0x1c4   :  { %v1378_v12 = vld [vmem:[#allocation3 + $0xc50] sm:$0xff]  ;;  %2102 = vmatpush.msra.mxu2 %v1510_v6  ;;  %2191 = vmatpush.msrb.mxu3 %v1299_v51  ;;  %v1079_v60 = vld [vmem:[#allocation3 + $0x2f8] sm:$0xff] }
 0x1c5   :  { %v1446_v46 = vld [vmem:[#allocation3 + $0xe70] sm:$0xff]  ;;  %2063 = vmatpush.msra.mxu0 %v1378_v12  ;;  %v1147_v15 = vld [vmem:[#allocation3 + $0x518] sm:$0xff] }
 0x1c6   :  { %v1506_v31 = vld [vmem:[#allocation3 + $0x1050] sm:$0xff]  ;;  %2082 = vmatpush.msra.mxu1 %v1446_v46  ;;  %2192 = vmatpush.msrb.mxu3 %v1295_v17  ;;  %v1207_v24 = vld [vmem:[#allocation3 + $0x6f8] sm:$0xff] }
 0x1c7   :  { %v1374_v53 = vld [vmem:[#allocation3 + $0xc30] sm:$0xff]  ;;  %2103 = vmatpush.msra.mxu2 %v1506_v31  ;;  %v1275_v32 = vld [vmem:[#allocation3 + $0x918] sm:$0xff] }
 0x1c8   :  { %v1442_v21 = vld [vmem:[#allocation3 + $0xe50] sm:$0xff]  ;;  %2064 = vmatpush.msra.mxu0 %v1374_v53  ;;  %2193 = vmatpush.msrb.mxu3 %v1291_v49  ;;  %v1075_v4 = vld [vmem:[#allocation3 + $0x2d8] sm:$0xff] }
 0x1c9   :  { %v1502_v52 = vld [vmem:[#allocation3 + $0x1030] sm:$0xff]  ;;  %2083 = vmatpush.msra.mxu1 %v1442_v21  ;;  %v1143_v35 = vld [vmem:[#allocation3 + $0x4f8] sm:$0xff] }
 0x1ca   :  { %v1370_v26 = vld [vmem:[#allocation3 + $0xc10] sm:$0xff]  ;;  %2104 = vmatpush.msra.mxu2 %v1502_v52  ;;  %2194 = vmatpush.msrb.mxu3 %v1287_v62  ;;  %v1203_v14 = vld [vmem:[#allocation3 + $0x6d8] sm:$0xff] }
 0x1cb   :  { %v1438_v61 = vld [vmem:[#allocation3 + $0xe30] sm:$0xff]  ;;  %2065 = vmatpush.msra.mxu0 %v1370_v26  ;;  %v1271_v19 = vld [vmem:[#allocation3 + $0x8f8] sm:$0xff] }
 0x1cc   :  { %v1498_v3 = vld [vmem:[#allocation3 + $0x1010] sm:$0xff]  ;;  %2084 = vmatpush.msra.mxu1 %v1438_v61  ;;  %2066 = vmatmul.f32.vlgmr.msra.gmra.mxu0 %v3125_v22  ;;  %v1071_v63 = vld [vmem:[#allocation3 + $0x2b8] sm:$0xff] }
 0x1cd   :  { %2105 = vmatpush.msra.mxu2 %v1498_v3  ;;  %v1434_v50 = vld [vmem:[#allocation3 + $0xe10] sm:$0xff]  ;;  %2130 = vmatpush.msrb.mxu0 %v1111_v30  ;;  %v1139_v6 = vld [vmem:[#allocation3 + $0x4d8] sm:$0xff] }
 0x1ce   :  { %2106 = vmatmul.f32.vlgmr.msra.gmra.mxu2 %v3045_v2  ;;  %2085 = vmatpush.msra.mxu1 %v1434_v50  ;;  %v1199_v45 = vld [vmem:[#allocation3 + $0x6b8] sm:$0xff] }
 0x1cf   :  { %2170 = vmatpush.msrb.mxu2 %v1239_v29  ;;  %2086 = vmatmul.f32.vlgmr.msra.gmra.mxu1 %v2933_v42  ;;  %v1267_v12 = vld [vmem:[#allocation3 + $0x8d8] sm:$0xff] }
 0x1d0   :  { %2131 = vmatpush.msrb.mxu0 %v1107_v18  ;;  %2150 = vmatpush.msrb.mxu1 %v1175_v39  ;;  %v1067_v46 = vld [vmem:[#allocation3 + $0x298] sm:$0xff] }
 0x1d1   :  { %2171 = vmatpush.msrb.mxu2 %v1235_v48  ;;  %2195 = vmatpush.msrb.mxu3 %v1283_v9  ;;  %v1135_v31 = vld [vmem:[#allocation3 + $0x4b8] sm:$0xff] }
 0x1d2   :  { %2132 = vmatpush.msrb.mxu0 %v1103_v43  ;;  %2151 = vmatpush.msrb.mxu1 %v1171_v57  ;;  %v1195_v54 = vld [vmem:[#allocation3 + $0x698] sm:$0xff] }
 0x1d3   :  { %2172 = vmatpush.msrb.mxu2 %v1231_v20  ;;  %2196 = vmatpush.msrb.mxu3 %v1279_v47  ;;  %v1263_v53 = vld [vmem:[#allocation3 + $0x8b8] sm:$0xff] }
 0x1d4   :  { %2133 = vmatpush.msrb.mxu0 %v1099_v55  ;;  %2152 = vmatpush.msrb.mxu1 %v1167_v1  ;;  %v1063_v21 = vld [vmem:[#allocation3 + $0x278] sm:$0xff] }
 0x1d5   :  { %2173 = vmatpush.msrb.mxu2 %v1227_v33  ;;  %2197 = vmatpush.msrb.mxu3 %v1275_v32  ;;  %v1131_v52 = vld [vmem:[#allocation3 + $0x498] sm:$0xff] }
 0x1d6   :  { %2134 = vmatpush.msrb.mxu0 %v1095_v28  ;;  %2153 = vmatpush.msrb.mxu1 %v1163_v10  ;;  %v1191_v5 = vld [vmem:[#allocation3 + $0x678] sm:$0xff] }
 0x1d7   :  { %2174 = vmatpush.msrb.mxu2 %v1223_v7  ;;  %2198 = vmatpush.msrb.mxu3 %v1271_v19  ;;  %v1259_v26 = vld [vmem:[#allocation3 + $0x898] sm:$0xff] }
 0x1d8   :  { %2135 = vmatpush.msrb.mxu0 %v1091_v27  ;;  %2154 = vmatpush.msrb.mxu1 %v1159_v56  ;;  %v1059_v61 = vld [vmem:[#allocation3 + $0x258] sm:$0xff] }
 0x1d9   :  { %2175 = vmatpush.msrb.mxu2 %v1219_v37  ;;  %2199 = vmatpush.msrb.mxu3 %v1267_v12  ;;  %v1127_v3 = vld [vmem:[#allocation3 + $0x478] sm:$0xff] }
 0x1da   :  { %2136 = vmatpush.msrb.mxu0 %v1087_v8  ;;  %2155 = vmatpush.msrb.mxu1 %v1155_v0  ;;  %v1187_v13 = vld [vmem:[#allocation3 + $0x658] sm:$0xff] }
 0x1db   :  { %2176 = vmatpush.msrb.mxu2 %v1215_v40  ;;  %2200 = vmatpush.msrb.mxu3 %v1263_v53  ;;  %v1255_v30 = vld [vmem:[#allocation3 + $0x878] sm:$0xff] }
 0x1dc   :  { %2137 = vmatpush.msrb.mxu0 %v1083_v59  ;;  %2156 = vmatpush.msrb.mxu1 %v1151_v23  ;;  %v1055_v29 = vld [vmem:[#allocation3 + $0x238] sm:$0xff] }
 0x1dd   :  { %2177 = vmatpush.msrb.mxu2 %v1211_v41  ;;  %2201 = vmatpush.msrb.mxu3 %v1259_v26  ;;  %v1123_v50 = vld [vmem:[#allocation3 + $0x458] sm:$0xff] }
 0x1de   :  { %2138 = vmatpush.msrb.mxu0 %v1079_v60  ;;  %2157 = vmatpush.msrb.mxu1 %v1147_v15  ;;  %v1183_v11 = vld [vmem:[#allocation3 + $0x638] sm:$0xff] }
 0x1df   :  { %2178 = vmatpush.msrb.mxu2 %v1207_v24  ;;  %v1251_v18 = vld [vmem:[#allocation3 + $0x858] sm:$0xff]  ;;  %2202 = vmatpush.msrb.mxu3 %v1255_v30 }
 0x1e0   :  { %2139 = vmatpush.msrb.mxu0 %v1075_v4  ;;  %2158 = vmatpush.msrb.mxu1 %v1143_v35  ;;  %v1051_v39 = vld [vmem:[#allocation3 + $0x218] sm:$0xff] }
 0x1e1   :  { %2179 = vmatpush.msrb.mxu2 %v1203_v14  ;;  %v1119_v48 = vld [vmem:[#allocation3 + $0x438] sm:$0xff]  ;;  %2203 = vmatpush.msrb.mxu3 %v1251_v18 }
 0x1e2   :  { %2140 = vmatpush.msrb.mxu0 %v1071_v63  ;;  %2159 = vmatpush.msrb.mxu1 %v1139_v6  ;;  %v1179_v25 = vld [vmem:[#allocation3 + $0x618] sm:$0xff] }
 0x1e3   :  { %2180 = vmatpush.msrb.mxu2 %v1199_v45  ;;  %v1247_v43 = vld [vmem:[#allocation3 + $0x838] sm:$0xff] }
 0x1e4   :  { %2141 = vmatpush.msrb.mxu0 %v1067_v46  ;;  %2160 = vmatpush.msrb.mxu1 %v1135_v31  ;;  %v1367_v57 = vld [vmem:[#allocation3 + $0xbf8] sm:$0xff] }
 0x1e5   :  { %2181 = vmatpush.msrb.mxu2 %v1195_v54  ;;  %v1495_v20 = vld [vmem:[#allocation3 + $0xff8] sm:$0xff]  ;;  %2204 = vmatpush.msrb.mxu3 %v1247_v43 }
 0x1e6   :  { %2142 = vmatpush.msrb.mxu0 %v1063_v21  ;;  %2161 = vmatpush.msrb.mxu1 %v1131_v52  ;;  %v1115_v51 = vld [vmem:[#allocation3 + $0x418] sm:$0xff] }
 0x1e7   :  { %2182 = vmatpush.msrb.mxu2 %v1191_v5  ;;  %v1243_v55 = vld [vmem:[#allocation3 + $0x818] sm:$0xff] }
 0x1e8   :  { %2143 = vmatpush.msrb.mxu0 %v1059_v61  ;;  %2162 = vmatpush.msrb.mxu1 %v1127_v3  ;;  %v1363_v1 = vld [vmem:[#allocation3 + $0xbd8] sm:$0xff] }
 0x1e9   :  { %2183 = vmatpush.msrb.mxu2 %v1187_v13  ;;  %v1431_v33 = vld [vmem:[#allocation3 + $0xdf8] sm:$0xff]  ;;  %2205 = vmatpush.msrb.mxu3 %v1243_v55 }
 0x1ea   :  { %2144 = vmatpush.msrb.mxu0 %v1055_v29  ;;  %2163 = vmatpush.msrb.mxu1 %v1123_v50  ;;  %v1491_v17 = vld [vmem:[#allocation3 + $0xfd8] sm:$0xff] }
 0x1eb   :  { %2184 = vmatpush.msrb.mxu2 %v1183_v11  ;;  %v1559_v28 = vld [vmem:[#allocation3 + $0x11f8] sm:$0xff]  ;;  %2206 = vmatmul.f32.vlgmr.msrb.gmra.mxu3 %v2907_v58 }
 0x1ec   :  { %2145 = vmatpush.msrb.mxu0 %v1051_v39  ;;  %2164 = vmatpush.msrb.mxu1 %v1119_v48  ;;  %v1359_v10 = vld [vmem:[#allocation3 + $0xbb8] sm:$0xff] }
 0x1ed   :  { %2185 = vmatpush.msrb.mxu2 %v1179_v25  ;;  %v1427_v7 = vld [vmem:[#allocation3 + $0xdd8] sm:$0xff]  ;;  %2270 = vmatpush.msra.mxu3 %v1559_v28  ;;  %v1647_v28 = vpop.f32.mrf.mxu3 }
 0x1ee   :  { %2210 = vmatpush.msra.mxu0 %v1367_v57  ;;  %2165 = vmatpush.msrb.mxu1 %v1115_v51  ;;  %v1487_v49 = vld [vmem:[#allocation3 + $0xfb8] sm:$0xff] }
 0x1ef   :  { %2250 = vmatpush.msra.mxu2 %v1495_v20  ;;  %v1555_v27 = vld [vmem:[#allocation3 + $0x11d8] sm:$0xff]  ;;  %2146 = vmatmul.f32.vlgmr.msrb.gmra.mxu0 %v3121_v36 }
 0x1f0   :  { %2211 = vmatpush.msra.mxu0 %v1363_v1  ;;  %2230 = vmatpush.msra.mxu1 %v1431_v33  ;;  %v1355_v56 = vld [vmem:[#allocation3 + $0xb98] sm:$0xff] }
 0x1f1   :  { %2251 = vmatpush.msra.mxu2 %v1491_v17  ;;  %v1423_v37 = vld [vmem:[#allocation3 + $0xdb8] sm:$0xff]  ;;  %2271 = vmatpush.msra.mxu3 %v1555_v27  ;;  %v1587_v17 = vpop.f32.mrf.mxu0 }
 0x1f2   :  { %2212 = vmatpush.msra.mxu0 %v1359_v10  ;;  %v1483_v62 = vld [vmem:[#allocation3 + $0xf98] sm:$0xff]  ;;  %2231 = vmatpush.msra.mxu1 %v1427_v7  ;;  %v1607_v10 = vpop.f32.mrf.mxu1  ;;  %v1627_v7 = vpop.f32.mrf.mxu2 }
 0x1f3   :  { %2252 = vmatpush.msra.mxu2 %v1487_v49  ;;  %v1551_v8 = vld [vmem:[#allocation3 + $0x11b8] sm:$0xff]  ;;  %2166 = vmatmul.f32.vlgmr.msrb.gmra.mxu1 %v3122_v38 }
 0x1f4   :  { %2213 = vmatpush.msra.mxu0 %v1355_v56  ;;  %v1351_v0 = vld [vmem:[#allocation3 + $0xb78] sm:$0xff]  ;;  %2232 = vmatpush.msra.mxu1 %v1423_v37 }
 0x1f5   :  { %v1419_v40 = vld [vmem:[#allocation3 + $0xd98] sm:$0xff]  ;;  %2253 = vmatpush.msra.mxu2 %v1483_v62  ;;  %2272 = vmatpush.msra.mxu3 %v1551_v8  ;;  %v1727_v27 = vpop.f32.mrf.mxu3 }
 0x1f6   :  { %v1479_v34 = vld [vmem:[#allocation3 + $0xf78] sm:$0xff]  ;;  %2186 = vmatmul.f32.vlgmr.msrb.gmra.mxu2 %v3124_v16  ;;  %2214 = vmatpush.msra.mxu0 %v1351_v0 }
 0x1f7   :  { %v1547_v9 = vld [vmem:[#allocation3 + $0x1198] sm:$0xff]  ;;  %2233 = vmatpush.msra.mxu1 %v1419_v40  ;;  %2254 = vmatpush.msra.mxu2 %v1479_v34 }
 0x1f8   :  { %v1347_v59 = vld [vmem:[#allocation3 + $0xb58] sm:$0xff]  ;;  %2273 = vmatpush.msra.mxu3 %v1547_v9 }
 0x1f9   :  { %v1415_v23 = vld [vmem:[#allocation3 + $0xd78] sm:$0xff]  ;;  %2215 = vmatpush.msra.mxu0 %v1347_v59  ;;  %v1667_v49 = vpop.f32.mrf.mxu0 }
 0x1fa   :  { %v1475_v41 = vld [vmem:[#allocation3 + $0xf58] sm:$0xff]  ;;  %2234 = vmatpush.msra.mxu1 %v1415_v23  ;;  %v1687_v56 = vpop.f32.mrf.mxu1  ;;  %v1707_v37 = vpop.f32.mrf.mxu2 }
 0x1fb   :  { %v1543_v47 = vld [vmem:[#allocation3 + $0x1178] sm:$0xff]  ;;  %2255 = vmatpush.msra.mxu2 %v1475_v41 }
 0x1fc   :  { %v1343_v60 = vld [vmem:[#allocation3 + $0xb38] sm:$0xff]  ;;  %2274 = vmatpush.msra.mxu3 %v1543_v47 }
 0x1fd   :  { %v1411_v15 = vld [vmem:[#allocation3 + $0xd58] sm:$0xff]  ;;  %2216 = vmatpush.msra.mxu0 %v1343_v60  ;;  %v1807_v8 = vpop.f32.mrf.mxu3 }
 0x1fe   :  { %v1471_v24 = vld [vmem:[#allocation3 + $0xf38] sm:$0xff]  ;;  %2235 = vmatpush.msra.mxu1 %v1411_v15 }
 0x1ff   :  { %v1539_v16 = vld [vmem:[#allocation3 + $0x1158] sm:$0xff]  ;;  %2256 = vmatpush.msra.mxu2 %v1471_v24 }
 0x200   :  { %v1339_v32 = vld [vmem:[#allocation3 + $0xb18] sm:$0xff]  ;;  %2275 = vmatpush.msra.mxu3 %v1539_v16 }
 0x201   :  { %v1407_v4 = vld [vmem:[#allocation3 + $0xd38] sm:$0xff]  ;;  %2217 = vmatpush.msra.mxu0 %v1339_v32  ;;  %v1747_v62 = vpop.f32.mrf.mxu0 }
 0x202   :  { %v1467_v35 = vld [vmem:[#allocation3 + $0xf18] sm:$0xff]  ;;  %2236 = vmatpush.msra.mxu1 %v1407_v4  ;;  %v1767_v0 = vpop.f32.mrf.mxu1 }
 0x203   :  { %v1535_v14 = vld [vmem:[#allocation3 + $0x1138] sm:$0xff]  ;;  %2257 = vmatpush.msra.mxu2 %v1467_v35 }
 0x204   :  { %v1335_v36 = vld [vmem:[#allocation3 + $0xaf8] sm:$0xff]  ;;  %2276 = vmatpush.msra.mxu3 %v1535_v14 }
 0x205   :  { %v1403_v58 = vld [vmem:[#allocation3 + $0xd18] sm:$0xff]  ;;  %2218 = vmatpush.msra.mxu0 %v1335_v36 }
 0x206   :  { %v1463_v19 = vld [vmem:[#allocation3 + $0xef8] sm:$0xff]  ;;  %2237 = vmatpush.msra.mxu1 %v1403_v58 }
 0x207   :  { %v1531_v63 = vld [vmem:[#allocation3 + $0x1118] sm:$0xff]  ;;  %2258 = vmatpush.msra.mxu2 %v1463_v19 }
 0x208   :  { %v1331_v6 = vld [vmem:[#allocation3 + $0xad8] sm:$0xff]  ;;  %2277 = vmatpush.msra.mxu3 %v1531_v63 }
 0x209   :  { %v1399_v45 = vld [vmem:[#allocation3 + $0xcf8] sm:$0xff]  ;;  %2219 = vmatpush.msra.mxu0 %v1331_v6  ;;  %v1827_v40 = vpop.f32.mrf.mxu0 }
 0x20a   :  { %v1459_v12 = vld [vmem:[#allocation3 + $0xed8] sm:$0xff]  ;;  %2238 = vmatpush.msra.mxu1 %v1399_v45  ;;  %v1847_v34 = vpop.f32.mrf.mxu1 }
 0x20b   :  { %v1527_v38 = vld [vmem:[#allocation3 + $0x10f8] sm:$0xff]  ;;  %2259 = vmatpush.msra.mxu2 %v1459_v12 }
 0x20c   :  { %v1327_v46 = vld [vmem:[#allocation3 + $0xab8] sm:$0xff]  ;;  %2278 = vmatpush.msra.mxu3 %v1527_v38 }
 0x20d   :  { %v1395_v31 = vld [vmem:[#allocation3 + $0xcd8] sm:$0xff]  ;;  %2220 = vmatpush.msra.mxu0 %v1327_v46 }
 0x20e   :  { %v1455_v54 = vld [vmem:[#allocation3 + $0xeb8] sm:$0xff]  ;;  %2239 = vmatpush.msra.mxu1 %v1395_v31 }
 0x20f   :  { %v1523_v53 = vld [vmem:[#allocation3 + $0x10d8] sm:$0xff]  ;;  %2260 = vmatpush.msra.mxu2 %v1455_v54 }
 0x210   :  { %v1323_v21 = vld [vmem:[#allocation3 + $0xa98] sm:$0xff]  ;;  %2279 = vmatpush.msra.mxu3 %v1523_v53 }
 0x211   :  { %v1391_v52 = vld [vmem:[#allocation3 + $0xcb8] sm:$0xff]  ;;  %2221 = vmatpush.msra.mxu0 %v1323_v21  ;;  %v1907_v59 = vpop.f32.mrf.mxu0 }
 0x212   :  { %v1451_v5 = vld [vmem:[#allocation3 + $0xe98] sm:$0xff]  ;;  %2240 = vmatpush.msra.mxu1 %v1391_v52  ;;  %v1927_v23 = vpop.f32.mrf.mxu1 }
 0x213   :  { %v1519_v26 = vld [vmem:[#allocation3 + $0x10b8] sm:$0xff]  ;;  %2261 = vmatpush.msra.mxu2 %v1451_v5 }
 0x214   :  { %v1319_v61 = vld [vmem:[#allocation3 + $0xa78] sm:$0xff]  ;;  %2280 = vmatpush.msra.mxu3 %v1519_v26 }
 0x215   :  { %v1387_v3 = vld [vmem:[#allocation3 + $0xc98] sm:$0xff]  ;;  %2222 = vmatpush.msra.mxu0 %v1319_v61 }
 0x216   :  { %v1447_v13 = vld [vmem:[#allocation3 + $0xe78] sm:$0xff]  ;;  %2241 = vmatpush.msra.mxu1 %v1387_v3 }
 0x217   :  { %v1515_v30 = vld [vmem:[#allocation3 + $0x1098] sm:$0xff]  ;;  %2262 = vmatpush.msra.mxu2 %v1447_v13 }
 0x218   :  { %v1315_v29 = vld [vmem:[#allocation3 + $0xa58] sm:$0xff]  ;;  %2281 = vmatpush.msra.mxu3 %v1515_v30 }
 0x219   :  { %v1383_v50 = vld [vmem:[#allocation3 + $0xc78] sm:$0xff]  ;;  %2223 = vmatpush.msra.mxu0 %v1315_v29  ;;  %v1987_v60 = vpop.f32.mrf.mxu0 }
 0x21a   :  { %v1443_v11 = vld [vmem:[#allocation3 + $0xe58] sm:$0xff]  ;;  %2242 = vmatpush.msra.mxu1 %v1383_v50 }
 0x21b   :  { %v1511_v18 = vld [vmem:[#allocation3 + $0x1078] sm:$0xff]  ;;  %2263 = vmatpush.msra.mxu2 %v1443_v11 }
 0x21c   :  { %v1311_v39 = vld [vmem:[#allocation3 + $0xa38] sm:$0xff]  ;;  %2282 = vmatpush.msra.mxu3 %v1511_v18 }
 0x21d   :  { %v1379_v48 = vld [vmem:[#allocation3 + $0xc58] sm:$0xff]  ;;  %2224 = vmatpush.msra.mxu0 %v1311_v39 }
 0x21e   :  { %v1439_v25 = vld [vmem:[#allocation3 + $0xe38] sm:$0xff]  ;;  %2243 = vmatpush.msra.mxu1 %v1379_v48 }
 0x21f   :  { %v1507_v43 = vld [vmem:[#allocation3 + $0x1058] sm:$0xff]  ;;  %2264 = vmatpush.msra.mxu2 %v1439_v25  ;;  %v2007_v32 = vpop.f32.mrf.mxu1 }
 0x220   :  { %v1307_v57 = vld [vmem:[#allocation3 + $0xa18] sm:$0xff]  ;;  %2283 = vmatpush.msra.mxu3 %v1507_v43 }
 0x221   :  { %v1375_v20 = vld [vmem:[#allocation3 + $0xc38] sm:$0xff]  ;;  %2225 = vmatpush.msra.mxu0 %v1307_v57 }
 0x222   :  { %v1435_v51 = vld [vmem:[#allocation3 + $0xe18] sm:$0xff]  ;;  %2244 = vmatpush.msra.mxu1 %v1375_v20  ;;  %2226 = vmatmul.f32.vlgmr.msra.gmra.mxu0 %v3035_v44  ;;  %v1787_v44 = vpop.f32.mrf.mxu2 }
 0x223   :  { %v1503_v55 = vld [vmem:[#allocation3 + $0x1038] sm:$0xff]  ;;  %2265 = vmatpush.msra.mxu2 %v1435_v51 }
 0x224   :  { %v1371_v1 = vld [vmem:[#allocation3 + $0xc18] sm:$0xff]  ;;  %2284 = vmatpush.msra.mxu3 %v1503_v55  ;;  %2266 = vmatmul.f32.vlgmr.msra.gmra.mxu2 %v2933_v42  ;;  %v1887_v42 = vpop.f32.mrf.mxu3 }
 0x225   :  { %v1499_v33 = vld [vmem:[#allocation3 + $0x1018] sm:$0xff]  ;;  %2245 = vmatpush.msra.mxu1 %v1371_v1 }
 0x226   :  { %2285 = vmatpush.msra.mxu3 %v1499_v33  ;;  %2246 = vmatmul.f32.vlgmr.msra.gmra.mxu1 %v3125_v22 }
 0x227   :  { %2286 = vmatmul.f32.vlgmr.msra.gmra.mxu3 %v3045_v2  ;;  %v1560_v2 = vld [vmem:[#allocation5] sm:$0xf] }
 0x228   :  { %v1563_v47 = vperm.slane %v1560_v2, 1  ;;  %v1562_v15 = vperm.slane %v1560_v2, 0  ;;  %v1564_v16 = vperm.slane %v1560_v2, 2  ;;  %v1565_v12 = vperm.slane %v1560_v2, 3 }
 0x22a   :  { %v1867_v9 = vpop.f32.mrf.mxu2  ;;  %v1768_v24 = vadd.f32 %v1767_v0, %v1563_v47  ;;  %v1588_v35 = vadd.f32 %v1587_v17, %v1562_v15 }
 0x22c   :  { %v1967_v22 = vpop.f32.mrf.mxu3  ;;  %v1788_v14 = vadd.f32 %v1787_v44, %v1768_v24  ;;  %v1608_v63 = vadd.f32 %v1607_v10, %v1588_v35 }
 0x22e   :  { %v1808_v6 = vadd.f32 %v1807_v8, %v1788_v14  ;;  %v1628_v31 = vadd.f32 %v1627_v7, %v1608_v63 }
 0x230   :  { %v1828_v54 = vadd.f32 %v1827_v40, %v1808_v6  ;;  %v1648_v26 = vadd.f32 %v1647_v28, %v1628_v31 }
 0x232   :  { %v1947_v41 = vpop.f32.mrf.mxu2  ;;  %v1848_v61 = vadd.f32 %v1847_v34, %v1828_v54  ;;  %v1668_v29 = vadd.f32 %v1667_v49, %v1648_v26 }
 0x233   :  { %v1948_v36 = vadd.f32 %v1947_v41, %v1564_v16 }
 0x234   :  { %v2047_v4 = vpop.f32.mrf.mxu3  ;;  %v1868_v50 = vadd.f32 %v1867_v9, %v1848_v61  ;;  %v1688_v48 = vadd.f32 %v1687_v56, %v1668_v29 }
 0x235   :  { %v1968_v45 = vadd.f32 %v1967_v22, %v1948_v36 }
 0x236   :  { %v1888_v25 = vadd.f32 %v1887_v42, %v1868_v50  ;;  %v1708_v51 = vadd.f32 %v1707_v37, %v1688_v48 }
 0x237   :  { %v1988_v53 = vadd.f32 %v1987_v60, %v1968_v45 }
 0x238   :  { %v1908_v55 = vadd.f32 %v1907_v59, %v1888_v25  ;;  %v1728_v28 = vadd.f32 %v1727_v27, %v1708_v51 }
 0x239   :  { %v2008_v3 = vadd.f32 %v2007_v32, %v1988_v53 }
 0x23a   :  { %v2027_v58 = vpop.f32.mrf.mxu2  ;;  %v1928_v10 = vadd.f32 %v1927_v23, %v1908_v55  ;;  %v1748_v49 = vadd.f32 %v1747_v62, %v1728_v28 }
 0x23b   :  { %v2028_v11 = vadd.f32 %v2027_v58, %v2008_v3 }
 0x23c   :  { %v2291_v40 = vmul.f32 %v1928_v10, %v1928_v10  ;;  %v2290_v56 = vmul.f32 %v1748_v49, %v1748_v49 }
 0x23d   :  { %v2048_v43 = vadd.f32 %v2047_v4, %v2028_v11 }
 0x23e   :  { %v2294_v37 = vadd.f32 %v2291_v40, %v2290_v56 }
 0x244   :  { %v2127_v46 = vpop.f32.mrf.mxu3 }
 0x245   :  { %v2128_v21 = vadd.f32 %v2127_v46, %v1565_v12 }
 0x249   :  { %v2067_v19 = vpop.f32.mrf.mxu0 }
 0x24a   :  { %v2068_v1 = vadd.f32 %v2067_v19, %v2048_v43 }
 0x24c   :  { %v2087_v38 = vpop.f32.mrf.mxu1 }
 0x24d   :  { %v2088_v7 = vadd.f32 %v2087_v38, %v2068_v1 }
 0x251   :  { %v2107_v52 = vpop.f32.mrf.mxu2 }
 0x252   :  { %v2108_v44 = vadd.f32 %v2107_v52, %v2088_v7 }
 0x254   :  { %v2292_v42 = vmul.f32 %v2108_v44, %v2108_v44 }
 0x256   :  { %v2295_v47 = vadd.f32 %v2294_v37, %v2292_v42 }
 0x26c   :  { %v2147_v5 = vpop.f32.mrf.mxu0 }
 0x26d   :  { %v2148_v13 = vadd.f32 %v2147_v5, %v2128_v21 }
 0x26e   :  { %v2207_v20 = vpop.f32.mrf.mxu3 }
 0x270   :  { %v2167_v30 = vpop.f32.mrf.mxu1 }
 0x271   :  { %v2168_v18 = vadd.f32 %v2167_v30, %v2148_v13 }
 0x279   :  { %v2187_v39 = vpop.f32.mrf.mxu2 }
 0x27a   :  { %v2188_v57 = vadd.f32 %v2187_v39, %v2168_v18 }
 0x27c   :  { %v2208_v33 = vadd.f32 %v2207_v20, %v2188_v57 }
 0x29f   :  { %v2227_v17 = vpop.f32.mrf.mxu0 }
 0x2a0   :  { %v2228_v8 = vadd.f32 %v2227_v17, %v2208_v33 }
 0x2a3   :  { %v2247_v0 = vpop.f32.mrf.mxu1 }
 0x2a4   :  { %v2248_v34 = vadd.f32 %v2247_v0, %v2228_v8 }
 0x2a7   :  { %v2267_v9 = vpop.f32.mrf.mxu2 }
 0x2a8   :  { %v2268_v22 = vadd.f32 %v2267_v9, %v2248_v34 }
 0x2aa   :  { %v2287_v2 = vpop.f32.mrf.mxu3 }
 0x2ab   :  { %v2288_v41 = vadd.f32 %v2287_v2, %v2268_v22 }
 0x2ad   :  { %v2293_v59 = vmul.f32 %v2288_v41, %v2288_v41 }
 0x2af   :  { %v2296_v60 = vadd.f32 %v2295_v47, %v2293_v59 }
 0x2b1   :  { %2297 = vadd.xlane.f32.xlu0 %v2296_v60 }
 0x324   :  { %v2298_v27 = vpop.xlane.xlu0 %2297 }
 0x325   :  { %v2299_v23 = vmax.f32 %v2298_v27, 1e-24 }
 0x327   :  { %2328 = vrsqrt.f32 %v2299_v23  ;;  %vm2306_vm8 = vweird.f32 %v2299_v23 }
 0x32d   :  { %v2329_v15 = vpop.eup %2328 }
 0x32e   :  { %v2301_v24 = vmul.f32 %v2329_v15, %v2299_v23  ;;  %vm2307_vm7 = vweird.f32 %v2329_v15 }
 0x32f   :  { %vm2308_vm9 = vmor %vm2306_vm8, %vm2307_vm7 }
 0x330   :  { %v2302_v62 = vmul.f32 %v2329_v15, %v2301_v24 }
 0x332   :  { %v2303_v16 = vmul.f32 0.5, %v2302_v62 }
 0x334   :  { %v2304_v32 = vsub.f32 1.5, %v2303_v16 }
 0x336   :  { %v2305_v4 = vmul.f32 %v2329_v15, %v2304_v32 }
 0x338   :  { %v2309_v35 = vsel %vm2308_vm9, %v2329_v15, %v2305_v4 }
 0x339   :  { %v2310_v14 = vmul.f32 %v2309_v35, %v1748_v49  ;;  %v2311_v36 = vmul.f32 %v2309_v35, %v1928_v10  ;;  %v2312_v58 = vmul.f32 %v2309_v35, %v2108_v44  ;;  %v2313_v19 = vmul.f32 %v2309_v35, %v2288_v41 }
 0x33b   :  { %2314 = vst [vmem:[%s3088_s3] sm:$0xff] %v2310_v14 }
 0x33c   :  { %2315 = vst [vmem:[%s3088_s3 + $0x8] sm:$0xff] %v2311_v36 }
 0x33d   :  { %2316 = vst [vmem:[%s3088_s3 + $0x10] sm:$0xff] %v2312_v58 }
 0x33e   :  { %2317 = vst [vmem:[%s3088_s3 + $0x18] sm:$0xff] %v2313_v19 }
 0x33f   :  { %2322 = vsyncpa [#allocation4], 1 }
 0x340   :  { %2323 = vsyncpa [#allocation6], 1 }

</bundles_post_ra>
